<compile_context>
chip_gen: v7x
topology: tpu7x:2x2x1
jax: 0.10.0
libtpu: 0.0.40
codegen_flags: <defaults>
</compile_context>

<pallas_src>
import jax
import jax.numpy as jnp
import numpy as np
from jax.experimental import pallas as pl
from jax.experimental.pallas import tpu as pltpu

C = 24            # trunk channels
K1 = 5            # stem conv kernel
L_IN = 186        # input length (744 = 24 * 31, 31 = 62 // 2)
L0 = 62           # length after conv1 (k=5, stride=3, pad=1)
LP = 31           # length after MaxPool1d(2)
FLAT = C * LP     # 744
H1 = 128
NOUT = 5
NOUT_PAD = 128    # fc2 output padded to a full lane width
EPS = 1e-5

BBLK = 8          # samples per feature-kernel grid step
LPAD = 64         # per-sample lane stride (62 valid + 2 zero pad)
BL = BBLK * LPAD  # 512 lanes per block


def _elu(v):
    # ELU(alpha=1): x if x > 0 else exp(x) - 1
    return jnp.where(v > 0, v, jnp.exp(jnp.minimum(v, 0.0)) - 1.0)


# ---------------------------------------------------------------------------
# Kernel 1: stem conv + BN + 3 residual blocks + pair-max.  BBLK samples/step.
# ---------------------------------------------------------------------------
def feature_kernel(patches_ref, w1_ref, t1_ref, wa_ref, ta_ref,
                   wb_ref, tb_ref, maskr_ref, maskl_ref, out_ref):
    f32 = jnp.float32
    mask_r = maskr_ref[...]   # (1, BL): 0 at per-sample first column
    mask_l = maskl_ref[...]   # (1, BL): 0 at per-sample last valid column

    def conv3(h, w, t):
        # k=3 / pad=1 conv as a single (C, 3C) @ (3C, BL) matmul.
        # Shifts go through the XLU (roll); per-sample wrap columns zeroed.
        h_r = pltpu.roll(h, 1, axis=1) * mask_r        # h[:, t-1], 0 at t=0
        h_l = pltpu.roll(h, BL - 1, axis=1) * mask_l   # h[:, t+1], 0 at t=L-1
        hcat = jnp.concatenate([h_r, h, h_l], axis=0)  # (3C, BL)
        return jnp.dot(w, hcat, preferred_element_type=f32) + t

    # stem: im2col'd stride-3 conv (BN scale folded into w1) + BN shift
    h = jnp.dot(w1_ref[...], patches_ref[0],
                preferred_element_type=f32) + t1_ref[...]          # (C, BL)

    # three residual blocks (BN scales pre-folded into the fused weights)
    for r in range(3):
        u = _elu(conv3(h, wa_ref[r], ta_ref[r]))
        v = conv3(u, wb_ref[r], tb_ref[r])
        h = _elu(v + h)

    # MaxPool1d(2): adjacent-pair max; even-column pick happens in the wrapper
    out_ref[0] = jnp.maximum(h, pltpu.roll(h, BL - 1, axis=1))


# ---------------------------------------------------------------------------
# Kernel 2: fc1 + ELU + fc2 + sigmoid, tiled over batch blocks.
# ---------------------------------------------------------------------------
def head_kernel(flat_ref, f1w_ref, f1b_ref, f2w_ref, f2b_ref, out_ref):
    f32 = jnp.float32
    x = flat_ref[...]                                              # (BBLK, 744)
    h = _elu(jnp.dot(x, f1w_ref[...], preferred_element_type=f32) + f1b_ref[...])
    z = jnp.dot(h, f2w_ref[...], preferred_element_type=f32) + f2b_ref[...]
    out_ref[...] = 1.0 / (1.0 + jnp.exp(-z))                       # sigmoid


# ---------------------------------------------------------------------------
# Wrapper
# ---------------------------------------------------------------------------
def rescnn_forward(x, p):
    B = x.shape[0]
    n_blocks = -(-B // BBLK)
    Bp = n_blocks * BBLK
    if Bp != B:
        x = jnp.pad(x, ((0, Bp - B), (0, 0), (0, 0)))

    # im2col for the stride-3 stem conv (glue): patches[b,k,t] = xpad[b,0,3t+k]
    xpad = jnp.pad(x, ((0, 0), (0, 0), (1, 1)))
    patches = jnp.stack([xpad[:, 0, k:k + 3 * L0 - 2:3] for k in range(K1)],
                        axis=1)                                    # (Bp, 5, 62)
    patches = jnp.pad(patches, ((0, 0), (0, 0), (0, LPAD - L0)))   # (Bp, 5, 64)
    patches = patches.reshape(n_blocks, BBLK, K1, LPAD)
    patches = patches.transpose(0, 2, 1, 3).reshape(n_blocks, K1, BL)

    # lane masks zeroing the per-sample wrap columns of the rolled operands
    lane = np.arange(BL)
    mask_r = jnp.asarray((lane % LPAD != 0).astype(np.float32)[None, :])
    mask_l = jnp.asarray((lane % LPAD != L0 - 1).astype(np.float32)[None, :])

    feat = pl.pallas_call(
        feature_kernel,
        out_shape=jax.ShapeDtypeStruct((n_blocks, C, BL), jnp.float32),
        grid=(n_blocks,),
        in_specs=[
            pl.BlockSpec((1, K1, BL), lambda g: (g, 0, 0)),
            pl.BlockSpec((C, K1), lambda g: (0, 0)),
            pl.BlockSpec((C, 1), lambda g: (0, 0)),
            pl.BlockSpec((3, C, 3 * C), lambda g: (0, 0, 0)),
            pl.BlockSpec((3, C, 1), lambda g: (0, 0, 0)),
            pl.BlockSpec((3, C, 3 * C), lambda g: (0, 0, 0)),
            pl.BlockSpec((3, C, 1), lambda g: (0, 0, 0)),
            pl.BlockSpec((1, BL), lambda g: (0, 0)),
            pl.BlockSpec((1, BL), lambda g: (0, 0)),
        ],
        out_specs=pl.BlockSpec((1, C, BL), lambda g: (g, 0, 0)),
        compiler_params=pltpu.CompilerParams(
            dimension_semantics=("parallel",)),
    )(patches, p['w1f'], p['t1'], p['WAf'], p['TA'], p['WBf'], p['TB'],
      mask_r, mask_l)

    # finish MaxPool1d(2): pick even columns, then PyTorch-order flatten (glue)
    pooled = feat.reshape(n_blocks, C, BBLK, LPAD)[..., 0:L0:2]    # (nb,C,Bb,31)
    flat = pooled.transpose(0, 2, 1, 3).reshape(Bp, FLAT)          # (Bp, 744)

    out = pl.pallas_call(
        head_kernel,
        out_shape=jax.ShapeDtypeStruct((Bp, NOUT_PAD), jnp.float32),
        grid=(Bp // BBLK,),
        in_specs=[
            pl.BlockSpec((BBLK, FLAT), lambda i: (i, 0)),
            pl.BlockSpec((FLAT, H1), lambda i: (0, 0)),
            pl.BlockSpec((1, H1), lambda i: (0, 0)),
            pl.BlockSpec((H1, NOUT_PAD), lambda i: (0, 0)),
            pl.BlockSpec((1, NOUT_PAD), lambda i: (0, 0)),
        ],
        out_specs=pl.BlockSpec((BBLK, NOUT_PAD), lambda i: (i, 0)),
        compiler_params=pltpu.CompilerParams(
            dimension_semantics=("parallel",)),
    )(flat, p['fc1wT'], p['fc1b'], p['fc2wT_pad'], p['fc2b_pad'])

    return out[:B, :NOUT]


# ---------------------------------------------------------------------------
# Deterministic parameter init (PyTorch-like uniform ranges) + BN folding.
# BN scale is folded INTO the conv weights; only the shift stays in-kernel.
# ---------------------------------------------------------------------------
def init_params(key):
    keys = iter(jax.random.split(key, 64))

    def unif(shape, fan_in):
        b = 1.0 / float(fan_in) ** 0.5
        return jax.random.uniform(next(keys), shape, jnp.float32, -b, b)

    def bn_params(c):
        gamma = 1.0 + 0.1 * jax.random.normal(next(keys), (c,), jnp.float32)
        beta = 0.1 * jax.random.normal(next(keys), (c,), jnp.float32)
        mean = 0.1 * jax.random.normal(next(keys), (c,), jnp.float32)
        var = 1.0 + 0.5 * jax.random.uniform(next(keys), (c,), jnp.float32)
        return gamma, beta, mean, var

    def fold(conv_bias, bnp):
        gamma, beta, mean, var = bnp
        scale = gamma / jnp.sqrt(var + EPS)
        shift = beta + scale * (conv_bias - mean)
        return scale, shift

    def fuse_taps(w, scale):
        # w: (C, C, 3) -> (C, 3C) with BN scale folded in; column blocks are
        # tap k=0 (h[t-1]), k=1 (h[t]), k=2 (h[t+1]), matching the kernel hcat.
        return jnp.concatenate([scale[:, None] * w[:, :, k] for k in range(3)],
                               axis=1)

    p = {}

    # stem conv1 (1 -> 24, k=5) + bn1
    w1 = unif((C, 1, K1), 1 * K1)
    b1 = unif((C,), 1 * K1)
    s1, t1 = fold(b1, bn_params(C))
    p['conv1_w'] = w1
    p['w1f'] = w1.reshape(C, K1) * s1[:, None]
    p['s1'] = s1.reshape(C, 1)
    p['t1'] = t1.reshape(C, 1)

    WAf, WBf, SA, TA, SB, TB = [], [], [], [], [], []
    p['res_wa_raw'] = []
    p['res_wb_raw'] = []
    for _ in range(3):
        wa = unif((C, C, 3), C * 3)
        ba = unif((C,), C * 3)
        sa, ta = fold(ba, bn_params(C))
        wb = unif((C, C, 3), C * 3)
        bb = unif((C,), C * 3)
        sb, tb = fold(bb, bn_params(C))
        p['res_wa_raw'].append(wa)
        p['res_wb_raw'].append(wb)
        WAf.append(fuse_taps(wa, sa))
        WBf.append(fuse_taps(wb, sb))
        SA.append(sa.reshape(C, 1)); TA.append(ta.reshape(C, 1))
        SB.append(sb.reshape(C, 1)); TB.append(tb.reshape(C, 1))
    p['WAf'] = jnp.stack(WAf); p['WBf'] = jnp.stack(WBf)   # (3, C, 3C)
    p['SA'] = jnp.stack(SA); p['TA'] = jnp.stack(TA)       # (3, C, 1)
    p['SB'] = jnp.stack(SB); p['TB'] = jnp.stack(TB)

    fc1w = unif((H1, FLAT), FLAT)
    fc1b = unif((H1,), FLAT)
    fc2w = unif((NOUT, H1), H1)
    fc2b = unif((NOUT,), H1)
    p['fc1wT'] = fc1w.T                                    # (744, 128)
    p['fc1b'] = fc1b.reshape(1, H1)
    p['fc2wT'] = fc2w.T                                    # (128, 5)
    p['fc2b'] = fc2b.reshape(1, NOUT)
    p['fc2wT_pad'] = jnp.pad(fc2w.T, ((0, 0), (0, NOUT_PAD - NOUT)))
    p['fc2b_pad'] = jnp.pad(fc2b.reshape(1, NOUT), ((0, 0), (0, NOUT_PAD - NOUT)))
    return p


# ---------------------------------------------------------------------------
# Pure-JAX reference (lax.conv) used to sanity-check the Pallas kernels.
# ---------------------------------------------------------------------------
def ref_forward(x, p):
    prec = jax.lax.Precision.HIGHEST

    def conv1d(v, w, stride, pad):
        return jax.lax.conv_general_dilated(
            v, w, window_strides=(stride,), padding=[(pad, pad)],
            dimension_numbers=('NCH', 'OIH', 'NCH'), precision=prec)

    B = x.shape[0]
    h = conv1d(x, p['conv1_w'], 3, 1)
    h = h * p['s1'].reshape(1, C, 1) + p['t1'].reshape(1, C, 1)
    for r in range(3):
        u = _elu(conv1d(h, p['res_wa_raw'][r], 1, 1)
                 * p['SA'][r].reshape(1, C, 1) + p['TA'][r].reshape(1, C, 1))
        v = (conv1d(u, p['res_wb_raw'][r], 1, 1)
             * p['SB'][r].reshape(1, C, 1) + p['TB'][r].reshape(1, C, 1))
        h = _elu(v + h)
    h = h.reshape(B, C, LP, 2).max(axis=3)
    flat = h.reshape(B, -1)
    h1 = _elu(jnp.dot(flat, p['fc1wT'], precision=prec) + p['fc1b'])
    z = jnp.dot(h1, p['fc2wT'], precision=prec) + p['fc2b']
    return 1.0 / (1.0 + jnp.exp(-z))


if __name__ == "__main__":
    key = jax.random.PRNGKey(0)
    kx, kp = jax.random.split(key)
    x = jax.random.normal(kx, (2, 1, L_IN), jnp.float32)   # NCL, like PyTorch
    params = init_params(kp)

    out = rescnn_forward(x, params)
    out = jax.block_until_ready(out)
    assert out.shape == (2, NOUT), out.shape

    ref = jax.block_until_ready(ref_forward(x, params))
    diff = float(np.max(np.abs(np.asarray(out) - np.asarray(ref))))
    if not np.allclose(np.asarray(out), np.asarray(ref), atol=1e-3, rtol=1e-3):
        raise AssertionError(f"kernel/reference mismatch, max abs diff = {diff}")

    print("KERNEL_OK")
</pallas_src>

<mosaic_0001>
module attributes {stable_mosaic.version = 11 : i64} {
  func.func @feature_kernel(%arg0: i32, %arg1: memref<1x5x512xf32, #tpu.memory_space<vmem>>, %arg2: memref<24x5xf32, #tpu.memory_space<vmem>>, %arg3: memref<24x1xf32, #tpu.memory_space<vmem>>, %arg4: memref<3x24x72xf32, #tpu.memory_space<vmem>>, %arg5: memref<3x24x1xf32, #tpu.memory_space<vmem>>, %arg6: memref<3x24x72xf32, #tpu.memory_space<vmem>>, %arg7: memref<3x24x1xf32, #tpu.memory_space<vmem>>, %arg8: memref<1x512xf32, #tpu.memory_space<vmem>>, %arg9: memref<1x512xf32, #tpu.memory_space<vmem>>, %arg10: memref<1x24x512xf32, #tpu.memory_space<vmem>>) attributes {dimension_semantics = [#tpu.dimension_semantics<parallel>], iteration_bounds = array<i64: 1>, scalar_prefetch = 0 : i64, scratch_operands = 0 : i64, tpu.core_type = #tpu.core_type<tc>, window_params = [{transform_indices = @transform_0, window_bounds = array<i64: 1, 5, 512>}, {pipeline_mode = #tpu.pipeline_mode<synchronous>, transform_indices = @transform_1, window_bounds = array<i64: 24, 5>}, {pipeline_mode = #tpu.pipeline_mode<synchronous>, transform_indices = @transform_2, window_bounds = array<i64: 24, 1>}, {pipeline_mode = #tpu.pipeline_mode<synchronous>, transform_indices = @transform_3, window_bounds = array<i64: 3, 24, 72>}, {pipeline_mode = #tpu.pipeline_mode<synchronous>, transform_indices = @transform_4, window_bounds = array<i64: 3, 24, 1>}, {pipeline_mode = #tpu.pipeline_mode<synchronous>, transform_indices = @transform_5, window_bounds = array<i64: 3, 24, 72>}, {pipeline_mode = #tpu.pipeline_mode<synchronous>, transform_indices = @transform_6, window_bounds = array<i64: 3, 24, 1>}, {pipeline_mode = #tpu.pipeline_mode<synchronous>, transform_indices = @transform_7, window_bounds = array<i64: 1, 512>}, {pipeline_mode = #tpu.pipeline_mode<synchronous>, transform_indices = @transform_8, window_bounds = array<i64: 1, 512>}, {transform_indices = @transform_9, window_bounds = array<i64: 1, 24, 512>}]} {
    %c0 = arith.constant 0 : index
    %c0_0 = arith.constant 0 : index
    %0 = vector.load %arg8[%c0, %c0_0] : memref<1x512xf32, #tpu.memory_space<vmem>>, vector<1x512xf32>
    %c0_1 = arith.constant 0 : index
    %c0_2 = arith.constant 0 : index
    %1 = vector.load %arg9[%c0_1, %c0_2] : memref<1x512xf32, #tpu.memory_space<vmem>>, vector<1x512xf32>
    %c0_3 = arith.constant 0 : index
    %c0_4 = arith.constant 0 : index
    %2 = vector.load %arg2[%c0_3, %c0_4] : memref<24x5xf32, #tpu.memory_space<vmem>>, vector<24x5xf32>
    %c0_5 = arith.constant 0 : index
    %c0_6 = arith.constant 0 : index
    %c0_7 = arith.constant 0 : index
    %3 = vector.load %arg1[%c0_5, %c0_6, %c0_7] : memref<1x5x512xf32, #tpu.memory_space<vmem>>, vector<1x5x512xf32>
    %4 = vector.shape_cast %3 : vector<1x5x512xf32> to vector<5x512xf32>
    %cst = arith.constant dense<0.000000e+00> : vector<24x512xf32>
    %5 = tpu.matmul %2, %4, %cst {dimension_numbers = #tpu.dot_dimension_numbers<[1], [0], [0], [1], [0, 0, 1, 1], [], []>} : vector<24x5xf32>, vector<5x512xf32>, vector<24x512xf32> -> vector<24x512xf32>
    %c0_8 = arith.constant 0 : index
    %c0_9 = arith.constant 0 : index
    %6 = vector.load %arg3[%c0_8, %c0_9] : memref<24x1xf32, #tpu.memory_space<vmem>>, vector<24x1xf32>
    %7 = vector.broadcast %6 : vector<24x1xf32> to vector<24x512xf32>
    %8 = arith.addf %5, %7 : vector<24x512xf32>
    %c0_10 = arith.constant 0 : index
    %c0_11 = arith.constant 0 : index
    %c0_12 = arith.constant 0 : index
    %9 = vector.load %arg4[%c0_10, %c0_11, %c0_12] : memref<3x24x72xf32, #tpu.memory_space<vmem>>, vector<1x24x72xf32>
    %10 = vector.shape_cast %9 : vector<1x24x72xf32> to vector<24x72xf32>
    %c0_13 = arith.constant 0 : index
    %c0_14 = arith.constant 0 : index
    %c0_15 = arith.constant 0 : index
    %11 = vector.load %arg5[%c0_13, %c0_14, %c0_15] : memref<3x24x1xf32, #tpu.memory_space<vmem>>, vector<1x24x1xf32>
    %12 = vector.shape_cast %11 : vector<1x24x1xf32> to vector<24x1xf32>
    %c1_i32 = arith.constant 1 : i32
    %13 = tpu.dynamic_rotate %8 by %c1_i32 dim 1 : vector<24x512xf32>, i32 -> vector<24x512xf32>
    %14 = vector.broadcast %0 : vector<1x512xf32> to vector<24x512xf32>
    %15 = arith.mulf %13, %14 : vector<24x512xf32>
    %c511_i32 = arith.constant 511 : i32
    %16 = tpu.dynamic_rotate %8 by %c511_i32 dim 1 : vector<24x512xf32>, i32 -> vector<24x512xf32>
    %17 = vector.broadcast %1 : vector<1x512xf32> to vector<24x512xf32>
    %18 = arith.mulf %16, %17 : vector<24x512xf32>
    %19 = tpu.concatenate %15, %8, %18 in 0 : vector<24x512xf32>, vector<24x512xf32>, vector<24x512xf32> -> vector<72x512xf32>
    %cst_16 = arith.constant dense<0.000000e+00> : vector<24x512xf32>
    %20 = tpu.matmul %10, %19, %cst_16 {dimension_numbers = #tpu.dot_dimension_numbers<[1], [0], [0], [1], [0, 0, 1, 1], [], []>} : vector<24x72xf32>, vector<72x512xf32>, vector<24x512xf32> -> vector<24x512xf32>
    %21 = vector.broadcast %12 : vector<24x1xf32> to vector<24x512xf32>
    %22 = arith.addf %20, %21 : vector<24x512xf32>
    %cst_17 = arith.constant 0.000000e+00 : f32
    %23 = vector.broadcast %cst_17 : f32 to vector<24x512xf32>
    %24 = arith.cmpf ogt, %22, %23 : vector<24x512xf32>
    %cst_18 = arith.constant 0.000000e+00 : f32
    %25 = vector.broadcast %cst_18 : f32 to vector<24x512xf32>
    %26 = arith.minimumf %22, %25 : vector<24x512xf32>
    %27 = math.exp %26 : vector<24x512xf32>
    %cst_19 = arith.constant 1.000000e+00 : f32
    %28 = vector.broadcast %cst_19 : f32 to vector<24x512xf32>
    %29 = arith.subf %27, %28 : vector<24x512xf32>
    %30 = arith.select %24, %22, %29 : vector<24x512xi1>, vector<24x512xf32>
    %c0_20 = arith.constant 0 : index
    %c0_21 = arith.constant 0 : index
    %c0_22 = arith.constant 0 : index
    %31 = vector.load %arg6[%c0_20, %c0_21, %c0_22] : memref<3x24x72xf32, #tpu.memory_space<vmem>>, vector<1x24x72xf32>
    %32 = vector.shape_cast %31 : vector<1x24x72xf32> to vector<24x72xf32>
    %c0_23 = arith.constant 0 : index
    %c0_24 = arith.constant 0 : index
    %c0_25 = arith.constant 0 : index
    %33 = vector.load %arg7[%c0_23, %c0_24, %c0_25] : memref<3x24x1xf32, #tpu.memory_space<vmem>>, vector<1x24x1xf32>
    %34 = vector.shape_cast %33 : vector<1x24x1xf32> to vector<24x1xf32>
    %c1_i32_26 = arith.constant 1 : i32
    %35 = tpu.dynamic_rotate %30 by %c1_i32_26 dim 1 : vector<24x512xf32>, i32 -> vector<24x512xf32>
    %36 = vector.broadcast %0 : vector<1x512xf32> to vector<24x512xf32>
    %37 = arith.mulf %35, %36 : vector<24x512xf32>
    %c511_i32_27 = arith.constant 511 : i32
    %38 = tpu.dynamic_rotate %30 by %c511_i32_27 dim 1 : vector<24x512xf32>, i32 -> vector<24x512xf32>
    %39 = vector.broadcast %1 : vector<1x512xf32> to vector<24x512xf32>
    %40 = arith.mulf %38, %39 : vector<24x512xf32>
    %41 = tpu.concatenate %37, %30, %40 in 0 : vector<24x512xf32>, vector<24x512xf32>, vector<24x512xf32> -> vector<72x512xf32>
    %cst_28 = arith.constant dense<0.000000e+00> : vector<24x512xf32>
    %42 = tpu.matmul %32, %41, %cst_28 {dimension_numbers = #tpu.dot_dimension_numbers<[1], [0], [0], [1], [0, 0, 1, 1], [], []>} : vector<24x72xf32>, vector<72x512xf32>, vector<24x512xf32> -> vector<24x512xf32>
    %43 = vector.broadcast %34 : vector<24x1xf32> to vector<24x512xf32>
    %44 = arith.addf %42, %43 : vector<24x512xf32>
    %45 = arith.addf %44, %8 : vector<24x512xf32>
    %cst_29 = arith.constant 0.000000e+00 : f32
    %46 = vector.broadcast %cst_29 : f32 to vector<24x512xf32>
    %47 = arith.cmpf ogt, %45, %46 : vector<24x512xf32>
    %cst_30 = arith.constant 0.000000e+00 : f32
    %48 = vector.broadcast %cst_30 : f32 to vector<24x512xf32>
    %49 = arith.minimumf %45, %48 : vector<24x512xf32>
    %50 = math.exp %49 : vector<24x512xf32>
    %cst_31 = arith.constant 1.000000e+00 : f32
    %51 = vector.broadcast %cst_31 : f32 to vector<24x512xf32>
    %52 = arith.subf %50, %51 : vector<24x512xf32>
    %53 = arith.select %47, %45, %52 : vector<24x512xi1>, vector<24x512xf32>
    %c1 = arith.constant 1 : index
    %c0_32 = arith.constant 0 : index
    %c0_33 = arith.constant 0 : index
    %54 = vector.load %arg4[%c1, %c0_32, %c0_33] : memref<3x24x72xf32, #tpu.memory_space<vmem>>, vector<1x24x72xf32>
    %55 = vector.shape_cast %54 : vector<1x24x72xf32> to vector<24x72xf32>
    %c1_34 = arith.constant 1 : index
    %c0_35 = arith.constant 0 : index
    %c0_36 = arith.constant 0 : index
    %56 = vector.load %arg5[%c1_34, %c0_35, %c0_36] : memref<3x24x1xf32, #tpu.memory_space<vmem>>, vector<1x24x1xf32>
    %57 = vector.shape_cast %56 : vector<1x24x1xf32> to vector<24x1xf32>
    %c1_i32_37 = arith.constant 1 : i32
    %58 = tpu.dynamic_rotate %53 by %c1_i32_37 dim 1 : vector<24x512xf32>, i32 -> vector<24x512xf32>
    %59 = vector.broadcast %0 : vector<1x512xf32> to vector<24x512xf32>
    %60 = arith.mulf %58, %59 : vector<24x512xf32>
    %c511_i32_38 = arith.constant 511 : i32
    %61 = tpu.dynamic_rotate %53 by %c511_i32_38 dim 1 : vector<24x512xf32>, i32 -> vector<24x512xf32>
    %62 = vector.broadcast %1 : vector<1x512xf32> to vector<24x512xf32>
    %63 = arith.mulf %61, %62 : vector<24x512xf32>
    %64 = tpu.concatenate %60, %53, %63 in 0 : vector<24x512xf32>, vector<24x512xf32>, vector<24x512xf32> -> vector<72x512xf32>
    %cst_39 = arith.constant dense<0.000000e+00> : vector<24x512xf32>
    %65 = tpu.matmul %55, %64, %cst_39 {dimension_numbers = #tpu.dot_dimension_numbers<[1], [0], [0], [1], [0, 0, 1, 1], [], []>} : vector<24x72xf32>, vector<72x512xf32>, vector<24x512xf32> -> vector<24x512xf32>
    %66 = vector.broadcast %57 : vector<24x1xf32> to vector<24x512xf32>
    %67 = arith.addf %65, %66 : vector<24x512xf32>
    %cst_40 = arith.constant 0.000000e+00 : f32
    %68 = vector.broadcast %cst_40 : f32 to vector<24x512xf32>
    %69 = arith.cmpf ogt, %67, %68 : vector<24x512xf32>
    %cst_41 = arith.constant 0.000000e+00 : f32
    %70 = vector.broadcast %cst_41 : f32 to vector<24x512xf32>
    %71 = arith.minimumf %67, %70 : vector<24x512xf32>
    %72 = math.exp %71 : vector<24x512xf32>
    %cst_42 = arith.constant 1.000000e+00 : f32
    %73 = vector.broadcast %cst_42 : f32 to vector<24x512xf32>
    %74 = arith.subf %72, %73 : vector<24x512xf32>
    %75 = arith.select %69, %67, %74 : vector<24x512xi1>, vector<24x512xf32>
    %c1_43 = arith.constant 1 : index
    %c0_44 = arith.constant 0 : index
    %c0_45 = arith.constant 0 : index
    %76 = vector.load %arg6[%c1_43, %c0_44, %c0_45] : memref<3x24x72xf32, #tpu.memory_space<vmem>>, vector<1x24x72xf32>
    %77 = vector.shape_cast %76 : vector<1x24x72xf32> to vector<24x72xf32>
    %c1_46 = arith.constant 1 : index
    %c0_47 = arith.constant 0 : index
    %c0_48 = arith.constant 0 : index
    %78 = vector.load %arg7[%c1_46, %c0_47, %c0_48] : memref<3x24x1xf32, #tpu.memory_space<vmem>>, vector<1x24x1xf32>
    %79 = vector.shape_cast %78 : vector<1x24x1xf32> to vector<24x1xf32>
    %c1_i32_49 = arith.constant 1 : i32
    %80 = tpu.dynamic_rotate %75 by %c1_i32_49 dim 1 : vector<24x512xf32>, i32 -> vector<24x512xf32>
    %81 = vector.broadcast %0 : vector<1x512xf32> to vector<24x512xf32>
    %82 = arith.mulf %80, %81 : vector<24x512xf32>
    %c511_i32_50 = arith.constant 511 : i32
    %83 = tpu.dynamic_rotate %75 by %c511_i32_50 dim 1 : vector<24x512xf32>, i32 -> vector<24x512xf32>
    %84 = vector.broadcast %1 : vector<1x512xf32> to vector<24x512xf32>
    %85 = arith.mulf %83, %84 : vector<24x512xf32>
    %86 = tpu.concatenate %82, %75, %85 in 0 : vector<24x512xf32>, vector<24x512xf32>, vector<24x512xf32> -> vector<72x512xf32>
    %cst_51 = arith.constant dense<0.000000e+00> : vector<24x512xf32>
    %87 = tpu.matmul %77, %86, %cst_51 {dimension_numbers = #tpu.dot_dimension_numbers<[1], [0], [0], [1], [0, 0, 1, 1], [], []>} : vector<24x72xf32>, vector<72x512xf32>, vector<24x512xf32> -> vector<24x512xf32>
    %88 = vector.broadcast %79 : vector<24x1xf32> to vector<24x512xf32>
    %89 = arith.addf %87, %88 : vector<24x512xf32>
    %90 = arith.addf %89, %53 : vector<24x512xf32>
    %cst_52 = arith.constant 0.000000e+00 : f32
    %91 = vector.broadcast %cst_52 : f32 to vector<24x512xf32>
    %92 = arith.cmpf ogt, %90, %91 : vector<24x512xf32>
    %cst_53 = arith.constant 0.000000e+00 : f32
    %93 = vector.broadcast %cst_53 : f32 to vector<24x512xf32>
    %94 = arith.minimumf %90, %93 : vector<24x512xf32>
    %95 = math.exp %94 : vector<24x512xf32>
    %cst_54 = arith.constant 1.000000e+00 : f32
    %96 = vector.broadcast %cst_54 : f32 to vector<24x512xf32>
    %97 = arith.subf %95, %96 : vector<24x512xf32>
    %98 = arith.select %92, %90, %97 : vector<24x512xi1>, vector<24x512xf32>
    %c2 = arith.constant 2 : index
    %c0_55 = arith.constant 0 : index
    %c0_56 = arith.constant 0 : index
    %99 = vector.load %arg4[%c2, %c0_55, %c0_56] : memref<3x24x72xf32, #tpu.memory_space<vmem>>, vector<1x24x72xf32>
    %100 = vector.shape_cast %99 : vector<1x24x72xf32> to vector<24x72xf32>
    %c2_57 = arith.constant 2 : index
    %c0_58 = arith.constant 0 : index
    %c0_59 = arith.constant 0 : index
    %101 = vector.load %arg5[%c2_57, %c0_58, %c0_59] : memref<3x24x1xf32, #tpu.memory_space<vmem>>, vector<1x24x1xf32>
    %102 = vector.shape_cast %101 : vector<1x24x1xf32> to vector<24x1xf32>
    %c1_i32_60 = arith.constant 1 : i32
    %103 = tpu.dynamic_rotate %98 by %c1_i32_60 dim 1 : vector<24x512xf32>, i32 -> vector<24x512xf32>
    %104 = vector.broadcast %0 : vector<1x512xf32> to vector<24x512xf32>
    %105 = arith.mulf %103, %104 : vector<24x512xf32>
    %c511_i32_61 = arith.constant 511 : i32
    %106 = tpu.dynamic_rotate %98 by %c511_i32_61 dim 1 : vector<24x512xf32>, i32 -> vector<24x512xf32>
    %107 = vector.broadcast %1 : vector<1x512xf32> to vector<24x512xf32>
    %108 = arith.mulf %106, %107 : vector<24x512xf32>
    %109 = tpu.concatenate %105, %98, %108 in 0 : vector<24x512xf32>, vector<24x512xf32>, vector<24x512xf32> -> vector<72x512xf32>
    %cst_62 = arith.constant dense<0.000000e+00> : vector<24x512xf32>
    %110 = tpu.matmul %100, %109, %cst_62 {dimension_numbers = #tpu.dot_dimension_numbers<[1], [0], [0], [1], [0, 0, 1, 1], [], []>} : vector<24x72xf32>, vector<72x512xf32>, vector<24x512xf32> -> vector<24x512xf32>
    %111 = vector.broadcast %102 : vector<24x1xf32> to vector<24x512xf32>
    %112 = arith.addf %110, %111 : vector<24x512xf32>
    %cst_63 = arith.constant 0.000000e+00 : f32
    %113 = vector.broadcast %cst_63 : f32 to vector<24x512xf32>
    %114 = arith.cmpf ogt, %112, %113 : vector<24x512xf32>
    %cst_64 = arith.constant 0.000000e+00 : f32
    %115 = vector.broadcast %cst_64 : f32 to vector<24x512xf32>
    %116 = arith.minimumf %112, %115 : vector<24x512xf32>
    %117 = math.exp %116 : vector<24x512xf32>
    %cst_65 = arith.constant 1.000000e+00 : f32
    %118 = vector.broadcast %cst_65 : f32 to vector<24x512xf32>
    %119 = arith.subf %117, %118 : vector<24x512xf32>
    %120 = arith.select %114, %112, %119 : vector<24x512xi1>, vector<24x512xf32>
    %c2_66 = arith.constant 2 : index
    %c0_67 = arith.constant 0 : index
    %c0_68 = arith.constant 0 : index
    %121 = vector.load %arg6[%c2_66, %c0_67, %c0_68] : memref<3x24x72xf32, #tpu.memory_space<vmem>>, vector<1x24x72xf32>
    %122 = vector.shape_cast %121 : vector<1x24x72xf32> to vector<24x72xf32>
    %c2_69 = arith.constant 2 : index
    %c0_70 = arith.constant 0 : index
    %c0_71 = arith.constant 0 : index
    %123 = vector.load %arg7[%c2_69, %c0_70, %c0_71] : memref<3x24x1xf32, #tpu.memory_space<vmem>>, vector<1x24x1xf32>
    %124 = vector.shape_cast %123 : vector<1x24x1xf32> to vector<24x1xf32>
    %c1_i32_72 = arith.constant 1 : i32
    %125 = tpu.dynamic_rotate %120 by %c1_i32_72 dim 1 : vector<24x512xf32>, i32 -> vector<24x512xf32>
    %126 = vector.broadcast %0 : vector<1x512xf32> to vector<24x512xf32>
    %127 = arith.mulf %125, %126 : vector<24x512xf32>
    %c511_i32_73 = arith.constant 511 : i32
    %128 = tpu.dynamic_rotate %120 by %c511_i32_73 dim 1 : vector<24x512xf32>, i32 -> vector<24x512xf32>
    %129 = vector.broadcast %1 : vector<1x512xf32> to vector<24x512xf32>
    %130 = arith.mulf %128, %129 : vector<24x512xf32>
    %131 = tpu.concatenate %127, %120, %130 in 0 : vector<24x512xf32>, vector<24x512xf32>, vector<24x512xf32> -> vector<72x512xf32>
    %cst_74 = arith.constant dense<0.000000e+00> : vector<24x512xf32>
    %132 = tpu.matmul %122, %131, %cst_74 {dimension_numbers = #tpu.dot_dimension_numbers<[1], [0], [0], [1], [0, 0, 1, 1], [], []>} : vector<24x72xf32>, vector<72x512xf32>, vector<24x512xf32> -> vector<24x512xf32>
    %133 = vector.broadcast %124 : vector<24x1xf32> to vector<24x512xf32>
    %134 = arith.addf %132, %133 : vector<24x512xf32>
    %135 = arith.addf %134, %98 : vector<24x512xf32>
    %cst_75 = arith.constant 0.000000e+00 : f32
    %136 = vector.broadcast %cst_75 : f32 to vector<24x512xf32>
    %137 = arith.cmpf ogt, %135, %136 : vector<24x512xf32>
    %cst_76 = arith.constant 0.000000e+00 : f32
    %138 = vector.broadcast %cst_76 : f32 to vector<24x512xf32>
    %139 = arith.minimumf %135, %138 : vector<24x512xf32>
    %140 = math.exp %139 : vector<24x512xf32>
    %cst_77 = arith.constant 1.000000e+00 : f32
    %141 = vector.broadcast %cst_77 : f32 to vector<24x512xf32>
    %142 = arith.subf %140, %141 : vector<24x512xf32>
    %143 = arith.select %137, %135, %142 : vector<24x512xi1>, vector<24x512xf32>
    %c511_i32_78 = arith.constant 511 : i32
    %144 = tpu.dynamic_rotate %143 by %c511_i32_78 dim 1 : vector<24x512xf32>, i32 -> vector<24x512xf32>
    %145 = arith.maximumf %143, %144 : vector<24x512xf32>
    %c0_79 = arith.constant 0 : index
    %c0_80 = arith.constant 0 : index
    %c0_81 = arith.constant 0 : index
    %146 = vector.load %arg10[%c0_79, %c0_80, %c0_81] : memref<1x24x512xf32, #tpu.memory_space<vmem>>, vector<1x24x512xf32>
    %147 = vector.shape_cast %146 : vector<1x24x512xf32> to vector<24x512xf32>
    %148 = vector.shape_cast %145 : vector<24x512xf32> to vector<1x24x512xf32>
    tpu.vector_store %arg10[%c0_79, %c0_80, %c0_81], %148 {strides = array<i32>} : memref<1x24x512xf32, #tpu.memory_space<vmem>>, vector<1x24x512xf32>,
    return
  }
  func.func @transform_0(%arg0: i32) -> (i32, i32, i32) {
    %c0_i32 = arith.constant 0 : i32
    %c0_i32_0 = arith.constant 0 : i32
    %c0_i32_1 = arith.constant 0 : i32
    return %arg0, %c0_i32, %c0_i32_0 : i32, i32, i32
  }
  func.func @transform_1(%arg0: i32) -> (i32, i32) {
    %c0_i32 = arith.constant 0 : i32
    %c0_i32_0 = arith.constant 0 : i32
    %c0_i32_1 = arith.constant 0 : i32
    return %c0_i32, %c0_i32_0 : i32, i32
  }
  func.func @transform_2(%arg0: i32) -> (i32, i32) {
    %c0_i32 = arith.constant 0 : i32
    %c0_i32_0 = arith.constant 0 : i32
    %c0_i32_1 = arith.constant 0 : i32
    return %c0_i32, %c0_i32_0 : i32, i32
  }
  func.func @transform_3(%arg0: i32) -> (i32, i32, i32) {
    %c0_i32 = arith.constant 0 : i32
    %c0_i32_0 = arith.constant 0 : i32
    %c0_i32_1 = arith.constant 0 : i32
    %c0_i32_2 = arith.constant 0 : i32
    return %c0_i32, %c0_i32_0, %c0_i32_1 : i32, i32, i32
  }
  func.func @transform_4(%arg0: i32) -> (i32, i32, i32) {
    %c0_i32 = arith.constant 0 : i32
    %c0_i32_0 = arith.constant 0 : i32
    %c0_i32_1 = arith.constant 0 : i32
    %c0_i32_2 = arith.constant 0 : i32
    return %c0_i32, %c0_i32_0, %c0_i32_1 : i32, i32, i32
  }
  func.func @transform_5(%arg0: i32) -> (i32, i32, i32) {
    %c0_i32 = arith.constant 0 : i32
    %c0_i32_0 = arith.constant 0 : i32
    %c0_i32_1 = arith.constant 0 : i32
    %c0_i32_2 = arith.constant 0 : i32
    return %c0_i32, %c0_i32_0, %c0_i32_1 : i32, i32, i32
  }
  func.func @transform_6(%arg0: i32) -> (i32, i32, i32) {
    %c0_i32 = arith.constant 0 : i32
    %c0_i32_0 = arith.constant 0 : i32
    %c0_i32_1 = arith.constant 0 : i32
    %c0_i32_2 = arith.constant 0 : i32
    return %c0_i32, %c0_i32_0, %c0_i32_1 : i32, i32, i32
  }
  func.func @transform_7(%arg0: i32) -> (i32, i32) {
    %c0_i32 = arith.constant 0 : i32
    %c0_i32_0 = arith.constant 0 : i32
    %c0_i32_1 = arith.constant 0 : i32
    return %c0_i32, %c0_i32_0 : i32, i32
  }
  func.func @transform_8(%arg0: i32) -> (i32, i32) {
    %c0_i32 = arith.constant 0 : i32
    %c0_i32_0 = arith.constant 0 : i32
    %c0_i32_1 = arith.constant 0 : i32
    return %c0_i32, %c0_i32_0 : i32, i32
  }
  func.func @transform_9(%arg0: i32) -> (i32, i32, i32) {
    %c0_i32 = arith.constant 0 : i32
    %c0_i32_0 = arith.constant 0 : i32
    %c0_i32_1 = arith.constant 0 : i32
    return %arg0, %c0_i32, %c0_i32_0 : i32, i32, i32
  }
}

</mosaic_0001>

<bundles_post_ra>
// kernel: tpu_custom_call.1
= control target key start
LH: loop header
LB: loop body
LE: loop exit
PB: predicated region body
PF: predicated region fallthrough
CT: control target
= control target key end

     0   :  { %vm70_vm0 = vcmask 1044480   ;;  %vm60_vm1 = vcmask 39936   ;;  %v3111_v5 = vmov 0.0   ;;  %s4857_s0 = inlined_call_operand.vmem [shape: f32[1,5,512], index: 0, kind: input, shape index: {}]   ;;  %s4858_s1 = inlined_call_operand.vmem [shape: f32[24,5], index: 1, kind: input, shape index: {}]   ;;  %s4859_s2 = inlined_call_operand.vmem [shape: f32[24,1], index: 2, kind: input, shape index: {}]   ;;  %s4860_s3 = inlined_call_operand.vmem [shape: f32[3,24,72], index: 3, kind: input, shape index: {}]   ;;  %s4861_s4 = inlined_call_operand.vmem [shape: f32[3,24,1], index: 4, kind: input, shape index: {}]   ;;  %s4862_s5 = inlined_call_operand.vmem [shape: f32[3,24,72], index: 5, kind: input, shape index: {}]   ;;  %s4863_s6 = inlined_call_operand.vmem [shape: f32[3,24,1], index: 6, kind: input, shape index: {}]   ;;  %s4864_s7 = inlined_call_operand.vmem [shape: f32[1,512], index: 7, kind: input, shape index: {}]   ;;  %s4865_s8 = inlined_call_operand.vmem [shape: f32[1,512], index: 8, kind: input, shape index: {}]   ;;  %s4866_s9 = inlined_call_operand.hbm [shape: f32[1,24,512], index: 9, kind: output, shape index: {}]  }
   0x1   :  { %v39_v0 = vld [vmem:[%s4857_s0 + $0x8] sm:$0x1f]  ;;  %v41_v1 = vld [vmem:[%s4857_s0 + $0x18] sm:$0x1f]  ;;  %v38_v2 = vld [vmem:[%s4857_s0] sm:$0x1f]  ;;  %147 = vmatprep.mubr.f32.mxu0 %v3111_v5  ;;  %230 = vmatprep.mubr.f32.mxu1 %v3111_v5 }
   0x2   :  { %2600 = vmatprep.subr.msk.mxu0 %vm70_vm0, %v39_v0  ;;  %2605 = vmatprep.subr.msk.mxu1 %vm70_vm0, %v41_v1  ;;  %v40_v3 = vld [vmem:[%s4857_s0 + $0x10] sm:$0x1f]  ;;  %v35_v4 = vld [vmem:[%s4858_s1] sm:$0xff] }
   0x3   :  { %2601 = vmatpush1.msk.msra.mxu0 %vm70_vm0, %v38_v2  ;;  %2606 = vmatpush1.msk.msra.mxu1 %vm70_vm0, %v40_v3 }
   0x4   :  { %14 = vsyncpa [#allocation3], 0  ;;  %2602 = vmatmul.mubr.msk.f32.vlgmr.msra.gmra.mrb[0].mxu0 %vm60_vm1, %v35_v4  ;;  %2607 = vmatmul.mubr.msk.f32.vlgmr.msra.gmra.mrb[0].mxu1 %vm60_vm1, %v35_v4  ;;  %v42_v6 = vld [vmem:[%s4859_s2] sm:$0xff]  ;;  %v44_v7 = vld [vmem:[%s4859_s2 + $0x10] sm:$0xff]  ;;  %v3112_v9 = vmov 0   ;;  %v279_v43 = vlaneseq  ;;  %vm412_vm4 = vcmask 588800  }
   0x5   :  { %153 = vmatprep.mubr.f32.mxu0 %v3111_v5  ;;  %236 = vmatprep.mubr.f32.mxu1 %v3111_v5  ;;  %v36_v8 = vld [vmem:[%s4858_s1 + $0x8] sm:$0xff]  ;;  %v37_v11 = vld [vmem:[%s4858_s1 + $0x10] sm:$0xff]  ;;  %s3114_s1 = smov 127   ;;  %v252_v39 = vld [vmem:[%s4861_s4] sm:$0xff] }
   0x6   :  { %2941 = vset.pattern.permute.xlu0 %v3112_v9  ;;  %2942 = vset.pattern.permute.xlu1 %v3112_v9  ;;  %v43_v10 = vld [vmem:[%s4859_s2 + $0x8] sm:$0xff]  ;;  %s3113_s2 = smov 1   ;;  %v254_v41 = vld [vmem:[%s4861_s4 + $0x10] sm:$0xff]  ;;  %v3293_v46 = vshrl.u32 %v279_v43, 7  ;;  %v3297_v49 = vand.u32 127, %v279_v43 }
   0x7   :  { %47 = vperm.xlu0 %2941, %v42_v6   ;;  %57 = vperm.xlu1 %2942, %v44_v7   ;;  %v253_v40 = vld [vmem:[%s4861_s4 + $0x8] sm:$0xff]  ;;  %v33_v51 = vld [vmem:[%s4864_s7] sm:$0xf] }
   0x8   :  { %2603 = vmatmul.mubr.msk.f32.gmra.mrb[2].mxu0 %vm60_vm1, %v36_v8  ;;  %2608 = vmatmul.mubr.msk.f32.gmra.mrb[2].mxu1 %vm60_vm1, %v36_v8  ;;  %v301_v50 = vsub.s32 1, %v3293_v46  ;;  %vm281_vm2 = vcmp.lt.s32.totalorder %v3297_v49, 1  ;;  %v297_v54 = vsub.s32 0, %v3293_v46  ;;  %v309_v56 = vsub.s32 3, %v3293_v46 }
   0x9   :  { %159 = vmatprep.mubr.f32.mxu0 %v3111_v5  ;;  %242 = vmatprep.mubr.f32.mxu1 %v3111_v5  ;;  %v305_v57 = vsub.s32 2, %v3293_v46  ;;  %vm351_vm3 = vcmp.lt.s32.totalorder %v3297_v49, 127 }
   0xa   :  { %v3307_v55 = vrot.slane %v33_v51, %v301_v50  ;;  %v3315_v62 = vrot.slane %v33_v51, %v297_v54  ;;  %v3323_v2 = vrot.slane %v33_v51, %v309_v56 }
   0xb   :  { %52 = vperm.xlu0 %2941, %v43_v10   ;;  %v3325_v3 = vrot.slane %v33_v51, %v305_v57 }
   0xc   :  { %2604 = vmatmul.mubr.msk.f32.gmra.mrb[4].mxu0 %vm60_vm1, %v37_v11  ;;  %2609 = vmatmul.mubr.msk.f32.gmra.mrb[4].mxu1 %vm60_vm1, %v37_v11 }
   0xd   :  { %486 = vmatprep.mubr.f32.mxu0 %v3111_v5  ;;  %569 = vmatprep.mubr.f32.mxu1 %v3111_v5 }
  0x86   :  { %v48_v12 = vpop.permute.xlu0 %47  ;;  %v58_v34 = vpop.permute.xlu1 %57 }
  0x8a   :  { %v53_v18 = vpop.permute.xlu0 %52 }
  0xd7   :  { %v149_v13 = vpop.f32.mrb[0].mxu0  ;;  %v232_v14 = vpop.f32.mrb[0].mxu1 }
  0xd8   :  { %v3212_v15 = vadd.f32 %v149_v13, %v48_v12  ;;  %v151_v16 = vpop.f32.mrb[1].mxu0  ;;  %v234_v17 = vpop.f32.mrb[1].mxu1  ;;  %v3216_v21 = vadd.f32 %v232_v14, %v48_v12 }
  0xd9   :  { %v3230_v30 = vadd.f32 %v151_v16, %v48_v12  ;;  %v3236_v31 = vadd.f32 %v234_v17, %v48_v12 }
  0xda   :  { %255 = vrot.lane.b32.xlu1 %v3212_v15, %s3113_s2 }
  0xdb   :  { %v155_v19 = vpop.f32.mrb[2].mxu0  ;;  %v238_v20 = vpop.f32.mrb[2].mxu1 }
  0xdc   :  { %v3218_v22 = vadd.f32 %v155_v19, %v53_v18  ;;  %v157_v23 = vpop.f32.mrb[3].mxu0  ;;  %v240_v24 = vpop.f32.mrb[3].mxu1  ;;  %v3224_v27 = vadd.f32 %v238_v20, %v53_v18 }
  0xdd   :  { %v3238_v32 = vadd.f32 %v157_v23, %v53_v18  ;;  %v3244_v33 = vadd.f32 %v240_v24, %v53_v18 }
  0xde   :  { %257 = vrot.lane.b32.xlu0 %v3218_v22, %s3113_s2  ;;  %267 = vrot.lane.b32.xlu1 %v3216_v21, %s3113_s2 }
  0xdf   :  { %v161_v25 = vpop.f32.mrb[4].mxu0  ;;  %v244_v26 = vpop.f32.mrb[4].mxu1 }
  0xe0   :  { %v163_v28 = vpop.f32.mrb[5].mxu0  ;;  %v246_v29 = vpop.f32.mrb[5].mxu1  ;;  %v3250_v35 = vadd.f32 %v161_v25, %v58_v34  ;;  %v3256_v36 = vadd.f32 %v244_v26, %v58_v34 }
  0xe1   :  { %v3258_v37 = vadd.f32 %v163_v28, %v58_v34  ;;  %v3264_v38 = vadd.f32 %v246_v29, %v58_v34 }
  0xe2   :  { %269 = vrot.lane.b32.xlu0 %v3224_v27, %s3113_s2  ;;  %327 = vrot.lane.b32.xlu1 %v3212_v15, %s3114_s1 }
  0xe6   :  { %329 = vrot.lane.b32.xlu0 %v3218_v22, %s3114_s1  ;;  %261 = vrot.lane.b32.xlu1 %v3230_v30, %s3113_s2 }
  0xea   :  { %263 = vrot.lane.b32.xlu0 %v3238_v32, %s3113_s2  ;;  %273 = vrot.lane.b32.xlu1 %v3236_v31, %s3113_s2 }
  0xee   :  { %275 = vrot.lane.b32.xlu0 %v3244_v33, %s3113_s2  ;;  %333 = vrot.lane.b32.xlu1 %v3230_v30, %s3114_s1 }
  0xf2   :  { %335 = vrot.lane.b32.xlu0 %v3238_v32, %s3114_s1  ;;  %259 = vrot.lane.b32.xlu1 %v3250_v35, %s3113_s2 }
  0xf6   :  { %265 = vrot.lane.b32.xlu0 %v3258_v37, %s3113_s2  ;;  %271 = vrot.lane.b32.xlu1 %v3256_v36, %s3113_s2 }
  0xfa   :  { %277 = vrot.lane.b32.xlu0 %v3264_v38, %s3113_s2  ;;  %339 = vrot.lane.b32.xlu1 %v3216_v21, %s3114_s1 }
  0xfe   :  { %341 = vrot.lane.b32.xlu0 %v3224_v27, %s3114_s1  ;;  %345 = vrot.lane.b32.xlu1 %v3236_v31, %s3114_s1 }
 0x102   :  { %347 = vrot.lane.b32.xlu0 %v3244_v33, %s3114_s1  ;;  %331 = vrot.lane.b32.xlu1 %v3250_v35, %s3114_s1 }
 0x106   :  { %337 = vrot.lane.b32.xlu0 %v3258_v37, %s3114_s1  ;;  %343 = vrot.lane.b32.xlu1 %v3256_v36, %s3114_s1 }
 0x10a   :  { %349 = vrot.lane.b32.xlu0 %v3264_v38, %s3114_s1  ;;  %399 = vperm.xlu1 %2942, %v252_v39  }
 0x10e   :  { %404 = vperm.xlu0 %2941, %v253_v40   ;;  %409 = vperm.xlu1 %2942, %v254_v41   ;;  %v34_v41 = vld [vmem:[%s4865_s8] sm:$0xf] }
 0x14c   :  { %v256_v42 = vpop.permute.xlu1 %255 }
 0x150   :  { %v258_v44 = vpop.permute.xlu0 %257  ;;  %v268_v45 = vpop.permute.xlu1 %267 }
 0x154   :  { %v270_v47 = vpop.permute.xlu0 %269  ;;  %v3295_v48 = vpop.permute.xlu1 %327 }
 0x158   :  { %v3303_v52 = vpop.permute.xlu0 %329  ;;  %v262_v53 = vpop.permute.xlu1 %261 }
 0x159   :  { %v288_v58 = vsel %vm281_vm2, %v256_v42, %v262_v53  ;;  %v285_v7 = vsel %vm281_vm2, %v262_v53, %v268_v45 }
 0x15a   :  { %v316_v63 = vmul.f32 %v3307_v55, %v288_v58  ;;  %v317_v19 = vmul.f32 %v3325_v3, %v285_v7 }
 0x15c   :  { %v264_v59 = vpop.permute.xlu0 %263  ;;  %v274_v60 = vpop.permute.xlu1 %273 }
 0x15d   :  { %v289_v61 = vsel %vm281_vm2, %v258_v44, %v264_v59  ;;  %v286_v0 = vsel %vm281_vm2, %v264_v59, %v270_v47  ;;  %v282_v4 = vsel %vm281_vm2, %v268_v45, %v274_v60  ;;  %v291_v6 = vsel %vm281_vm2, %v274_v60, %v256_v42 }
 0x15e   :  { %v320_v1 = vmul.f32 %v3307_v55, %v289_v61  ;;  %v321_v11 = vmul.f32 %v3325_v3, %v286_v0  ;;  %v315_v14 = vmul.f32 %v3315_v62, %v291_v6  ;;  %v318_v16 = vmul.f32 %v3323_v2, %v282_v4 }
 0x15f   :  { %v3360_v59 = vrot.slane %v34_v41, %v301_v50  ;;  %v3362_v60 = vrot.slane %v34_v41, %v297_v54  ;;  %v3369_v6 = vrot.slane %v34_v41, %v305_v57  ;;  %v2766_v50 = vpack.c.bf16 %v3264_v38, %v3244_v33 }
 0x160   :  { %v276_v8 = vpop.permute.xlu0 %275  ;;  %v334_v9 = vpop.permute.xlu1 %333  ;;  %v2742_v10 = vpack.c.bf16 %v320_v1, %v316_v63  ;;  %v2760_v26 = vpack.c.bf16 %v321_v11, %v317_v19  ;;  %v2750_v63 = vpack.c.bf16 %v3258_v37, %v3238_v32  ;;  %v3382_v11 = vrot.slane %v34_v41, %v309_v56 }
 0x161   :  { %v283_v12 = vsel %vm281_vm2, %v270_v47, %v276_v8  ;;  %v292_v13 = vsel %vm281_vm2, %v276_v8, %v258_v44  ;;  %v358_v57 = vsel %vm351_vm3, %v3295_v48, %v334_v9 }
 0x162   :  { %v319_v17 = vmul.f32 %v3315_v62, %v292_v13  ;;  %v322_v18 = vmul.f32 %v3323_v2, %v283_v12  ;;  %2743 = vmatprep.subr.bf16.mxu0 %v2742_v10  ;;  %v385_v19 = vmul.f32 %v3362_v60, %v358_v57 }
 0x164   :  { %v2744_v20 = vpack.c.bf16 %v319_v17, %v315_v14  ;;  %v336_v23 = vpop.permute.xlu0 %335  ;;  %v260_v24 = vpop.permute.xlu1 %259  ;;  %v2758_v25 = vpack.c.bf16 %v322_v18, %v318_v16 }
 0x165   :  { %v359_v54 = vsel %vm351_vm3, %v3303_v52, %v336_v23 }
 0x166   :  { %2745 = vmatpush1.bf16.msra.mxu0 %v2744_v20  ;;  %2759 = vmatprep.subr.bf16.mxu1 %v2758_v25  ;;  %v389_v46 = vmul.f32 %v3362_v60, %v359_v54 }
 0x167   :  { %2761 = vmatpush1.bf16.msra.mxu1 %v2760_v26 }
 0x168   :  { %v266_v28 = vpop.permute.xlu0 %265  ;;  %v272_v29 = vpop.permute.xlu1 %271 }
 0x169   :  { %v290_v34 = vsel %vm281_vm2, %v260_v24, %v266_v28  ;;  %v287_v40 = vsel %vm281_vm2, %v266_v28, %v272_v29 }
 0x16a   :  { %v324_v39 = vmul.f32 %v3307_v55, %v290_v34  ;;  %v325_v45 = vmul.f32 %v3325_v3, %v287_v40 }
 0x16c   :  { %v278_v42 = vpop.permute.xlu0 %277  ;;  %v340_v43 = vpop.permute.xlu1 %339  ;;  %v2746_v44 = vpack.c.bf16 %v3230_v30, %v324_v39  ;;  %v2764_v8 = vpack.c.bf16 %v3216_v21, %v325_v45 }
 0x16d   :  { %v284_v47 = vsel %vm281_vm2, %v272_v29, %v278_v42  ;;  %v293_v51 = vsel %vm281_vm2, %v278_v42, %v260_v24  ;;  %v355_v61 = vsel %vm351_vm3, %v334_v9, %v340_v43  ;;  %v2752_v9 = vpack.c.bf16 %v3250_v35, %v3218_v22 }
 0x16e   :  { %v323_v53 = vmul.f32 %v3315_v62, %v293_v51  ;;  %v326_v58 = vmul.f32 %v3323_v2, %v284_v47  ;;  %2747 = vmatprep.subr.bf16.mxu0 %v2746_v44  ;;  %v386_v12 = vmul.f32 %v3360_v59, %v355_v61  ;;  %v2756_v29 = vpack.c.bf16 %v389_v46, %v385_v19  ;;  %v249_v47 = vld [vmem:[%s4860_s3] sm:$0xff] }
 0x170   :  { %v2748_v0 = vpack.c.bf16 %v3212_v15, %v323_v53  ;;  %v342_v1 = vpop.permute.xlu0 %341  ;;  %v346_v4 = vpop.permute.xlu1 %345  ;;  %v2762_v7 = vpack.c.bf16 %v3236_v31, %v326_v58 }
 0x171   :  { %v356_v10 = vsel %vm351_vm3, %v336_v23, %v342_v1  ;;  %v352_v14 = vsel %vm351_vm3, %v340_v43, %v346_v4  ;;  %v361_v16 = vsel %vm351_vm3, %v346_v4, %v3295_v48  ;;  %v2768_v23 = vpack.c.bf16 %v3256_v36, %v3224_v27 }
 0x172   :  { %v390_v13 = vmul.f32 %v3360_v59, %v356_v10  ;;  %2749 = vmatpush1.bf16.msra.mxu0 %v2748_v0  ;;  %2763 = vmatprep.subr.bf16.mxu1 %v2762_v7  ;;  %v387_v24 = vmul.f32 %v3369_v6, %v352_v14  ;;  %v388_v25 = vmul.f32 %v3382_v11, %v361_v16  ;;  %v251_v0 = vld [vmem:[%s4860_s3 + $0x10] sm:$0xff] }
 0x173   :  { %2751 = vmatprep.subr.bf16.mxu0 %v2750_v63  ;;  %2765 = vmatpush1.bf16.msra.mxu1 %v2764_v8  ;;  %v250_v63 = vld [vmem:[%s4860_s3 + $0x8] sm:$0xff] }
 0x174   :  { %v348_v56 = vpop.permute.xlu0 %347  ;;  %v332_v17 = vpop.permute.xlu1 %331  ;;  %2767 = vmatprep.subr.bf16.mxu1 %v2766_v50  ;;  %v2754_v18 = vpack.c.bf16 %v390_v13, %v386_v12 }
 0x175   :  { %v353_v20 = vsel %vm351_vm3, %v342_v1, %v348_v56  ;;  %v362_v48 = vsel %vm351_vm3, %v348_v56, %v3303_v52 }
 0x176   :  { %v391_v26 = vmul.f32 %v3369_v6, %v353_v20  ;;  %v392_v28 = vmul.f32 %v3382_v11, %v362_v48  ;;  %2753 = vmatpush1.bf16.msra.mxu0 %v2752_v9 }
 0x177   :  { %2755 = vmatprep.subr.bf16.mxu0 %v2754_v18  ;;  %2769 = vmatpush1.bf16.msra.mxu1 %v2768_v23 }
 0x178   :  { %v2772_v34 = vpack.c.bf16 %v391_v26, %v387_v24  ;;  %v338_v39 = vpop.permute.xlu0 %337  ;;  %v344_v40 = vpop.permute.xlu1 %343  ;;  %v2770_v41 = vpack.c.bf16 %v392_v28, %v388_v25 }
 0x179   :  { %v360_v52 = vsel %vm351_vm3, %v332_v17, %v338_v39  ;;  %v357_v42 = vsel %vm351_vm3, %v338_v39, %v344_v40 }
 0x17a   :  { %2757 = vmatpush1.bf16.msra.mxu0 %v2756_v29  ;;  %2771 = vmatprep.subr.bf16.mxu1 %v2770_v41  ;;  %v394_v43 = vmul.f32 %v3360_v59, %v357_v42  ;;  %v393_v44 = vmul.f32 %v3362_v60, %v360_v52 }
 0x17b   :  { %2773 = vmatpush1.bf16.msra.mxu1 %v2772_v34 }
 0x17c   :  { %v350_v45 = vpop.permute.xlu0 %349  ;;  %438 = vmatprep.subr.mxu0 %v394_v43 }
 0x17d   :  { %v354_v51 = vsel %vm351_vm3, %v344_v40, %v350_v45  ;;  %v363_v53 = vsel %vm351_vm3, %v350_v45, %v332_v17 }
 0x17e   :  { %v395_v58 = vmul.f32 %v3369_v6, %v354_v51  ;;  %439 = vmatpush1.msra.mxu0 %v393_v44  ;;  %v396_v61 = vmul.f32 %v3382_v11, %v363_v53 }
 0x17f   :  { %2610 = vmatmul.mubr.msk.f32.vlgmr.msra.gmra.mrb[6].mxu0 %vm412_vm4, %v249_v47 }
 0x180   :  { %521 = vmatprep.subr.mxu1 %v396_v61  ;;  %492 = vmatprep.mubr.f32.mxu0 %v3111_v5 }
 0x181   :  { %522 = vmatpush1.msra.mxu1 %v395_v58 }
 0x182   :  { %2613 = vmatmul.mubr.msk.f32.vlgmr.msra.gmra.mrb[6].mxu1 %vm412_vm4, %v249_v47 }
 0x183   :  { %2611 = vmatmul.mubr.msk.f32.gmra.mrb[8].mxu0 %vm412_vm4, %v250_v63  ;;  %575 = vmatprep.mubr.f32.mxu1 %v3111_v5 }
 0x184   :  { %498 = vmatprep.mubr.f32.mxu0 %v3111_v5 }
 0x186   :  { %2614 = vmatmul.mubr.msk.f32.gmra.mrb[8].mxu1 %vm412_vm4, %v250_v63 }
 0x187   :  { %2612 = vmatmul.mubr.msk.f32.gmra.mrb[10].mxu0 %vm412_vm4, %v251_v0  ;;  %581 = vmatprep.mubr.f32.mxu1 %v3111_v5 }
 0x188   :  { %850 = vmatprep.mubr.f32.mxu0 %v3111_v5 }
 0x189   :  { %v400_v1 = vpop.permute.xlu1 %399 }
 0x18a   :  { %2615 = vmatmul.mubr.msk.f32.gmra.mrb[10].mxu1 %vm412_vm4, %v251_v0 }
 0x18b   :  { %933 = vmatprep.mubr.f32.mxu1 %v3111_v5 }
 0x18d   :  { %v405_v8 = vpop.permute.xlu0 %404  ;;  %v410_v48 = vpop.permute.xlu1 %409 }
 0x252   :  { %v488_v4 = vpop.f32.mrb[6].mxu0 }
 0x253   :  { %v3442_v7 = vadd.f32 %v488_v4, %v400_v1  ;;  %v490_v50 = vpop.f32.mrb[7].mxu0 }
 0x254   :  { %v3444_v54 = vadd.f32 %v490_v50, %v400_v1 }
 0x255   :  { %v600_v10 = vmin.f32 %v3442_v7, 0.0  ;;  %v571_v57 = vpop.f32.mrb[6].mxu1  ;;  %vm588_vm5 = vcmp.gt.f32.partialorder %v3442_v7, 0.0 }
 0x256   :  { %v601_v12 = vmin.f32 %v3444_v54, 0.0  ;;  %v3448_v13 = vadd.f32 %v571_v57, %v400_v1  ;;  %v494_v14 = vpop.f32.mrb[8].mxu0  ;;  %v573_v16 = vpop.f32.mrb[7].mxu1  ;;  %vm589_vm9 = vcmp.gt.f32.partialorder %v3444_v54, 0.0 }
 0x257   :  { %v612_v46 = vmul.f32 1.442695, %v600_v10  ;;  %v3450_v56 = vadd.f32 %v494_v14, %v405_v8  ;;  %v3452_v17 = vadd.f32 %v573_v16, %v400_v1  ;;  %v496_v9 = vpop.f32.mrb[9].mxu0 }
 0x258   :  { %v614_v18 = vmul.f32 1.442695, %v601_v12  ;;  %v602_v19 = vmin.f32 %v3448_v13, 0.0  ;;  %v3455_v20 = vadd.f32 %v496_v9, %v405_v8  ;;  %vm590_vm6 = vcmp.gt.f32.partialorder %v3448_v13, 0.0 }
 0x259   :  { %2943 = vpow2.f32 %v612_v46  ;;  %v604_v23 = vmin.f32 %v3450_v56, 0.0  ;;  %v603_v24 = vmin.f32 %v3452_v17, 0.0  ;;  %v577_v25 = vpop.f32.mrb[8].mxu1  ;;  %vm592_vm7 = vcmp.gt.f32.partialorder %v3450_v56, 0.0 }
 0x25a   :  { %2945 = vpow2.f32 %v614_v18  ;;  %v616_v26 = vmul.f32 1.442695, %v602_v19  ;;  %v605_v28 = vmin.f32 %v3455_v20, 0.0  ;;  %v3460_v29 = vadd.f32 %v577_v25, %v405_v8  ;;  %v500_v34 = vpop.f32.mrb[10].mxu0  ;;  %v579_v39 = vpop.f32.mrb[9].mxu1 }
 0x25b   :  { %v620_v40 = vmul.f32 1.442695, %v604_v23  ;;  %v618_v41 = vmul.f32 1.442695, %v603_v24  ;;  %v3462_v52 = vadd.f32 %v500_v34, %v410_v48  ;;  %v3464_v42 = vadd.f32 %v579_v39, %v405_v8  ;;  %v502_v43 = vpop.f32.mrb[11].mxu0 }
 0x25c   :  { %2947 = vpow2.f32 %v616_v26  ;;  %v622_v44 = vmul.f32 1.442695, %v605_v28  ;;  %v606_v45 = vmin.f32 %v3460_v29, 0.0  ;;  %v3467_v47 = vadd.f32 %v502_v43, %v410_v48 }
 0x25d   :  { %2949 = vpow2.f32 %v620_v40  ;;  %v608_v51 = vmin.f32 %v3462_v52, 0.0  ;;  %v607_v53 = vmin.f32 %v3464_v42, 0.0  ;;  %v583_v58 = vpop.f32.mrb[10].mxu1  ;;  %vm594_vm8 = vcmp.gt.f32.partialorder %v3460_v29, 0.0 }
 0x25e   :  { %2951 = vpow2.f32 %v618_v41  ;;  %v624_v61 = vmul.f32 1.442695, %v606_v45  ;;  %v609_v63 = vmin.f32 %v3467_v47, 0.0  ;;  %v3472_v0 = vadd.f32 %v583_v58, %v410_v48  ;;  %v585_v1 = vpop.f32.mrb[11].mxu1 }
 0x25f   :  { %2953 = vpow2.f32 %v622_v44  ;;  %v628_v4 = vmul.f32 1.442695, %v608_v51  ;;  %v626_v50 = vmul.f32 1.442695, %v607_v53  ;;  %v3474_v8 = vadd.f32 %v585_v1, %v410_v48 }
 0x260   :  { %2955 = vpow2.f32 %v624_v61  ;;  %v630_v10 = vmul.f32 1.442695, %v609_v63  ;;  %v610_v57 = vmin.f32 %v3472_v0, 0.0  ;;  %vm596_vm10 = vcmp.gt.f32.partialorder %v3462_v52, 0.0 }
 0x261   :  { %2957 = vpow2.f32 %v628_v4  ;;  %v611_v12 = vmin.f32 %v3474_v8, 0.0  ;;  %vm593_vm11 = vcmp.gt.f32.partialorder %v3455_v20, 0.0  ;;  %vm595_vm12 = vcmp.gt.f32.partialorder %v3464_v42, 0.0 }
 0x262   :  { %2959 = vpow2.f32 %v626_v50  ;;  %v632_v14 = vmul.f32 1.442695, %v610_v57  ;;  %vm597_vm13 = vcmp.gt.f32.partialorder %v3467_v47, 0.0  ;;  %vm598_vm14 = vcmp.gt.f32.partialorder %v3472_v0, 0.0 }
 0x263   :  { %v2944_v16 = vpop.eup %2943  ;;  %2961 = vpow2.f32 %v630_v10  ;;  %v634_v46 = vmul.f32 1.442695, %v611_v12  ;;  %vm599_vm15 = vcmp.gt.f32.partialorder %v3474_v8, 0.0  ;;  %vm591_vm0 = vcmp.gt.f32.partialorder %v3452_v17, 0.0 }
 0x264   :  { %v2946_v9 = vpop.eup %2945  ;;  %2963 = vpow2.f32 %v632_v14  ;;  %v2616_v18 = vadd.f32 -1.0, %v2944_v16 }
 0x265   :  { %2965 = vpow2.f32 %v634_v46 }
 0x266   :  { %v2948_v19 = vpop.eup %2947  ;;  %v3480_v48 = vsel %vm588_vm5, %v3442_v7, %v2616_v18 }
 0x267   :  { %v2950_v23 = vpop.eup %2949  ;;  %666 = vrot.lane.b32.xlu0 %v3480_v48, %s3113_s2  ;;  %v2618_v24 = vadd.f32 -1.0, %v2948_v19 }
 0x268   :  { %v2952_v25 = vpop.eup %2951  ;;  %v2620_v26 = vadd.f32 -1.0, %v2950_v23 }
 0x269   :  { %v2954_v28 = vpop.eup %2953  ;;  %v3487_v34 = vsel %vm590_vm6, %v3448_v13, %v2618_v24  ;;  %v2619_v14 = vadd.f32 -1.0, %v2952_v25 }
 0x26a   :  { %v2956_v39 = vpop.eup %2955  ;;  %v3490_v40 = vsel %vm592_vm7, %v3450_v56, %v2620_v26  ;;  %v2621_v44 = vadd.f32 -1.0, %v2954_v28  ;;  %v2617_v56 = vadd.f32 -1.0, %v2946_v9 }
 0x26b   :  { %v2958_v7 = vpop.eup %2957  ;;  %668 = vrot.lane.b32.xlu1 %v3490_v40, %s3113_s2  ;;  %678 = vrot.lane.b32.xlu0 %v3487_v34, %s3113_s2  ;;  %v2622_v41 = vadd.f32 -1.0, %v2956_v39 }
 0x26c   :  { %v2960_v43 = vpop.eup %2959  ;;  %v2624_v45 = vadd.f32 -1.0, %v2958_v7  ;;  %v3515_v50 = vsel %vm593_vm11, %v3455_v20, %v2621_v44  ;;  %v3524_v57 = vsel %vm589_vm9, %v3444_v54, %v2617_v56 }
 0x26d   :  { %v2962_v51 = vpop.eup %2961  ;;  %v3498_v13 = vsel %vm594_vm8, %v3460_v29, %v2622_v41  ;;  %v2623_v58 = vadd.f32 -1.0, %v2960_v43 }
 0x26e   :  { %v2964_v53 = vpop.eup %2963  ;;  %v3504_v61 = vsel %vm596_vm10, %v3462_v52, %v2624_v45  ;;  %v2625_v63 = vadd.f32 -1.0, %v2962_v51 }
 0x26f   :  { %v2966_v1 = vpop.eup %2965  ;;  %680 = vrot.lane.b32.xlu1 %v3498_v13, %s3113_s2  ;;  %714 = vrot.lane.b32.xlu0 %v3480_v48, %s3114_s1  ;;  %v2784_v29 = vpack.c.bf16 %v3504_v61, %v3490_v40  ;;  %v2626_v4 = vadd.f32 -1.0, %v2964_v53 }
 0x270   :  { %v3518_v52 = vsel %vm597_vm13, %v3467_v47, %v2625_v63  ;;  %v2627_v10 = vadd.f32 -1.0, %v2966_v1  ;;  %v3533_v47 = vsel %vm595_vm12, %v3464_v42, %v2623_v58  ;;  %v3548_v42 = vsel %vm591_vm0, %v3452_v17, %v2619_v14  ;;  %v663_v17 = vld [vmem:[%s4863_s6] sm:$0xff] }
 0x271   :  { %v3527_v12 = vsel %vm598_vm14, %v3472_v0, %v2626_v4  ;;  %v2782_v20 = vpack.c.bf16 %v3518_v52, %v3515_v50  ;;  %v664_v0 = vld [vmem:[%s4863_s6 + $0x8] sm:$0xff] }
 0x272   :  { %v2800_v16 = vpack.c.bf16 %v3527_v12, %v3498_v13  ;;  %v3538_v46 = vsel %vm599_vm15, %v3474_v8, %v2627_v10  ;;  %v665_v8 = vld [vmem:[%s4863_s6 + $0x10] sm:$0xff] }
 0x273   :  { %716 = vrot.lane.b32.xlu1 %v3490_v40, %s3114_s1  ;;  %672 = vrot.lane.b32.xlu0 %v3524_v57, %s3113_s2  ;;  %v2798_v54 = vpack.c.bf16 %v3538_v46, %v3533_v47 }
 0x277   :  { %674 = vrot.lane.b32.xlu1 %v3515_v50, %s3113_s2  ;;  %684 = vrot.lane.b32.xlu0 %v3548_v42, %s3113_s2 }
 0x27b   :  { %686 = vrot.lane.b32.xlu1 %v3533_v47, %s3113_s2  ;;  %720 = vrot.lane.b32.xlu0 %v3524_v57, %s3114_s1 }
 0x27f   :  { %722 = vrot.lane.b32.xlu1 %v3515_v50, %s3114_s1  ;;  %670 = vrot.lane.b32.xlu0 %v3504_v61, %s3113_s2 }
 0x283   :  { %676 = vrot.lane.b32.xlu1 %v3518_v52, %s3113_s2  ;;  %682 = vrot.lane.b32.xlu0 %v3527_v12, %s3113_s2 }
 0x287   :  { %688 = vrot.lane.b32.xlu1 %v3538_v46, %s3113_s2  ;;  %726 = vrot.lane.b32.xlu0 %v3487_v34, %s3114_s1 }
 0x28b   :  { %728 = vrot.lane.b32.xlu1 %v3498_v13, %s3114_s1  ;;  %732 = vrot.lane.b32.xlu0 %v3548_v42, %s3114_s1 }
 0x28f   :  { %734 = vrot.lane.b32.xlu1 %v3533_v47, %s3114_s1  ;;  %718 = vrot.lane.b32.xlu0 %v3504_v61, %s3114_s1 }
 0x293   :  { %724 = vrot.lane.b32.xlu1 %v3518_v52, %s3114_s1  ;;  %730 = vrot.lane.b32.xlu0 %v3527_v12, %s3114_s1 }
 0x297   :  { %736 = vrot.lane.b32.xlu1 %v3538_v46, %s3114_s1  ;;  %764 = vperm.xlu0 %2941, %v663_v17  }
 0x29b   :  { %769 = vperm.xlu1 %2942, %v664_v0   ;;  %774 = vperm.xlu0 %2941, %v665_v8  }
 0x2d9   :  { %v667_v9 = vpop.permute.xlu0 %666 }
 0x2dd   :  { %v669_v18 = vpop.permute.xlu1 %668  ;;  %v679_v19 = vpop.permute.xlu0 %678 }
 0x2e1   :  { %v681_v23 = vpop.permute.xlu1 %680  ;;  %v715_v24 = vpop.permute.xlu0 %714 }
 0x2e5   :  { %v3593_v25 = vpop.permute.xlu1 %716  ;;  %v673_v26 = vpop.permute.xlu0 %672 }
 0x2e6   :  { %v696_v28 = vsel %vm281_vm2, %v667_v9, %v673_v26  ;;  %v693_v53 = vsel %vm281_vm2, %v673_v26, %v679_v19 }
 0x2e7   :  { %v703_v43 = vmul.f32 %v696_v28, %v3307_v55 }
 0x2e9   :  { %v675_v39 = vpop.permute.xlu1 %674  ;;  %v685_v7 = vpop.permute.xlu0 %684 }
 0x2ea   :  { %v697_v41 = vsel %vm281_vm2, %v669_v18, %v675_v39  ;;  %v694_v44 = vsel %vm281_vm2, %v675_v39, %v681_v23  ;;  %v690_v51 = vsel %vm281_vm2, %v679_v19, %v685_v7  ;;  %v699_v56 = vsel %vm281_vm2, %v685_v7, %v667_v9 }
 0x2eb   :  { %v707_v45 = vmul.f32 %v697_v41, %v3307_v55  ;;  %v708_v4 = vmul.f32 %v694_v44, %v3325_v3  ;;  %v702_v17 = vmul.f32 %v699_v56, %v3315_v62  ;;  %v705_v0 = vmul.f32 %v690_v51, %v3323_v2 }
 0x2ec   :  { %v704_v19 = vmul.f32 %v693_v53, %v3325_v3 }
 0x2ed   :  { %v687_v58 = vpop.permute.xlu1 %686  ;;  %v721_v63 = vpop.permute.xlu0 %720  ;;  %v2774_v1 = vpack.c.bf16 %v707_v45, %v703_v43 }
 0x2ee   :  { %v691_v10 = vsel %vm281_vm2, %v681_v23, %v687_v58  ;;  %v700_v14 = vsel %vm281_vm2, %v687_v58, %v669_v18  ;;  %v2792_v41 = vpack.c.bf16 %v708_v4, %v704_v19 }
 0x2ef   :  { %v706_v8 = vmul.f32 %v700_v14, %v3315_v62  ;;  %v709_v9 = vmul.f32 %v691_v10, %v3323_v2  ;;  %2775 = vmatprep.subr.bf16.mxu0 %v2774_v1 }
 0x2f1   :  { %v2776_v26 = vpack.c.bf16 %v706_v8, %v702_v17  ;;  %v723_v28 = vpop.permute.xlu1 %722  ;;  %v671_v39 = vpop.permute.xlu0 %670  ;;  %v2790_v7 = vpack.c.bf16 %v709_v9, %v705_v0 }
 0x2f2   :  { %v745_v19 = vsel %vm351_vm3, %v3593_v25, %v723_v28 }
 0x2f3   :  { %2777 = vmatpush1.bf16.msra.mxu0 %v2776_v26  ;;  %2791 = vmatprep.subr.bf16.mxu1 %v2790_v7  ;;  %v744_v7 = vsel %vm351_vm3, %v715_v24, %v721_v63 }
 0x2f4   :  { %2793 = vmatpush1.bf16.msra.mxu1 %v2792_v41 }
 0x2f5   :  { %v677_v18 = vpop.permute.xlu1 %676  ;;  %v683_v23 = vpop.permute.xlu0 %682 }
 0x2f6   :  { %v698_v43 = vsel %vm281_vm2, %v671_v39, %v677_v18  ;;  %v695_v45 = vsel %vm281_vm2, %v677_v18, %v683_v23 }
 0x2f7   :  { %v711_v44 = vmul.f32 %v698_v43, %v3307_v55  ;;  %v712_v58 = vmul.f32 %v695_v45, %v3325_v3  ;;  %v750_v43 = vmul.f32 %v744_v7, %v3362_v60 }
 0x2f9   :  { %v689_v51 = vpop.permute.xlu1 %688  ;;  %v727_v56 = vpop.permute.xlu0 %726  ;;  %v2778_v53 = vpack.c.bf16 %v3524_v57, %v711_v44  ;;  %v2796_v26 = vpack.c.bf16 %v3487_v34, %v712_v58  ;;  %v754_v34 = vmul.f32 %v745_v19, %v3362_v60 }
 0x2fa   :  { %v692_v1 = vsel %vm281_vm2, %v683_v23, %v689_v51  ;;  %v701_v4 = vsel %vm281_vm2, %v689_v51, %v671_v39  ;;  %v741_v17 = vsel %vm351_vm3, %v721_v63, %v727_v56 }
 0x2fb   :  { %v710_v10 = vmul.f32 %v701_v4, %v3315_v62  ;;  %v713_v14 = vmul.f32 %v692_v1, %v3323_v2  ;;  %2779 = vmatprep.subr.bf16.mxu0 %v2778_v53  ;;  %v751_v41 = vmul.f32 %v741_v17, %v3360_v59  ;;  %v2788_v46 = vpack.c.bf16 %v754_v34, %v750_v43  ;;  %v661_v4 = vld [vmem:[%s4862_s5 + $0x8] sm:$0xff] }
 0x2fd   :  { %v2780_v0 = vpack.c.bf16 %v3480_v48, %v710_v10  ;;  %v729_v8 = vpop.permute.xlu1 %728  ;;  %v733_v57 = vpop.permute.xlu0 %732  ;;  %v2794_v9 = vpack.c.bf16 %v3548_v42, %v713_v14  ;;  %v662_v10 = vld [vmem:[%s4862_s5 + $0x10] sm:$0xff] }
 0x2fe   :  { %v742_v39 = vsel %vm351_vm3, %v723_v28, %v729_v8  ;;  %v738_v42 = vsel %vm351_vm3, %v727_v56, %v733_v57  ;;  %v747_v18 = vsel %vm351_vm3, %v733_v57, %v715_v24 }
 0x2ff   :  { %v755_v48 = vmul.f32 %v742_v39, %v3360_v59  ;;  %2781 = vmatpush1.bf16.msra.mxu0 %v2780_v0  ;;  %2795 = vmatprep.subr.bf16.mxu1 %v2794_v9  ;;  %v752_v52 = vmul.f32 %v738_v42, %v3369_v6 }
 0x300   :  { %2783 = vmatprep.subr.bf16.mxu0 %v2782_v20  ;;  %2797 = vmatpush1.bf16.msra.mxu1 %v2796_v26  ;;  %v753_v20 = vmul.f32 %v747_v18, %v3382_v11 }
 0x301   :  { %v735_v63 = vpop.permute.xlu1 %734  ;;  %2799 = vmatprep.subr.bf16.mxu1 %v2798_v54  ;;  %v719_v28 = vpop.permute.xlu0 %718  ;;  %v2786_v23 = vpack.c.bf16 %v755_v48, %v751_v41 }
 0x302   :  { %v739_v44 = vsel %vm351_vm3, %v729_v8, %v735_v63  ;;  %v748_v50 = vsel %vm351_vm3, %v735_v63, %v3593_v25 }
 0x303   :  { %v756_v24 = vmul.f32 %v739_v44, %v3369_v6  ;;  %v757_v47 = vmul.f32 %v748_v50, %v3382_v11  ;;  %2785 = vmatpush1.bf16.msra.mxu0 %v2784_v29  ;;  %v660_v29 = vld [vmem:[%s4862_s5] sm:$0xff] }
 0x304   :  { %2787 = vmatprep.subr.bf16.mxu0 %v2786_v23  ;;  %2801 = vmatpush1.bf16.msra.mxu1 %v2800_v16 }
 0x305   :  { %v2804_v54 = vpack.c.bf16 %v756_v24, %v752_v52  ;;  %v725_v25 = vpop.permute.xlu1 %724  ;;  %v731_v45 = vpop.permute.xlu0 %730  ;;  %v2802_v51 = vpack.c.bf16 %v757_v47, %v753_v20 }
 0x306   :  { %v746_v56 = vsel %vm351_vm3, %v719_v28, %v725_v25  ;;  %v743_v53 = vsel %vm351_vm3, %v725_v25, %v731_v45 }
 0x307   :  { %2789 = vmatpush1.bf16.msra.mxu0 %v2788_v46  ;;  %2803 = vmatprep.subr.bf16.mxu1 %v2802_v51  ;;  %v759_v40 = vmul.f32 %v743_v53, %v3360_v59  ;;  %v758_v61 = vmul.f32 %v746_v56, %v3362_v60 }
 0x308   :  { %2805 = vmatpush1.bf16.msra.mxu1 %v2804_v54 }
 0x309   :  { %v737_v13 = vpop.permute.xlu1 %736  ;;  %802 = vmatprep.subr.mxu0 %v759_v40 }
 0x30a   :  { %v740_v12 = vsel %vm351_vm3, %v731_v45, %v737_v13  ;;  %v749_v16 = vsel %vm351_vm3, %v737_v13, %v719_v28 }
 0x30b   :  { %v760_v58 = vmul.f32 %v740_v12, %v3369_v6  ;;  %803 = vmatpush1.msra.mxu0 %v758_v61  ;;  %v761_v1 = vmul.f32 %v749_v16, %v3382_v11 }
 0x30c   :  { %2628 = vmatmul.mubr.msk.f32.vlgmr.msra.gmra.mrb[12].mxu0 %vm412_vm4, %v660_v29 }
 0x30d   :  { %885 = vmatprep.subr.mxu1 %v761_v1  ;;  %856 = vmatprep.mubr.f32.mxu0 %v3111_v5 }
 0x30e   :  { %886 = vmatpush1.msra.mxu1 %v760_v58 }
 0x30f   :  { %2631 = vmatmul.mubr.msk.f32.vlgmr.msra.gmra.mrb[12].mxu1 %vm412_vm4, %v660_v29 }
 0x310   :  { %2629 = vmatmul.mubr.msk.f32.gmra.mrb[14].mxu0 %vm412_vm4, %v661_v4  ;;  %939 = vmatprep.mubr.f32.mxu1 %v3111_v5 }
 0x311   :  { %862 = vmatprep.mubr.f32.mxu0 %v3111_v5 }
 0x313   :  { %2632 = vmatmul.mubr.msk.f32.gmra.mrb[14].mxu1 %vm412_vm4, %v661_v4 }
 0x314   :  { %2630 = vmatmul.mubr.msk.f32.gmra.mrb[16].mxu0 %vm412_vm4, %v662_v10  ;;  %945 = vmatprep.mubr.f32.mxu1 %v3111_v5 }
 0x315   :  { %1228 = vmatprep.mubr.f32.mxu0 %v3111_v5 }
 0x316   :  { %v765_v14 = vpop.permute.xlu0 %764 }
 0x317   :  { %2633 = vmatmul.mubr.msk.f32.gmra.mrb[16].mxu1 %vm412_vm4, %v662_v10 }
 0x318   :  { %1311 = vmatprep.mubr.f32.mxu1 %v3111_v5 }
 0x31a   :  { %v770_v9 = vpop.permute.xlu1 %769  ;;  %v775_v25 = vpop.permute.xlu0 %774 }
 0x3df   :  { %v852_v17 = vpop.f32.mrb[12].mxu0 }
 0x3e0   :  { %v853_v0 = vadd.f32 %v852_v17, %v765_v14  ;;  %v854_v8 = vpop.f32.mrb[13].mxu0 }
 0x3e1   :  { %v855_v57 = vadd.f32 %v854_v8, %v765_v14 }
 0x3e2   :  { %v952_v19 = vadd.f32 %v853_v0, %v3212_v15  ;;  %v935_v26 = vpop.f32.mrb[12].mxu1 }
 0x3e3   :  { %v936_v39 = vadd.f32 %v935_v26, %v765_v14  ;;  %v858_v7 = vpop.f32.mrb[14].mxu0  ;;  %v937_v41 = vpop.f32.mrb[13].mxu1  ;;  %v3708_v42 = vadd.f32 %v855_v57, %v3230_v30 }
 0x3e4   :  { %v976_v48 = vmin.f32 %v952_v19, 0.0  ;;  %v859_v18 = vadd.f32 %v858_v7, %v770_v9  ;;  %v938_v34 = vadd.f32 %v937_v41, %v765_v14  ;;  %v860_v63 = vpop.f32.mrb[15].mxu0  ;;  %vm964_vm1 = vcmp.gt.f32.partialorder %v952_v19, 0.0 }
 0x3e5   :  { %v3711_v28 = vadd.f32 %v936_v39, %v3216_v21  ;;  %v861_v23 = vadd.f32 %v860_v63, %v770_v9  ;;  %v977_v47 = vmin.f32 %v3708_v42, 0.0  ;;  %vm965_vm8 = vcmp.gt.f32.partialorder %v3708_v42, 0.0 }
 0x3e6   :  { %v988_v43 = vmul.f32 1.442695, %v976_v48  ;;  %v956_v44 = vadd.f32 %v859_v18, %v3218_v22  ;;  %v941_v50 = vpop.f32.mrb[14].mxu1  ;;  %v3716_v52 = vadd.f32 %v938_v34, %v3236_v31 }
 0x3e7   :  { %v978_v15 = vmin.f32 %v3711_v28, 0.0  ;;  %v942_v20 = vadd.f32 %v941_v50, %v770_v9  ;;  %v864_v24 = vpop.f32.mrb[16].mxu0  ;;  %v943_v30 = vpop.f32.mrb[15].mxu1  ;;  %v3720_v21 = vadd.f32 %v861_v23, %v3238_v32  ;;  %v990_v29 = vmul.f32 1.442695, %v977_v47 }
 0x3e8   :  { %2967 = vpow2.f32 %v988_v43  ;;  %v980_v46 = vmin.f32 %v956_v44, 0.0  ;;  %v866_v54 = vpop.f32.mrb[17].mxu0  ;;  %v865_v56 = vadd.f32 %v864_v24, %v775_v25  ;;  %v944_v53 = vadd.f32 %v943_v30, %v770_v9 }
 0x3e9   :  { %v992_v45 = vmul.f32 1.442695, %v978_v15  ;;  %v958_v22 = vadd.f32 %v942_v20, %v3224_v27  ;;  %v979_v40 = vmin.f32 %v3716_v52, 0.0  ;;  %v981_v12 = vmin.f32 %v3720_v21, 0.0 }
 0x3ea   :  { %v996_v51 = vmul.f32 1.442695, %v980_v46  ;;  %v947_v31 = vpop.f32.mrb[16].mxu1  ;;  %v3726_v32 = vadd.f32 %v944_v53, %v3244_v33  ;;  %v3729_v58 = vadd.f32 %v865_v56, %v3250_v35  ;;  %v867_v1 = vadd.f32 %v866_v54, %v775_v25 }
 0x3eb   :  { %2969 = vpow2.f32 %v992_v45  ;;  %v982_v61 = vmin.f32 %v958_v22, 0.0  ;;  %v949_v13 = vpop.f32.mrb[17].mxu1  ;;  %v994_v27 = vmul.f32 1.442695, %v979_v40  ;;  %v998_v4 = vmul.f32 1.442695, %v981_v12 }
 0x3ec   :  { %2971 = vpow2.f32 %v996_v51  ;;  %v983_v10 = vmin.f32 %v3726_v32, 0.0  ;;  %v948_v14 = vadd.f32 %v947_v31, %v775_v25  ;;  %v984_v0 = vmin.f32 %v3729_v58, 0.0 }
 0x3ed   :  { %v1000_v16 = vmul.f32 1.442695, %v982_v61  ;;  %v3734_v8 = vadd.f32 %v867_v1, %v3258_v37  ;;  %v950_v33 = vadd.f32 %v949_v13, %v775_v25  ;;  %vm966_vm5 = vcmp.gt.f32.partialorder %v3711_v28, 0.0  ;;  %v2650_v1 = vld [vmem:[%s4861_s4 + $0x20] sm:$0xff] }
 0x3ee   :  { %v1002_v35 = vmul.f32 1.442695, %v983_v10  ;;  %v3737_v9 = vadd.f32 %v948_v14, %v3256_v36  ;;  %v1004_v41 = vmul.f32 1.442695, %v984_v0  ;;  %vm968_vm6 = vcmp.gt.f32.partialorder %v956_v44, 0.0 }
 0x3ef   :  { %2973 = vpow2.f32 %v1000_v16  ;;  %v985_v37 = vmin.f32 %v3734_v8, 0.0  ;;  %v3745_v18 = vadd.f32 %v950_v33, %v3264_v38  ;;  %vm970_vm7 = vcmp.gt.f32.partialorder %v958_v22, 0.0 }
 0x3f0   :  { %2975 = vpow2.f32 %v990_v29  ;;  %v986_v36 = vmin.f32 %v3737_v9, 0.0  ;;  %vm969_vm9 = vcmp.gt.f32.partialorder %v3720_v21, 0.0  ;;  %vm967_vm10 = vcmp.gt.f32.partialorder %v3716_v52, 0.0 }
 0x3f1   :  { %2977 = vpow2.f32 %v994_v27  ;;  %v1006_v50 = vmul.f32 1.442695, %v985_v37  ;;  %v987_v20 = vmin.f32 %v3745_v18, 0.0  ;;  %vm971_vm11 = vcmp.gt.f32.partialorder %v3726_v32, 0.0  ;;  %v2649_v27 = vld [vmem:[%s4861_s4 + $0x18] sm:$0xff] }
 0x3f2   :  { %v2968_v17 = vpop.eup %2967  ;;  %2979 = vpow2.f32 %v998_v4  ;;  %v1008_v15 = vmul.f32 1.442695, %v986_v36  ;;  %vm972_vm12 = vcmp.gt.f32.partialorder %v3729_v58, 0.0  ;;  %vm973_vm13 = vcmp.gt.f32.partialorder %v3734_v8, 0.0  ;;  %v2651_v4 = vld [vmem:[%s4861_s4 + $0x28] sm:$0xff] }
 0x3f3   :  { %v2634_v57 = vadd.f32 -1.0, %v2968_v17  ;;  %2981 = vpow2.f32 %v1002_v35  ;;  %v1010_v47 = vmul.f32 1.442695, %v987_v20  ;;  %vm974_vm14 = vcmp.gt.f32.partialorder %v3737_v9, 0.0 }
 0x3f4   :  { %2983 = vpow2.f32 %v1004_v41  ;;  %vm975_vm15 = vcmp.gt.f32.partialorder %v3745_v18, 0.0 }
 0x3f5   :  { %v2970_v26 = vpop.eup %2969  ;;  %v3739_v39 = vsel %vm964_vm1, %v952_v19, %v2634_v57  ;;  %2985 = vpow2.f32 %v1006_v50 }
 0x3f6   :  { %v2972_v7 = vpop.eup %2971  ;;  %1044 = vrot.lane.b32.xlu1 %v3739_v39, %s3113_s2  ;;  %v2636_v48 = vadd.f32 -1.0, %v2970_v26  ;;  %2987 = vpow2.f32 %v1008_v15 }
 0x3f7   :  { %v2638_v34 = vadd.f32 -1.0, %v2972_v7  ;;  %2989 = vpow2.f32 %v1010_v47 }
 0x3f8   :  { %v3750_v19 = vsel %vm966_vm5, %v3711_v28, %v2636_v48 }
 0x3f9   :  { %v2974_v63 = vpop.eup %2973  ;;  %v3752_v23 = vsel %vm968_vm6, %v956_v44, %v2638_v34 }
 0x3fa   :  { %v2976_v43 = vpop.eup %2975  ;;  %1046 = vrot.lane.b32.xlu0 %v3752_v23, %s3113_s2  ;;  %1056 = vrot.lane.b32.xlu1 %v3750_v19, %s3113_s2  ;;  %v2640_v38 = vadd.f32 -1.0, %v2974_v63 }
 0x3fb   :  { %v2978_v28 = vpop.eup %2977  ;;  %v2635_v30 = vadd.f32 -1.0, %v2976_v43 }
 0x3fc   :  { %v3759_v24 = vsel %vm970_vm7, %v958_v22, %v2640_v38  ;;  %v2980_v44 = vpop.eup %2979  ;;  %v2637_v25 = vadd.f32 -1.0, %v2978_v28 }
 0x3fd   :  { %v3767_v46 = vsel %vm965_vm8, %v3708_v42, %v2635_v30  ;;  %v2639_v54 = vadd.f32 -1.0, %v2980_v44  ;;  %v2982_v45 = vpop.eup %2981 }
 0x3fe   :  { %1058 = vrot.lane.b32.xlu0 %v3759_v24, %s3113_s2  ;;  %1092 = vrot.lane.b32.xlu1 %v3739_v39, %s3114_s1  ;;  %v3779_v42 = vsel %vm967_vm10, %v3716_v52, %v2637_v25  ;;  %v2641_v51 = vadd.f32 -1.0, %v2982_v45  ;;  %v2984_v56 = vpop.eup %2983 }
 0x3ff   :  { %v3776_v22 = vsel %vm969_vm9, %v3720_v21, %v2639_v54  ;;  %v2986_v53 = vpop.eup %2985  ;;  %v2642_v40 = vadd.f32 -1.0, %v2984_v56 }
 0x400   :  { %v3787_v31 = vsel %vm971_vm11, %v3726_v32, %v2641_v51  ;;  %v2988_v21 = vpop.eup %2987  ;;  %v2643_v61 = vadd.f32 -1.0, %v2986_v53 }
 0x401   :  { %v3795_v52 = vsel %vm972_vm12, %v3729_v58, %v2642_v40  ;;  %v2644_v13 = vadd.f32 -1.0, %v2988_v21  ;;  %v2990_v29 = vpop.eup %2989 }
 0x402   :  { %1094 = vrot.lane.b32.xlu0 %v3752_v23, %s3114_s1  ;;  %1050 = vrot.lane.b32.xlu1 %v3767_v46, %s3113_s2  ;;  %v3804_v12 = vsel %vm973_vm13, %v3734_v8, %v2643_v61  ;;  %v2645_v16 = vadd.f32 -1.0, %v2990_v29 }
 0x403   :  { %v3807_v32 = vsel %vm974_vm14, %v3737_v9, %v2644_v13 }
 0x404   :  { %v3815_v58 = vsel %vm975_vm15, %v3745_v18, %v2645_v16 }
 0x406   :  { %1052 = vrot.lane.b32.xlu0 %v3776_v22, %s3113_s2  ;;  %1062 = vrot.lane.b32.xlu1 %v3779_v42, %s3113_s2 }
 0x40a   :  { %1064 = vrot.lane.b32.xlu0 %v3787_v31, %s3113_s2  ;;  %1098 = vrot.lane.b32.xlu1 %v3767_v46, %s3114_s1 }
 0x40e   :  { %1100 = vrot.lane.b32.xlu0 %v3776_v22, %s3114_s1  ;;  %1048 = vrot.lane.b32.xlu1 %v3795_v52, %s3113_s2 }
 0x412   :  { %1054 = vrot.lane.b32.xlu0 %v3804_v12, %s3113_s2  ;;  %1060 = vrot.lane.b32.xlu1 %v3807_v32, %s3113_s2 }
 0x416   :  { %1066 = vrot.lane.b32.xlu0 %v3815_v58, %s3113_s2  ;;  %1104 = vrot.lane.b32.xlu1 %v3750_v19, %s3114_s1 }
 0x41a   :  { %1106 = vrot.lane.b32.xlu0 %v3759_v24, %s3114_s1  ;;  %1110 = vrot.lane.b32.xlu1 %v3779_v42, %s3114_s1 }
 0x41e   :  { %1112 = vrot.lane.b32.xlu0 %v3787_v31, %s3114_s1  ;;  %1096 = vrot.lane.b32.xlu1 %v3795_v52, %s3114_s1 }
 0x422   :  { %1102 = vrot.lane.b32.xlu0 %v3804_v12, %s3114_s1  ;;  %1108 = vrot.lane.b32.xlu1 %v3807_v32, %s3114_s1 }
 0x426   :  { %1114 = vrot.lane.b32.xlu0 %v3815_v58, %s3114_s1  ;;  %1142 = vperm.xlu1 %2942, %v2649_v27  }
 0x42a   :  { %1147 = vperm.xlu0 %2941, %v2650_v1   ;;  %1152 = vperm.xlu1 %2942, %v2651_v4  }
 0x468   :  { %v1045_v10 = vpop.permute.xlu1 %1044 }
 0x46c   :  { %v1057_v14 = vpop.permute.xlu1 %1056  ;;  %v1047_v17 = vpop.permute.xlu0 %1046 }
 0x470   :  { %v3844_v0 = vpop.permute.xlu1 %1092  ;;  %v1059_v8 = vpop.permute.xlu0 %1058 }
 0x474   :  { %v1051_v33 = vpop.permute.xlu1 %1050  ;;  %v3846_v57 = vpop.permute.xlu0 %1094 }
 0x475   :  { %v1074_v35 = vsel %vm281_vm2, %v1045_v10, %v1051_v33  ;;  %v1071_v36 = vsel %vm281_vm2, %v1051_v33, %v1057_v14 }
 0x476   :  { %v1081_v41 = vmul.f32 %v1074_v35, %v3307_v55  ;;  %v1082_v54 = vmul.f32 %v1071_v36, %v3325_v3 }
 0x478   :  { %v1063_v9 = vpop.permute.xlu1 %1062  ;;  %v1053_v26 = vpop.permute.xlu0 %1052 }
 0x479   :  { %v1075_v7 = vsel %vm281_vm2, %v1047_v17, %v1053_v26  ;;  %v1072_v48 = vsel %vm281_vm2, %v1053_v26, %v1059_v8  ;;  %v1068_v18 = vsel %vm281_vm2, %v1057_v14, %v1063_v9  ;;  %v1077_v34 = vsel %vm281_vm2, %v1063_v9, %v1045_v10 }
 0x47a   :  { %v1085_v37 = vmul.f32 %v1075_v7, %v3307_v55  ;;  %v1086_v50 = vmul.f32 %v1072_v48, %v3325_v3  ;;  %v1080_v28 = vmul.f32 %v1077_v34, %v3315_v62  ;;  %v1083_v30 = vmul.f32 %v1068_v18, %v3323_v2 }
 0x47b   :  { %v2830_v34 = vpack.c.bf16 %v3815_v58, %v3787_v31 }
 0x47c   :  { %v1099_v63 = vpop.permute.xlu1 %1098  ;;  %v1065_v43 = vpop.permute.xlu0 %1064  ;;  %v2806_v38 = vpack.c.bf16 %v1085_v37, %v1081_v41  ;;  %v2824_v53 = vpack.c.bf16 %v1086_v50, %v1082_v54  ;;  %v2814_v41 = vpack.c.bf16 %v3804_v12, %v3776_v22 }
 0x47d   :  { %v1069_v15 = vsel %vm281_vm2, %v1059_v8, %v1065_v43  ;;  %v1078_v20 = vsel %vm281_vm2, %v1065_v43, %v1047_v17  ;;  %v1122_v36 = vsel %vm351_vm3, %v3844_v0, %v1099_v63 }
 0x47e   :  { %v1084_v44 = vmul.f32 %v1078_v20, %v3315_v62  ;;  %v1087_v47 = vmul.f32 %v1069_v15, %v3323_v2  ;;  %2807 = vmatprep.subr.bf16.mxu0 %v2806_v38 }
 0x480   :  { %v2808_v25 = vpack.c.bf16 %v1084_v44, %v1080_v28  ;;  %v1049_v45 = vpop.permute.xlu1 %1048  ;;  %v1101_v51 = vpop.permute.xlu0 %1100  ;;  %v2822_v56 = vpack.c.bf16 %v1087_v47, %v1083_v30  ;;  %v2816_v30 = vpack.c.bf16 %v3795_v52, %v3752_v23  ;;  %v1128_v47 = vmul.f32 %v1122_v36, %v3362_v60 }
 0x481   :  { %v1123_v48 = vsel %vm351_vm3, %v3846_v57, %v1101_v51 }
 0x482   :  { %2809 = vmatpush1.bf16.msra.mxu0 %v2808_v25  ;;  %2823 = vmatprep.subr.bf16.mxu1 %v2822_v56  ;;  %v1132_v20 = vmul.f32 %v1123_v48, %v3362_v60  ;;  %v2832_v25 = vpack.c.bf16 %v3807_v32, %v3759_v24 }
 0x483   :  { %2825 = vmatpush1.bf16.msra.mxu1 %v2824_v53 }
 0x484   :  { %v1061_v40 = vpop.permute.xlu1 %1060  ;;  %v1055_v21 = vpop.permute.xlu0 %1054 }
 0x485   :  { %v1076_v61 = vsel %vm281_vm2, %v1049_v45, %v1055_v21  ;;  %v1073_v13 = vsel %vm281_vm2, %v1055_v21, %v1061_v40 }
 0x486   :  { %v1089_v29 = vmul.f32 %v1076_v61, %v3307_v55  ;;  %v1090_v4 = vmul.f32 %v1073_v13, %v3325_v3 }
 0x488   :  { %v1105_v16 = vpop.permute.xlu1 %1104  ;;  %v1067_v27 = vpop.permute.xlu0 %1066  ;;  %v2810_v1 = vpack.c.bf16 %v3767_v46, %v1089_v29  ;;  %v2828_v37 = vpack.c.bf16 %v3750_v19, %v1090_v4 }
 0x489   :  { %v1070_v10 = vsel %vm281_vm2, %v1061_v40, %v1067_v27  ;;  %v1079_v14 = vsel %vm281_vm2, %v1067_v27, %v1049_v45  ;;  %v1119_v33 = vsel %vm351_vm3, %v1099_v63, %v1105_v16  ;;  %v2820_v40 = vpack.c.bf16 %v1132_v20, %v1128_v47 }
 0x48a   :  { %v1088_v17 = vmul.f32 %v1079_v14, %v3315_v62  ;;  %v1091_v8 = vmul.f32 %v1070_v10, %v3323_v2  ;;  %2811 = vmatprep.subr.bf16.mxu0 %v2810_v1  ;;  %v1129_v43 = vmul.f32 %v1119_v33, %v3360_v59  ;;  %v2646_v10 = vld [vmem:[%s4860_s3 + $0x18] sm:$0xff] }
 0x48c   :  { %v2812_v35 = vpack.c.bf16 %v3739_v39, %v1088_v17  ;;  %v1111_v9 = vpop.permute.xlu1 %1110  ;;  %v1107_v26 = vpop.permute.xlu0 %1106  ;;  %v2826_v7 = vpack.c.bf16 %v3779_v42, %v1091_v8 }
 0x48d   :  { %v1120_v18 = vsel %vm351_vm3, %v1101_v51, %v1107_v26  ;;  %v1116_v50 = vsel %vm351_vm3, %v1105_v16, %v1111_v9  ;;  %v1125_v15 = vsel %vm351_vm3, %v1111_v9, %v3844_v0  ;;  %v2648_v9 = vld [vmem:[%s4860_s3 + $0x28] sm:$0xff] }
 0x48e   :  { %v1133_v38 = vmul.f32 %v1120_v18, %v3360_v59  ;;  %2813 = vmatpush1.bf16.msra.mxu0 %v2812_v35  ;;  %2827 = vmatprep.subr.bf16.mxu1 %v2826_v7  ;;  %v1130_v45 = vmul.f32 %v1116_v50, %v3369_v6  ;;  %v1131_v51 = vmul.f32 %v1125_v15, %v3382_v11  ;;  %v2647_v35 = vld [vmem:[%s4860_s3 + $0x20] sm:$0xff] }
 0x48f   :  { %2815 = vmatprep.subr.bf16.mxu0 %v2814_v41  ;;  %2829 = vmatpush1.bf16.msra.mxu1 %v2828_v37 }
 0x490   :  { %v1097_v28 = vpop.permute.xlu1 %1096  ;;  %2831 = vmatprep.subr.bf16.mxu1 %v2830_v34  ;;  %v1113_v63 = vpop.permute.xlu0 %1112  ;;  %v2818_v44 = vpack.c.bf16 %v1133_v38, %v1129_v43 }
 0x491   :  { %v1117_v54 = vsel %vm351_vm3, %v1107_v26, %v1113_v63  ;;  %v1126_v0 = vsel %vm351_vm3, %v1113_v63, %v3846_v57 }
 0x492   :  { %v1134_v56 = vmul.f32 %v1117_v54, %v3369_v6  ;;  %v1135_v53 = vmul.f32 %v1126_v0, %v3382_v11  ;;  %2817 = vmatpush1.bf16.msra.mxu0 %v2816_v30 }
 0x493   :  { %2819 = vmatprep.subr.bf16.mxu0 %v2818_v44  ;;  %2833 = vmatpush1.bf16.msra.mxu1 %v2832_v25 }
 0x494   :  { %v2836_v21 = vpack.c.bf16 %v1134_v56, %v1130_v45  ;;  %v1109_v61 = vpop.permute.xlu1 %1108  ;;  %v1103_v13 = vpop.permute.xlu0 %1102  ;;  %v2834_v29 = vpack.c.bf16 %v1135_v53, %v1131_v51 }
 0x495   :  { %v1121_v57 = vsel %vm351_vm3, %v1103_v13, %v1109_v61  ;;  %v1124_v16 = vsel %vm351_vm3, %v1097_v28, %v1103_v13 }
 0x496   :  { %2821 = vmatpush1.bf16.msra.mxu0 %v2820_v40  ;;  %2835 = vmatprep.subr.bf16.mxu1 %v2834_v29  ;;  %v1137_v27 = vmul.f32 %v1121_v57, %v3360_v59  ;;  %v1136_v1 = vmul.f32 %v1124_v16, %v3362_v60 }
 0x497   :  { %2837 = vmatpush1.bf16.msra.mxu1 %v2836_v21 }
 0x498   :  { %1180 = vmatprep.subr.mxu0 %v1137_v27  ;;  %v1115_v4 = vpop.permute.xlu0 %1114 }
 0x499   :  { %v1118_v14 = vsel %vm351_vm3, %v1109_v61, %v1115_v4  ;;  %v1127_v17 = vsel %vm351_vm3, %v1115_v4, %v1097_v28 }
 0x49a   :  { %v1138_v8 = vmul.f32 %v1118_v14, %v3369_v6  ;;  %v1139_v33 = vmul.f32 %v1127_v17, %v3382_v11  ;;  %1181 = vmatpush1.msra.mxu0 %v1136_v1 }
 0x49b   :  { %2652 = vmatmul.mubr.msk.f32.vlgmr.msra.gmra.mrb[18].mxu0 %vm412_vm4, %v2646_v10 }
 0x49c   :  { %1263 = vmatprep.subr.mxu1 %v1139_v33  ;;  %1234 = vmatprep.mubr.f32.mxu0 %v3111_v5 }
 0x49d   :  { %1264 = vmatpush1.msra.mxu1 %v1138_v8 }
 0x49e   :  { %2655 = vmatmul.mubr.msk.f32.vlgmr.msra.gmra.mrb[18].mxu1 %vm412_vm4, %v2646_v10 }
 0x49f   :  { %2653 = vmatmul.mubr.msk.f32.gmra.mrb[20].mxu0 %vm412_vm4, %v2647_v35  ;;  %1317 = vmatprep.mubr.f32.mxu1 %v3111_v5 }
 0x4a0   :  { %1240 = vmatprep.mubr.f32.mxu0 %v3111_v5 }
 0x4a2   :  { %2656 = vmatmul.mubr.msk.f32.gmra.mrb[20].mxu1 %vm412_vm4, %v2647_v35 }
 0x4a3   :  { %2654 = vmatmul.mubr.msk.f32.gmra.mrb[22].mxu0 %vm412_vm4, %v2648_v9  ;;  %1323 = vmatprep.mubr.f32.mxu1 %v3111_v5 }
 0x4a4   :  { %1594 = vmatprep.mubr.f32.mxu0 %v3111_v5 }
 0x4a5   :  { %v1143_v26 = vpop.permute.xlu1 %1142 }
 0x4a6   :  { %2657 = vmatmul.mubr.msk.f32.gmra.mrb[22].mxu1 %vm412_vm4, %v2648_v9 }
 0x4a7   :  { %1677 = vmatprep.mubr.f32.mxu1 %v3111_v5 }
 0x4a9   :  { %v1148_v18 = vpop.permute.xlu0 %1147  ;;  %v1153_v0 = vpop.permute.xlu1 %1152 }
 0x56e   :  { %v1230_v7 = vpop.f32.mrb[18].mxu0 }
 0x56f   :  { %v3957_v41 = vadd.f32 %v1230_v7, %v1143_v26  ;;  %v1232_v48 = vpop.f32.mrb[19].mxu0 }
 0x570   :  { %v3959_v37 = vadd.f32 %v1232_v48, %v1143_v26 }
 0x571   :  { %v1342_v34 = vmin.f32 %v3957_v41, 0.0  ;;  %v1313_v36 = vpop.f32.mrb[18].mxu1  ;;  %vm1330_vm0 = vcmp.gt.f32.partialorder %v3957_v41, 0.0 }
 0x572   :  { %v1343_v43 = vmin.f32 %v3959_v37, 0.0  ;;  %v3963_v38 = vadd.f32 %v1313_v36, %v1143_v26  ;;  %v1236_v50 = vpop.f32.mrb[20].mxu0  ;;  %v1315_v15 = vpop.f32.mrb[19].mxu1  ;;  %vm1331_vm7 = vcmp.gt.f32.partialorder %v3959_v37, 0.0 }
 0x573   :  { %v1354_v20 = vmul.f32 1.442695, %v1342_v34  ;;  %v3965_v28 = vadd.f32 %v1236_v50, %v1148_v18  ;;  %v3967_v63 = vadd.f32 %v1315_v15, %v1143_v26  ;;  %v1238_v30 = vpop.f32.mrb[21].mxu0 }
 0x574   :  { %v1356_v44 = vmul.f32 1.442695, %v1343_v43  ;;  %v1344_v47 = vmin.f32 %v3963_v38, 0.0  ;;  %v3970_v54 = vadd.f32 %v1238_v30, %v1148_v18  ;;  %vm1332_vm1 = vcmp.gt.f32.partialorder %v3963_v38, 0.0 }
 0x575   :  { %2991 = vpow2.f32 %v1354_v20  ;;  %v1346_v25 = vmin.f32 %v3965_v28, 0.0  ;;  %v1345_v45 = vmin.f32 %v3967_v63, 0.0  ;;  %v1319_v51 = vpop.f32.mrb[20].mxu1  ;;  %vm1334_vm5 = vcmp.gt.f32.partialorder %v3965_v28, 0.0 }
 0x576   :  { %2993 = vpow2.f32 %v1356_v44  ;;  %v1358_v56 = vmul.f32 1.442695, %v1344_v47  ;;  %v1347_v53 = vmin.f32 %v3970_v54, 0.0  ;;  %v3975_v40 = vadd.f32 %v1319_v51, %v1148_v18  ;;  %v1242_v21 = vpop.f32.mrb[22].mxu0  ;;  %v1321_v61 = vpop.f32.mrb[21].mxu1 }
 0x577   :  { %v1362_v13 = vmul.f32 1.442695, %v1346_v25  ;;  %v1360_v29 = vmul.f32 1.442695, %v1345_v45  ;;  %v3977_v57 = vadd.f32 %v1242_v21, %v1153_v0  ;;  %v3979_v16 = vadd.f32 %v1321_v61, %v1148_v18  ;;  %v1244_v27 = vpop.f32.mrb[23].mxu0 }
 0x578   :  { %2995 = vpow2.f32 %v1358_v56  ;;  %v1364_v1 = vmul.f32 1.442695, %v1347_v53  ;;  %v1348_v4 = vmin.f32 %v3975_v40, 0.0  ;;  %v3982_v10 = vadd.f32 %v1244_v27, %v1153_v0 }
 0x579   :  { %2997 = vpow2.f32 %v1362_v13  ;;  %v1350_v14 = vmin.f32 %v3977_v57, 0.0  ;;  %v1349_v17 = vmin.f32 %v3979_v16, 0.0  ;;  %v1325_v8 = vpop.f32.mrb[22].mxu1  ;;  %vm1336_vm6 = vcmp.gt.f32.partialorder %v3975_v40, 0.0 }
 0x57a   :  { %2999 = vpow2.f32 %v1360_v29  ;;  %v1366_v33 = vmul.f32 1.442695, %v1348_v4  ;;  %v1351_v35 = vmin.f32 %v3982_v10, 0.0  ;;  %v3987_v9 = vadd.f32 %v1325_v8, %v1153_v0  ;;  %v1327_v26 = vpop.f32.mrb[23].mxu1 }
 0x57b   :  { %3001 = vpow2.f32 %v1364_v1  ;;  %v1370_v7 = vmul.f32 1.442695, %v1350_v14  ;;  %v1368_v48 = vmul.f32 1.442695, %v1349_v17  ;;  %v3989_v18 = vadd.f32 %v1327_v26, %v1153_v0 }
 0x57c   :  { %3003 = vpow2.f32 %v1366_v33  ;;  %v1372_v34 = vmul.f32 1.442695, %v1351_v35  ;;  %v1352_v36 = vmin.f32 %v3987_v9, 0.0  ;;  %vm1338_vm8 = vcmp.gt.f32.partialorder %v3977_v57, 0.0 }
 0x57d   :  { %3005 = vpow2.f32 %v1370_v7  ;;  %v1353_v43 = vmin.f32 %v3989_v18, 0.0  ;;  %vm1340_vm9 = vcmp.gt.f32.partialorder %v3987_v9, 0.0  ;;  %vm1335_vm10 = vcmp.gt.f32.partialorder %v3970_v54, 0.0 }
 0x57e   :  { %3007 = vpow2.f32 %v1368_v48  ;;  %v1374_v50 = vmul.f32 1.442695, %v1352_v36  ;;  %vm1339_vm11 = vcmp.gt.f32.partialorder %v3982_v10, 0.0  ;;  %vm1341_vm12 = vcmp.gt.f32.partialorder %v3989_v18, 0.0 }
 0x57f   :  { %v2992_v15 = vpop.eup %2991  ;;  %3009 = vpow2.f32 %v1372_v34  ;;  %v1376_v20 = vmul.f32 1.442695, %v1353_v43  ;;  %vm1337_vm13 = vcmp.gt.f32.partialorder %v3979_v16, 0.0  ;;  %vm1333_vm14 = vcmp.gt.f32.partialorder %v3967_v63, 0.0 }
 0x580   :  { %v2994_v30 = vpop.eup %2993  ;;  %3011 = vpow2.f32 %v1374_v50  ;;  %v2658_v44 = vadd.f32 -1.0, %v2992_v15 }
 0x581   :  { %3013 = vpow2.f32 %v1376_v20  ;;  %v2674_v20 = vld [vmem:[%s4863_s6 + $0x20] sm:$0xff] }
 0x582   :  { %v2996_v47 = vpop.eup %2995  ;;  %v3995_v0 = vsel %vm1330_vm0, %v3957_v41, %v2658_v44 }
 0x583   :  { %v2998_v25 = vpop.eup %2997  ;;  %1410 = vrot.lane.b32.xlu0 %v3995_v0, %s3113_s2  ;;  %v2660_v45 = vadd.f32 -1.0, %v2996_v47 }
 0x584   :  { %v3000_v51 = vpop.eup %2999  ;;  %v2662_v56 = vadd.f32 -1.0, %v2998_v25 }
 0x585   :  { %v3002_v53 = vpop.eup %3001  ;;  %v4001_v21 = vsel %vm1332_vm1, %v3963_v38, %v2660_v45  ;;  %v2661_v50 = vadd.f32 -1.0, %v3000_v51 }
 0x586   :  { %v3004_v61 = vpop.eup %3003  ;;  %v4005_v13 = vsel %vm1334_vm5, %v3965_v28, %v2662_v56  ;;  %v2663_v1 = vadd.f32 -1.0, %v3002_v53  ;;  %v2659_v28 = vadd.f32 -1.0, %v2994_v30 }
 0x587   :  { %v3006_v41 = vpop.eup %3005  ;;  %1422 = vrot.lane.b32.xlu0 %v4001_v21, %s3113_s2  ;;  %1412 = vrot.lane.b32.xlu1 %v4005_v13, %s3113_s2  ;;  %v2664_v29 = vadd.f32 -1.0, %v3004_v61 }
 0x588   :  { %v3008_v27 = vpop.eup %3007  ;;  %v2666_v38 = vadd.f32 -1.0, %v3006_v41  ;;  %v4039_v36 = vsel %vm1331_vm7, %v3959_v37, %v2659_v28 }
 0x589   :  { %v3010_v4 = vpop.eup %3009  ;;  %v4013_v14 = vsel %vm1336_vm6, %v3975_v40, %v2664_v29  ;;  %v2665_v8 = vadd.f32 -1.0, %v3008_v27 }
 0x58a   :  { %v3012_v17 = vpop.eup %3011  ;;  %v4019_v33 = vsel %vm1338_vm8, %v3977_v57, %v2666_v38  ;;  %v2667_v35 = vadd.f32 -1.0, %v3010_v4  ;;  %v4031_v57 = vsel %vm1335_vm10, %v3970_v54, %v2663_v1 }
 0x58b   :  { %v3014_v26 = vpop.eup %3013  ;;  %1458 = vrot.lane.b32.xlu0 %v3995_v0, %s3114_s1  ;;  %1424 = vrot.lane.b32.xlu1 %v4013_v14, %s3113_s2  ;;  %v2848_v40 = vpack.c.bf16 %v4019_v33, %v4005_v13  ;;  %v2668_v7 = vadd.f32 -1.0, %v3012_v17 }
 0x58c   :  { %v4034_v48 = vsel %vm1339_vm11, %v3982_v10, %v2667_v35  ;;  %v2669_v34 = vadd.f32 -1.0, %v3014_v26  ;;  %v4050_v10 = vsel %vm1337_vm13, %v3979_v16, %v2665_v8  ;;  %v4065_v16 = vsel %vm1333_vm14, %v3967_v63, %v2661_v50  ;;  %v2673_v63 = vld [vmem:[%s4863_s6 + $0x18] sm:$0xff] }
 0x58d   :  { %v4045_v43 = vsel %vm1340_vm9, %v3987_v9, %v2668_v7  ;;  %v2846_v54 = vpack.c.bf16 %v4034_v48, %v4031_v57 }
 0x58e   :  { %v2864_v15 = vpack.c.bf16 %v4045_v43, %v4013_v14  ;;  %v4055_v37 = vsel %vm1341_vm12, %v3989_v18, %v2669_v34  ;;  %v2675_v18 = vld [vmem:[%s4863_s6 + $0x28] sm:$0xff] }
 0x58f   :  { %1416 = vrot.lane.b32.xlu0 %v4039_v36, %s3113_s2  ;;  %1460 = vrot.lane.b32.xlu1 %v4005_v13, %s3114_s1  ;;  %v2862_v9 = vpack.c.bf16 %v4055_v37, %v4050_v10 }
 0x593   :  { %1428 = vrot.lane.b32.xlu0 %v4065_v16, %s3113_s2  ;;  %1418 = vrot.lane.b32.xlu1 %v4031_v57, %s3113_s2 }
 0x597   :  { %1464 = vrot.lane.b32.xlu0 %v4039_v36, %s3114_s1  ;;  %1430 = vrot.lane.b32.xlu1 %v4050_v10, %s3113_s2 }
 0x59b   :  { %1414 = vrot.lane.b32.xlu0 %v4019_v33, %s3113_s2  ;;  %1466 = vrot.lane.b32.xlu1 %v4031_v57, %s3114_s1 }
 0x59f   :  { %1426 = vrot.lane.b32.xlu0 %v4045_v43, %s3113_s2  ;;  %1420 = vrot.lane.b32.xlu1 %v4034_v48, %s3113_s2 }
 0x5a3   :  { %1470 = vrot.lane.b32.xlu0 %v4001_v21, %s3114_s1  ;;  %1432 = vrot.lane.b32.xlu1 %v4055_v37, %s3113_s2 }
 0x5a7   :  { %1476 = vrot.lane.b32.xlu0 %v4065_v16, %s3114_s1  ;;  %1472 = vrot.lane.b32.xlu1 %v4013_v14, %s3114_s1 }
 0x5ab   :  { %1462 = vrot.lane.b32.xlu0 %v4019_v33, %s3114_s1  ;;  %1478 = vrot.lane.b32.xlu1 %v4050_v10, %s3114_s1  ;;  %v2670_v33 = vld [vmem:[%s4862_s5 + $0x18] sm:$0xff] }
 0x5af   :  { %1474 = vrot.lane.b32.xlu0 %v4045_v43, %s3114_s1  ;;  %1468 = vrot.lane.b32.xlu1 %v4034_v48, %s3114_s1 }
 0x5b3   :  { %1508 = vperm.xlu0 %2941, %v2673_v63   ;;  %1480 = vrot.lane.b32.xlu1 %v4055_v37, %s3114_s1 }
 0x5b7   :  { %1518 = vperm.xlu0 %2941, %v2675_v18   ;;  %1513 = vperm.xlu1 %2942, %v2674_v20  }
 0x5f5   :  { %v1411_v30 = vpop.permute.xlu0 %1410 }
 0x5f9   :  { %v1413_v44 = vpop.permute.xlu1 %1412  ;;  %v1423_v47 = vpop.permute.xlu0 %1422 }
 0x5fd   :  { %v1425_v25 = vpop.permute.xlu1 %1424  ;;  %v1459_v45 = vpop.permute.xlu0 %1458 }
 0x601   :  { %v4110_v51 = vpop.permute.xlu1 %1460  ;;  %v1417_v56 = vpop.permute.xlu0 %1416 }
 0x602   :  { %v1440_v53 = vsel %vm281_vm2, %v1411_v30, %v1417_v56  ;;  %v1437_v17 = vsel %vm281_vm2, %v1417_v56, %v1423_v47 }
 0x603   :  { %v1447_v27 = vmul.f32 %v1440_v53, %v3307_v55 }
 0x605   :  { %v1419_v61 = vpop.permute.xlu1 %1418  ;;  %v1429_v41 = vpop.permute.xlu0 %1428 }
 0x606   :  { %v1441_v29 = vsel %vm281_vm2, %v1413_v44, %v1419_v61  ;;  %v1438_v1 = vsel %vm281_vm2, %v1419_v61, %v1425_v25  ;;  %v1434_v4 = vsel %vm281_vm2, %v1423_v47, %v1429_v41  ;;  %v1443_v28 = vsel %vm281_vm2, %v1429_v41, %v1411_v30 }
 0x607   :  { %v1451_v38 = vmul.f32 %v1441_v29, %v3307_v55  ;;  %v1452_v7 = vmul.f32 %v1438_v1, %v3325_v3  ;;  %v1446_v63 = vmul.f32 %v1443_v28, %v3315_v62  ;;  %v1449_v18 = vmul.f32 %v1434_v4, %v3323_v2 }
 0x608   :  { %v1448_v47 = vmul.f32 %v1437_v17, %v3325_v3 }
 0x609   :  { %v1431_v8 = vpop.permute.xlu1 %1430  ;;  %v1465_v35 = vpop.permute.xlu0 %1464  ;;  %v2838_v26 = vpack.c.bf16 %v1451_v38, %v1447_v27 }
 0x60a   :  { %v1435_v34 = vsel %vm281_vm2, %v1425_v25, %v1431_v8  ;;  %v1444_v50 = vsel %vm281_vm2, %v1431_v8, %v1413_v44  ;;  %v2856_v29 = vpack.c.bf16 %v1452_v7, %v1448_v47 }
 0x60b   :  { %v1450_v20 = vmul.f32 %v1444_v50, %v3315_v62  ;;  %v1453_v30 = vmul.f32 %v1435_v34, %v3323_v2  ;;  %2839 = vmatprep.subr.bf16.mxu0 %v2838_v26 }
 0x60d   :  { %v2840_v56 = vpack.c.bf16 %v1450_v20, %v1446_v63  ;;  %v1467_v53 = vpop.permute.xlu1 %1466  ;;  %v1415_v61 = vpop.permute.xlu0 %1414  ;;  %v2854_v41 = vpack.c.bf16 %v1453_v30, %v1449_v18 }
 0x60e   :  { %v1489_v47 = vsel %vm351_vm3, %v4110_v51, %v1467_v53 }
 0x60f   :  { %2841 = vmatpush1.bf16.msra.mxu0 %v2840_v56  ;;  %2855 = vmatprep.subr.bf16.mxu1 %v2854_v41  ;;  %v1488_v41 = vsel %vm351_vm3, %v1459_v45, %v1465_v35 }
 0x610   :  { %2857 = vmatpush1.bf16.msra.mxu1 %v2856_v29 }
 0x611   :  { %v1421_v44 = vpop.permute.xlu1 %1420  ;;  %v1427_v25 = vpop.permute.xlu0 %1426 }
 0x612   :  { %v1442_v27 = vsel %vm281_vm2, %v1415_v61, %v1421_v44  ;;  %v1439_v38 = vsel %vm281_vm2, %v1421_v44, %v1427_v25 }
 0x613   :  { %v1455_v1 = vmul.f32 %v1442_v27, %v3307_v55  ;;  %v1456_v8 = vmul.f32 %v1439_v38, %v3325_v3  ;;  %v1494_v27 = vmul.f32 %v1488_v41, %v3362_v60 }
 0x615   :  { %v1433_v4 = vpop.permute.xlu1 %1432  ;;  %v1471_v28 = vpop.permute.xlu0 %1470  ;;  %v2842_v17 = vpack.c.bf16 %v4039_v36, %v1455_v1  ;;  %v2860_v56 = vpack.c.bf16 %v4001_v21, %v1456_v8  ;;  %v1498_v21 = vmul.f32 %v1489_v47, %v3362_v60 }
 0x616   :  { %v1436_v26 = vsel %vm281_vm2, %v1427_v25, %v1433_v4  ;;  %v1445_v7 = vsel %vm281_vm2, %v1433_v4, %v1415_v61  ;;  %v1485_v63 = vsel %vm351_vm3, %v1465_v35, %v1471_v28 }
 0x617   :  { %v1454_v34 = vmul.f32 %v1445_v7, %v3315_v62  ;;  %v1457_v50 = vmul.f32 %v1436_v26, %v3323_v2  ;;  %2843 = vmatprep.subr.bf16.mxu0 %v2842_v17  ;;  %v1495_v29 = vmul.f32 %v1485_v63, %v3360_v59  ;;  %v2852_v37 = vpack.c.bf16 %v1498_v21, %v1494_v27  ;;  %v2671_v7 = vld [vmem:[%s4862_s5 + $0x20] sm:$0xff] }
 0x619   :  { %v2844_v18 = vpack.c.bf16 %v3995_v0, %v1454_v34  ;;  %v1473_v20 = vpop.permute.xlu1 %1472  ;;  %v1477_v36 = vpop.permute.xlu0 %1476  ;;  %v2858_v30 = vpack.c.bf16 %v4065_v16, %v1457_v50  ;;  %v2672_v34 = vld [vmem:[%s4862_s5 + $0x28] sm:$0xff] }
 0x61a   :  { %v1486_v61 = vsel %vm351_vm3, %v1467_v53, %v1473_v20  ;;  %v1482_v16 = vsel %vm351_vm3, %v1471_v28, %v1477_v36  ;;  %v1491_v44 = vsel %vm351_vm3, %v1477_v36, %v1459_v45 }
 0x61b   :  { %v1499_v0 = vmul.f32 %v1486_v61, %v3360_v59  ;;  %2845 = vmatpush1.bf16.msra.mxu0 %v2844_v18  ;;  %2859 = vmatprep.subr.bf16.mxu1 %v2858_v30  ;;  %v1496_v48 = vmul.f32 %v1482_v16, %v3369_v6 }
 0x61c   :  { %2847 = vmatprep.subr.bf16.mxu0 %v2846_v54  ;;  %2861 = vmatpush1.bf16.msra.mxu1 %v2860_v56  ;;  %v1497_v54 = vmul.f32 %v1491_v44, %v3382_v11 }
 0x61d   :  { %v1479_v35 = vpop.permute.xlu1 %1478  ;;  %2863 = vmatprep.subr.bf16.mxu1 %v2862_v9  ;;  %v1463_v53 = vpop.permute.xlu0 %1462  ;;  %v2850_v25 = vpack.c.bf16 %v1499_v0, %v1495_v29 }
 0x61e   :  { %v1483_v1 = vsel %vm351_vm3, %v1473_v20, %v1479_v35  ;;  %v1492_v57 = vsel %vm351_vm3, %v1479_v35, %v4110_v51 }
 0x61f   :  { %v1500_v45 = vmul.f32 %v1483_v1, %v3369_v6  ;;  %v1501_v10 = vmul.f32 %v1492_v57, %v3382_v11  ;;  %2849 = vmatpush1.bf16.msra.mxu0 %v2848_v40 }
 0x620   :  { %2851 = vmatprep.subr.bf16.mxu0 %v2850_v25  ;;  %2865 = vmatpush1.bf16.msra.mxu1 %v2864_v15 }
 0x621   :  { %v2868_v9 = vpack.c.bf16 %v1500_v45, %v1496_v48  ;;  %v1469_v51 = vpop.permute.xlu1 %1468  ;;  %v1475_v38 = vpop.permute.xlu0 %1474  ;;  %v2866_v4 = vpack.c.bf16 %v1501_v10, %v1497_v54 }
 0x622   :  { %v1490_v28 = vsel %vm351_vm3, %v1463_v53, %v1469_v51  ;;  %v1487_v17 = vsel %vm351_vm3, %v1469_v51, %v1475_v38 }
 0x623   :  { %v1503_v8 = vmul.f32 %v1487_v17, %v3360_v59  ;;  %2853 = vmatpush1.bf16.msra.mxu0 %v2852_v37  ;;  %2867 = vmatprep.subr.bf16.mxu1 %v2866_v4  ;;  %v1502_v13 = vmul.f32 %v1490_v28, %v3362_v60 }
 0x624   :  { %2869 = vmatpush1.bf16.msra.mxu1 %v2868_v9 }
 0x625   :  { %v1481_v14 = vpop.permute.xlu1 %1480  ;;  %1546 = vmatprep.subr.mxu0 %v1503_v8 }
 0x626   :  { %v1484_v40 = vsel %vm351_vm3, %v1475_v38, %v1481_v14  ;;  %v1493_v43 = vsel %vm351_vm3, %v1481_v14, %v1463_v53 }
 0x627   :  { %v1504_v15 = vmul.f32 %v1484_v40, %v3369_v6  ;;  %v1505_v26 = vmul.f32 %v1493_v43, %v3382_v11  ;;  %1547 = vmatpush1.msra.mxu0 %v1502_v13 }
 0x628   :  { %2676 = vmatmul.mubr.msk.f32.vlgmr.msra.gmra.mrb[24].mxu0 %vm412_vm4, %v2670_v33 }
 0x629   :  { %1629 = vmatprep.subr.mxu1 %v1505_v26  ;;  %1600 = vmatprep.mubr.f32.mxu0 %v3111_v5 }
 0x62a   :  { %1630 = vmatpush1.msra.mxu1 %v1504_v15 }
 0x62b   :  { %2679 = vmatmul.mubr.msk.f32.vlgmr.msra.gmra.mrb[24].mxu1 %vm412_vm4, %v2670_v33 }
 0x62c   :  { %2677 = vmatmul.mubr.msk.f32.gmra.mrb[26].mxu0 %vm412_vm4, %v2671_v7  ;;  %1683 = vmatprep.mubr.f32.mxu1 %v3111_v5 }
 0x62d   :  { %1606 = vmatprep.mubr.f32.mxu0 %v3111_v5 }
 0x62f   :  { %2680 = vmatmul.mubr.msk.f32.gmra.mrb[26].mxu1 %vm412_vm4, %v2671_v7 }
 0x630   :  { %2678 = vmatmul.mubr.msk.f32.gmra.mrb[28].mxu0 %vm412_vm4, %v2672_v34  ;;  %1689 = vmatprep.mubr.f32.mxu1 %v3111_v5 }
 0x631   :  { %1972 = vmatprep.mubr.f32.mxu0 %v3111_v5 }
 0x632   :  { %v1509_v50 = vpop.permute.xlu0 %1508 }
 0x633   :  { %2681 = vmatmul.mubr.msk.f32.gmra.mrb[28].mxu1 %vm412_vm4, %v2672_v34 }
 0x634   :  { %2055 = vmatprep.mubr.f32.mxu1 %v3111_v5 }
 0x636   :  { %v1514_v30 = vpop.permute.xlu1 %1513  ;;  %v1519_v51 = vpop.permute.xlu0 %1518 }
 0x6fb   :  { %v1596_v63 = vpop.f32.mrb[24].mxu0 }
 0x6fc   :  { %v1597_v18 = vadd.f32 %v1596_v63, %v1509_v50  ;;  %v1598_v20 = vpop.f32.mrb[25].mxu0 }
 0x6fd   :  { %v1599_v36 = vadd.f32 %v1598_v20, %v1509_v50 }
 0x6fe   :  { %v1696_v47 = vadd.f32 %v1597_v18, %v3739_v39  ;;  %v1679_v56 = vpop.f32.mrb[24].mxu1 }
 0x6ff   :  { %v1680_v61 = vadd.f32 %v1679_v56, %v1509_v50  ;;  %v1602_v41 = vpop.f32.mrb[26].mxu0  ;;  %v1681_v29 = vpop.f32.mrb[25].mxu1  ;;  %v4225_v16 = vadd.f32 %v1599_v36, %v3767_v46 }
 0x700   :  { %v1720_v0 = vmin.f32 %v1696_v47, 0.0  ;;  %v1603_v44 = vadd.f32 %v1602_v41, %v1514_v30  ;;  %v1682_v21 = vadd.f32 %v1681_v29, %v1509_v50  ;;  %v1604_v35 = vpop.f32.mrb[27].mxu0  ;;  %vm1708_vm15 = vcmp.gt.f32.partialorder %v1696_v47, 0.0 }
 0x701   :  { %v4228_v53 = vadd.f32 %v1680_v61, %v3750_v19  ;;  %v1605_v25 = vadd.f32 %v1604_v35, %v1514_v30  ;;  %v1721_v10 = vmin.f32 %v4225_v16, 0.0  ;;  %vm1709_vm6 = vcmp.gt.f32.partialorder %v4225_v16, 0.0 }
 0x702   :  { %v1732_v27 = vmul.f32 1.442695, %v1720_v0  ;;  %v1700_v1 = vadd.f32 %v1603_v44, %v3752_v23  ;;  %v1685_v57 = vpop.f32.mrb[26].mxu1  ;;  %v4233_v48 = vadd.f32 %v1682_v21, %v3779_v42 }
 0x703   :  { %v1722_v39 = vmin.f32 %v4228_v53, 0.0  ;;  %v1686_v54 = vadd.f32 %v1685_v57, %v1514_v30  ;;  %v1608_v45 = vpop.f32.mrb[28].mxu0  ;;  %v1687_v46 = vpop.f32.mrb[27].mxu1  ;;  %v4237_v19 = vadd.f32 %v1605_v25, %v3776_v22  ;;  %v1734_v33 = vmul.f32 1.442695, %v1721_v10 }
 0x704   :  { %3015 = vpow2.f32 %v1732_v27  ;;  %v1724_v37 = vmin.f32 %v1700_v1, 0.0  ;;  %v1610_v9 = vpop.f32.mrb[29].mxu0  ;;  %v1609_v28 = vadd.f32 %v1608_v45, %v1519_v51  ;;  %v1688_v17 = vadd.f32 %v1687_v46, %v1514_v30 }
 0x705   :  { %v1736_v38 = vmul.f32 1.442695, %v1722_v39  ;;  %v1702_v23 = vadd.f32 %v1686_v54, %v3759_v24  ;;  %v1723_v8 = vmin.f32 %v4233_v48, 0.0  ;;  %v1725_v40 = vmin.f32 %v4237_v19, 0.0 }
 0x706   :  { %v1740_v4 = vmul.f32 1.442695, %v1724_v37  ;;  %v1691_v42 = vpop.f32.mrb[28].mxu1  ;;  %v4243_v22 = vadd.f32 %v1688_v17, %v3787_v31  ;;  %v4246_v15 = vadd.f32 %v1609_v28, %v3795_v52  ;;  %v1611_v26 = vadd.f32 %v1610_v9, %v1519_v51 }
 0x707   :  { %3017 = vpow2.f32 %v1736_v38  ;;  %v1726_v13 = vmin.f32 %v1702_v23, 0.0  ;;  %v1693_v14 = vpop.f32.mrb[29].mxu1  ;;  %v1738_v24 = vmul.f32 1.442695, %v1723_v8  ;;  %v1742_v7 = vmul.f32 1.442695, %v1725_v40 }
 0x708   :  { %3019 = vpow2.f32 %v1740_v4  ;;  %v1727_v34 = vmin.f32 %v4243_v22, 0.0  ;;  %v1692_v50 = vadd.f32 %v1691_v42, %v1519_v51  ;;  %v1728_v18 = vmin.f32 %v4246_v15, 0.0 }
 0x709   :  { %v1744_v43 = vmul.f32 1.442695, %v1726_v13  ;;  %v4251_v20 = vadd.f32 %v1611_v26, %v3804_v12  ;;  %v1694_v31 = vadd.f32 %v1693_v14, %v1519_v51  ;;  %vm1710_vm0 = vcmp.gt.f32.partialorder %v4228_v53, 0.0  ;;  %v2698_v26 = vld [vmem:[%s4861_s4 + $0x38] sm:$0xff] }
 0x70a   :  { %v1746_v52 = vmul.f32 1.442695, %v1727_v34  ;;  %v4254_v30 = vadd.f32 %v1692_v50, %v3807_v32  ;;  %v1748_v29 = vmul.f32 1.442695, %v1728_v18  ;;  %vm1712_vm1 = vcmp.gt.f32.partialorder %v1700_v1, 0.0 }
 0x70b   :  { %3021 = vpow2.f32 %v1744_v43  ;;  %v1729_v12 = vmin.f32 %v4251_v20, 0.0  ;;  %v4262_v44 = vadd.f32 %v1694_v31, %v3815_v58  ;;  %vm1714_vm5 = vcmp.gt.f32.partialorder %v1702_v23, 0.0 }
 0x70c   :  { %3023 = vpow2.f32 %v1734_v33  ;;  %v1730_v32 = vmin.f32 %v4254_v30, 0.0  ;;  %vm1713_vm7 = vcmp.gt.f32.partialorder %v4237_v19, 0.0  ;;  %vm1711_vm8 = vcmp.gt.f32.partialorder %v4233_v48, 0.0 }
 0x70d   :  { %3025 = vpow2.f32 %v1738_v24  ;;  %v1750_v57 = vmul.f32 1.442695, %v1729_v12  ;;  %v1731_v54 = vmin.f32 %v4262_v44, 0.0  ;;  %vm1715_vm9 = vcmp.gt.f32.partialorder %v4243_v22, 0.0  ;;  %v2697_v24 = vld [vmem:[%s4861_s4 + $0x30] sm:$0xff] }
 0x70e   :  { %v3016_v63 = vpop.eup %3015  ;;  %3027 = vpow2.f32 %v1742_v7  ;;  %v1752_v39 = vmul.f32 1.442695, %v1730_v32  ;;  %vm1716_vm10 = vcmp.gt.f32.partialorder %v4246_v15, 0.0  ;;  %vm1717_vm11 = vcmp.gt.f32.partialorder %v4251_v20, 0.0  ;;  %v2699_v7 = vld [vmem:[%s4861_s4 + $0x40] sm:$0xff] }
 0x70f   :  { %v2682_v36 = vadd.f32 -1.0, %v3016_v63  ;;  %3029 = vpow2.f32 %v1746_v52  ;;  %v1754_v10 = vmul.f32 1.442695, %v1731_v54  ;;  %vm1718_vm12 = vcmp.gt.f32.partialorder %v4254_v30, 0.0 }
 0x710   :  { %3031 = vpow2.f32 %v1748_v29  ;;  %vm1719_vm13 = vcmp.gt.f32.partialorder %v4262_v44, 0.0 }
 0x711   :  { %v3018_v56 = vpop.eup %3017  ;;  %v4256_v61 = vsel %vm1708_vm15, %v1696_v47, %v2682_v36  ;;  %3033 = vpow2.f32 %v1750_v57 }
 0x712   :  { %v3020_v41 = vpop.eup %3019  ;;  %1788 = vrot.lane.b32.xlu1 %v4256_v61, %s3113_s2  ;;  %v2684_v0 = vadd.f32 -1.0, %v3018_v56  ;;  %3035 = vpow2.f32 %v1752_v39 }
 0x713   :  { %v2686_v21 = vadd.f32 -1.0, %v3020_v41  ;;  %3037 = vpow2.f32 %v1754_v10 }
 0x714   :  { %v4267_v47 = vsel %vm1710_vm0, %v4228_v53, %v2684_v0 }
 0x715   :  { %v3022_v35 = vpop.eup %3021  ;;  %v4269_v25 = vsel %vm1712_vm1, %v1700_v1, %v2686_v21 }
 0x716   :  { %v3024_v27 = vpop.eup %3023  ;;  %1790 = vrot.lane.b32.xlu0 %v4269_v25, %s3113_s2  ;;  %1800 = vrot.lane.b32.xlu1 %v4267_v47, %s3113_s2  ;;  %v2688_v58 = vadd.f32 -1.0, %v3022_v35 }
 0x717   :  { %v3026_v53 = vpop.eup %3025  ;;  %v2683_v46 = vadd.f32 -1.0, %v3024_v27 }
 0x718   :  { %v4276_v45 = vsel %vm1714_vm5, %v1702_v23, %v2688_v58  ;;  %v3028_v1 = vpop.eup %3027  ;;  %v2685_v51 = vadd.f32 -1.0, %v3026_v53 }
 0x719   :  { %v4284_v37 = vsel %vm1709_vm6, %v4225_v16, %v2683_v46  ;;  %v2687_v9 = vadd.f32 -1.0, %v3028_v1  ;;  %v3030_v38 = vpop.eup %3029 }
 0x71a   :  { %1802 = vrot.lane.b32.xlu0 %v4276_v45, %s3113_s2  ;;  %1836 = vrot.lane.b32.xlu1 %v4256_v61, %s3114_s1  ;;  %v4296_v16 = vsel %vm1711_vm8, %v4233_v48, %v2685_v51  ;;  %v2689_v4 = vadd.f32 -1.0, %v3030_v38  ;;  %v3032_v28 = vpop.eup %3031 }
 0x71b   :  { %v4293_v23 = vsel %vm1713_vm7, %v4237_v19, %v2687_v9  ;;  %v3034_v17 = vpop.eup %3033  ;;  %v2690_v8 = vadd.f32 -1.0, %v3032_v28 }
 0x71c   :  { %v4304_v42 = vsel %vm1715_vm9, %v4243_v22, %v2689_v4  ;;  %v3036_v19 = vpop.eup %3035  ;;  %v2691_v13 = vadd.f32 -1.0, %v3034_v17 }
 0x71d   :  { %v4312_v48 = vsel %vm1716_vm10, %v4246_v15, %v2690_v8  ;;  %v2692_v14 = vadd.f32 -1.0, %v3036_v19  ;;  %v3038_v33 = vpop.eup %3037 }
 0x71e   :  { %1838 = vrot.lane.b32.xlu0 %v4269_v25, %s3114_s1  ;;  %1794 = vrot.lane.b32.xlu1 %v4284_v37, %s3113_s2  ;;  %v4321_v40 = vsel %vm1717_vm11, %v4251_v20, %v2691_v13  ;;  %v2693_v43 = vadd.f32 -1.0, %v3038_v33 }
 0x71f   :  { %v4324_v22 = vsel %vm1718_vm12, %v4254_v30, %v2692_v14 }
 0x720   :  { %v4332_v15 = vsel %vm1719_vm13, %v4262_v44, %v2693_v43 }
 0x722   :  { %1796 = vrot.lane.b32.xlu0 %v4293_v23, %s3113_s2  ;;  %1806 = vrot.lane.b32.xlu1 %v4296_v16, %s3113_s2 }
 0x726   :  { %1808 = vrot.lane.b32.xlu0 %v4304_v42, %s3113_s2  ;;  %1842 = vrot.lane.b32.xlu1 %v4284_v37, %s3114_s1 }
 0x72a   :  { %1844 = vrot.lane.b32.xlu0 %v4293_v23, %s3114_s1  ;;  %1792 = vrot.lane.b32.xlu1 %v4312_v48, %s3113_s2 }
 0x72e   :  { %1798 = vrot.lane.b32.xlu0 %v4321_v40, %s3113_s2  ;;  %1804 = vrot.lane.b32.xlu1 %v4324_v22, %s3113_s2 }
 0x732   :  { %1810 = vrot.lane.b32.xlu0 %v4332_v15, %s3113_s2  ;;  %1848 = vrot.lane.b32.xlu1 %v4267_v47, %s3114_s1 }
 0x736   :  { %1850 = vrot.lane.b32.xlu0 %v4276_v45, %s3114_s1  ;;  %1854 = vrot.lane.b32.xlu1 %v4296_v16, %s3114_s1 }
 0x73a   :  { %1856 = vrot.lane.b32.xlu0 %v4304_v42, %s3114_s1  ;;  %1840 = vrot.lane.b32.xlu1 %v4312_v48, %s3114_s1 }
 0x73e   :  { %1846 = vrot.lane.b32.xlu0 %v4321_v40, %s3114_s1  ;;  %1852 = vrot.lane.b32.xlu1 %v4324_v22, %s3114_s1 }
 0x742   :  { %1858 = vrot.lane.b32.xlu0 %v4332_v15, %s3114_s1  ;;  %1886 = vperm.xlu1 %2942, %v2697_v24  }
 0x746   :  { %1891 = vperm.xlu0 %2941, %v2698_v26   ;;  %1896 = vperm.xlu1 %2942, %v2699_v7  }
 0x784   :  { %v1789_v34 = vpop.permute.xlu1 %1788 }
 0x788   :  { %v1801_v50 = vpop.permute.xlu1 %1800  ;;  %v1791_v63 = vpop.permute.xlu0 %1790 }
 0x78c   :  { %v4361_v18 = vpop.permute.xlu1 %1836  ;;  %v1803_v20 = vpop.permute.xlu0 %1802 }
 0x790   :  { %v1795_v31 = vpop.permute.xlu1 %1794  ;;  %v4363_v36 = vpop.permute.xlu0 %1838 }
 0x791   :  { %v1818_v52 = vsel %vm281_vm2, %v1789_v34, %v1795_v31  ;;  %v1815_v32 = vsel %vm281_vm2, %v1795_v31, %v1801_v50 }
 0x792   :  { %v1825_v29 = vmul.f32 %v1818_v52, %v3307_v55  ;;  %v1826_v9 = vmul.f32 %v1815_v32, %v3325_v3 }
 0x794   :  { %v1807_v30 = vpop.permute.xlu1 %1806  ;;  %v1797_v56 = vpop.permute.xlu0 %1796 }
 0x795   :  { %v1819_v41 = vsel %vm281_vm2, %v1791_v63, %v1797_v56  ;;  %v1816_v0 = vsel %vm281_vm2, %v1797_v56, %v1803_v20  ;;  %v1812_v44 = vsel %vm281_vm2, %v1801_v50, %v1807_v30  ;;  %v1821_v21 = vsel %vm281_vm2, %v1807_v30, %v1789_v34 }
 0x796   :  { %v1829_v12 = vmul.f32 %v1819_v41, %v3307_v55  ;;  %v1830_v57 = vmul.f32 %v1816_v0, %v3325_v3  ;;  %v1824_v53 = vmul.f32 %v1821_v21, %v3315_v62  ;;  %v1827_v46 = vmul.f32 %v1812_v44, %v3323_v2 }
 0x797   :  { %v2894_v21 = vpack.c.bf16 %v4332_v15, %v4304_v42 }
 0x798   :  { %v1843_v35 = vpop.permute.xlu1 %1842  ;;  %v1809_v27 = vpop.permute.xlu0 %1808  ;;  %v2870_v58 = vpack.c.bf16 %v1829_v12, %v1825_v29  ;;  %v2888_v17 = vpack.c.bf16 %v1830_v57, %v1826_v9  ;;  %v2878_v29 = vpack.c.bf16 %v4321_v40, %v4293_v23 }
 0x799   :  { %v1813_v39 = vsel %vm281_vm2, %v1803_v20, %v1809_v27  ;;  %v1822_v54 = vsel %vm281_vm2, %v1809_v27, %v1791_v63  ;;  %v1866_v32 = vsel %vm351_vm3, %v4361_v18, %v1843_v35 }
 0x79a   :  { %v1828_v1 = vmul.f32 %v1822_v54, %v3315_v62  ;;  %v1831_v10 = vmul.f32 %v1813_v39, %v3323_v2  ;;  %2871 = vmatprep.subr.bf16.mxu0 %v2870_v58 }
 0x79c   :  { %v2872_v51 = vpack.c.bf16 %v1828_v1, %v1824_v53  ;;  %v1793_v38 = vpop.permute.xlu1 %1792  ;;  %v1845_v4 = vpop.permute.xlu0 %1844  ;;  %v2886_v28 = vpack.c.bf16 %v1831_v10, %v1827_v46  ;;  %v2880_v46 = vpack.c.bf16 %v4312_v48, %v4269_v25  ;;  %v1872_v10 = vmul.f32 %v1866_v32, %v3362_v60 }
 0x79d   :  { %v1867_v0 = vsel %vm351_vm3, %v4363_v36, %v1845_v4 }
 0x79e   :  { %2873 = vmatpush1.bf16.msra.mxu0 %v2872_v51  ;;  %2887 = vmatprep.subr.bf16.mxu1 %v2886_v28  ;;  %v1876_v54 = vmul.f32 %v1867_v0, %v3362_v60  ;;  %v2896_v51 = vpack.c.bf16 %v4324_v22, %v4276_v45 }
 0x79f   :  { %2889 = vmatpush1.bf16.msra.mxu1 %v2888_v17 }
 0x7a0   :  { %v1805_v8 = vpop.permute.xlu1 %1804  ;;  %v1799_v19 = vpop.permute.xlu0 %1798 }
 0x7a1   :  { %v1820_v13 = vsel %vm281_vm2, %v1793_v38, %v1799_v19  ;;  %v1817_v14 = vsel %vm281_vm2, %v1799_v19, %v1805_v8 }
 0x7a2   :  { %v1833_v33 = vmul.f32 %v1820_v13, %v3307_v55  ;;  %v1834_v7 = vmul.f32 %v1817_v14, %v3325_v3 }
 0x7a4   :  { %v1849_v43 = vpop.permute.xlu1 %1848  ;;  %v1811_v24 = vpop.permute.xlu0 %1810  ;;  %v2874_v26 = vpack.c.bf16 %v4284_v37, %v1833_v33  ;;  %v2892_v12 = vpack.c.bf16 %v4267_v47, %v1834_v7 }
 0x7a5   :  { %v1814_v34 = vsel %vm281_vm2, %v1805_v8, %v1811_v24  ;;  %v1823_v50 = vsel %vm281_vm2, %v1811_v24, %v1793_v38  ;;  %v1863_v31 = vsel %vm351_vm3, %v1843_v35, %v1849_v43  ;;  %v2884_v8 = vpack.c.bf16 %v1876_v54, %v1872_v10 }
 0x7a6   :  { %v1832_v63 = vmul.f32 %v1823_v50, %v3315_v62  ;;  %v1835_v20 = vmul.f32 %v1814_v34, %v3323_v2  ;;  %2875 = vmatprep.subr.bf16.mxu0 %v2874_v26  ;;  %v1873_v27 = vmul.f32 %v1863_v31, %v3360_v59  ;;  %v2694_v34 = vld [vmem:[%s4860_s3 + $0x30] sm:$0xff] }
 0x7a8   :  { %v2876_v52 = vpack.c.bf16 %v4256_v61, %v1832_v63  ;;  %v1855_v30 = vpop.permute.xlu1 %1854  ;;  %v1851_v56 = vpop.permute.xlu0 %1850  ;;  %v2890_v41 = vpack.c.bf16 %v4296_v16, %v1835_v20 }
 0x7a9   :  { %v1864_v44 = vsel %vm351_vm3, %v1845_v4, %v1851_v56  ;;  %v1860_v57 = vsel %vm351_vm3, %v1849_v43, %v1855_v30  ;;  %v1869_v39 = vsel %vm351_vm3, %v1855_v30, %v4361_v18  ;;  %v2696_v30 = vld [vmem:[%s4860_s3 + $0x40] sm:$0xff] }
 0x7aa   :  { %v1877_v58 = vmul.f32 %v1864_v44, %v3360_v59  ;;  %2877 = vmatpush1.bf16.msra.mxu0 %v2876_v52  ;;  %2891 = vmatprep.subr.bf16.mxu1 %v2890_v41  ;;  %v1874_v38 = vmul.f32 %v1860_v57, %v3369_v6  ;;  %v1875_v4 = vmul.f32 %v1869_v39, %v3382_v11  ;;  %v2695_v52 = vld [vmem:[%s4860_s3 + $0x38] sm:$0xff] }
 0x7ab   :  { %2879 = vmatprep.subr.bf16.mxu0 %v2878_v29  ;;  %2893 = vmatpush1.bf16.msra.mxu1 %v2892_v12 }
 0x7ac   :  { %v1841_v53 = vpop.permute.xlu1 %1840  ;;  %2895 = vmatprep.subr.bf16.mxu1 %v2894_v21  ;;  %v1857_v35 = vpop.permute.xlu0 %1856  ;;  %v2882_v1 = vpack.c.bf16 %v1877_v58, %v1873_v27 }
 0x7ad   :  { %v1861_v9 = vsel %vm351_vm3, %v1851_v56, %v1857_v35  ;;  %v1870_v18 = vsel %vm351_vm3, %v1857_v35, %v4363_v36 }
 0x7ae   :  { %v1878_v28 = vmul.f32 %v1861_v9, %v3369_v6  ;;  %v1879_v17 = vmul.f32 %v1870_v18, %v3382_v11  ;;  %2881 = vmatpush1.bf16.msra.mxu0 %v2880_v46 }
 0x7af   :  { %2883 = vmatprep.subr.bf16.mxu0 %v2882_v1  ;;  %2897 = vmatpush1.bf16.msra.mxu1 %v2896_v51 }
 0x7b0   :  { %v2900_v19 = vpack.c.bf16 %v1878_v28, %v1874_v38  ;;  %v1853_v13 = vpop.permute.xlu1 %1852  ;;  %v1847_v14 = vpop.permute.xlu0 %1846  ;;  %v2898_v33 = vpack.c.bf16 %v1879_v17, %v1875_v4 }
 0x7b1   :  { %v1865_v36 = vsel %vm351_vm3, %v1847_v14, %v1853_v13  ;;  %v1868_v43 = vsel %vm351_vm3, %v1841_v53, %v1847_v14 }
 0x7b2   :  { %v1881_v24 = vmul.f32 %v1865_v36, %v3360_v59  ;;  %2885 = vmatpush1.bf16.msra.mxu0 %v2884_v8  ;;  %2899 = vmatprep.subr.bf16.mxu1 %v2898_v33  ;;  %v1880_v26 = vmul.f32 %v1868_v43, %v3362_v60 }
 0x7b3   :  { %2901 = vmatpush1.bf16.msra.mxu1 %v2900_v19 }
 0x7b4   :  { %1924 = vmatprep.subr.mxu0 %v1881_v24  ;;  %v1859_v7 = vpop.permute.xlu0 %1858 }
 0x7b5   :  { %v1862_v50 = vsel %vm351_vm3, %v1853_v13, %v1859_v7  ;;  %v1871_v63 = vsel %vm351_vm3, %v1859_v7, %v1841_v53 }
 0x7b6   :  { %v1882_v20 = vmul.f32 %v1862_v50, %v3369_v6  ;;  %v1883_v31 = vmul.f32 %v1871_v63, %v3382_v11  ;;  %1925 = vmatpush1.msra.mxu0 %v1880_v26 }
 0x7b7   :  { %2700 = vmatmul.mubr.msk.f32.vlgmr.msra.gmra.mrb[30].mxu0 %vm412_vm4, %v2694_v34 }
 0x7b8   :  { %2007 = vmatprep.subr.mxu1 %v1883_v31  ;;  %1978 = vmatprep.mubr.f32.mxu0 %v3111_v5 }
 0x7b9   :  { %2008 = vmatpush1.msra.mxu1 %v1882_v20 }
 0x7ba   :  { %2703 = vmatmul.mubr.msk.f32.vlgmr.msra.gmra.mrb[30].mxu1 %vm412_vm4, %v2694_v34 }
 0x7bb   :  { %2701 = vmatmul.mubr.msk.f32.gmra.mrb[32].mxu0 %vm412_vm4, %v2695_v52  ;;  %2061 = vmatprep.mubr.f32.mxu1 %v3111_v5 }
 0x7bc   :  { %1984 = vmatprep.mubr.f32.mxu0 %v3111_v5 }
 0x7be   :  { %2704 = vmatmul.mubr.msk.f32.gmra.mrb[32].mxu1 %vm412_vm4, %v2695_v52 }
 0x7bf   :  { %2702 = vmatmul.mubr.msk.f32.gmra.mrb[34].mxu0 %vm412_vm4, %v2696_v30  ;;  %2067 = vmatprep.mubr.f32.mxu1 %v3111_v5 }
 0x7c0   :  { %2338 = vmatprep.mubr.f32.mxu0 %v3111_v5 }
 0x7c1   :  { %v1887_v56 = vpop.permute.xlu1 %1886 }
 0x7c2   :  { %2705 = vmatmul.mubr.msk.f32.gmra.mrb[34].mxu1 %vm412_vm4, %v2696_v30 }
 0x7c3   :  { %2421 = vmatprep.mubr.f32.mxu1 %v3111_v5 }
 0x7c5   :  { %v1892_v44 = vpop.permute.xlu0 %1891  ;;  %v1897_v10 = vpop.permute.xlu1 %1896 }
 0x88a   :  { %v1974_v41 = vpop.f32.mrb[30].mxu0 }
 0x88b   :  { %v4474_v29 = vadd.f32 %v1974_v41, %v1887_v56  ;;  %v1976_v0 = vpop.f32.mrb[31].mxu0 }
 0x88c   :  { %v4476_v12 = vadd.f32 %v1976_v0, %v1887_v56 }
 0x88d   :  { %v2086_v21 = vmin.f32 %v4474_v29, 0.0  ;;  %v2057_v32 = vpop.f32.mrb[30].mxu1  ;;  %vm2074_vm14 = vcmp.gt.f32.partialorder %v4474_v29, 0.0 }
 0x88e   :  { %v2087_v27 = vmin.f32 %v4476_v12, 0.0  ;;  %v4480_v58 = vadd.f32 %v2057_v32, %v1887_v56  ;;  %v1980_v57 = vpop.f32.mrb[32].mxu0  ;;  %v2059_v39 = vpop.f32.mrb[31].mxu1  ;;  %vm2075_vm6 = vcmp.gt.f32.partialorder %v4476_v12, 0.0 }
 0x88f   :  { %v2098_v54 = vmul.f32 1.442695, %v2086_v21  ;;  %v4482_v53 = vadd.f32 %v1980_v57, %v1892_v44  ;;  %v1982_v35 = vpop.f32.mrb[33].mxu0  ;;  %v4488_v18 = vadd.f32 %v2059_v39, %v1887_v56 }
 0x890   :  { %v2088_v46 = vmin.f32 %v4480_v58, 0.0  ;;  %v4485_v1 = vadd.f32 %v1982_v35, %v1892_v44  ;;  %v2100_v38 = vmul.f32 1.442695, %v2087_v27  ;;  %vm2076_vm15 = vcmp.gt.f32.partialorder %v4480_v58, 0.0 }
 0x891   :  { %3039 = vpow2.f32 %v2098_v54  ;;  %v2090_v9 = vmin.f32 %v4482_v53, 0.0  ;;  %v2063_v51 = vpop.f32.mrb[32].mxu1  ;;  %v2089_v24 = vmin.f32 %v4488_v18, 0.0  ;;  %vm2078_vm0 = vcmp.gt.f32.partialorder %v4482_v53, 0.0 }
 0x892   :  { %v2102_v4 = vmul.f32 1.442695, %v2088_v46  ;;  %v1986_v28 = vpop.f32.mrb[34].mxu0  ;;  %v2065_v17 = vpop.f32.mrb[33].mxu1  ;;  %v2091_v19 = vmin.f32 %v4485_v1, 0.0  ;;  %v2064_v13 = vadd.f32 %v2063_v51, %v1892_v44  ;;  %vm2079_vm7 = vcmp.gt.f32.partialorder %v4485_v1, 0.0 }
 0x893   :  { %v2106_v8 = vmul.f32 1.442695, %v2090_v9  ;;  %v4491_v14 = vadd.f32 %v1986_v28, %v1897_v10  ;;  %v1988_v33 = vpop.f32.mrb[35].mxu0  ;;  %v4493_v36 = vadd.f32 %v2065_v17, %v1892_v44  ;;  %v2104_v0 = vmul.f32 1.442695, %v2089_v24 }
 0x894   :  { %3041 = vpow2.f32 %v2102_v4  ;;  %v4495_v43 = vadd.f32 %v1988_v33, %v1897_v10  ;;  %v2108_v26 = vmul.f32 1.442695, %v2091_v19  ;;  %v2092_v7 = vmin.f32 %v2064_v13, 0.0 }
 0x895   :  { %3043 = vpow2.f32 %v2106_v8  ;;  %v2069_v34 = vpop.f32.mrb[34].mxu1  ;;  %v2094_v50 = vmin.f32 %v4491_v14, 0.0  ;;  %v2093_v31 = vmin.f32 %v4493_v36, 0.0  ;;  %vm2080_vm1 = vcmp.gt.f32.partialorder %v2064_v13, 0.0 }
 0x896   :  { %3045 = vpow2.f32 %v2100_v38  ;;  %v2071_v63 = vpop.f32.mrb[35].mxu1  ;;  %v2110_v20 = vmul.f32 1.442695, %v2092_v7  ;;  %v2095_v30 = vmin.f32 %v4495_v43, 0.0  ;;  %v4501_v56 = vadd.f32 %v2069_v34, %v1897_v10 }
 0x897   :  { %3047 = vpow2.f32 %v2108_v26  ;;  %v2114_v52 = vmul.f32 1.442695, %v2094_v50  ;;  %v4503_v41 = vadd.f32 %v2071_v63, %v1897_v10  ;;  %v2112_v44 = vmul.f32 1.442695, %v2093_v31 }
 0x898   :  { %3049 = vpow2.f32 %v2110_v20  ;;  %v2116_v21 = vmul.f32 1.442695, %v2095_v30  ;;  %v2096_v32 = vmin.f32 %v4501_v56, 0.0  ;;  %vm2082_vm5 = vcmp.gt.f32.partialorder %v4491_v14, 0.0 }
 0x899   :  { %3051 = vpow2.f32 %v2114_v52  ;;  %v2097_v57 = vmin.f32 %v4503_v41, 0.0  ;;  %vm2083_vm8 = vcmp.gt.f32.partialorder %v4495_v43, 0.0  ;;  %vm2084_vm9 = vcmp.gt.f32.partialorder %v4501_v56, 0.0 }
 0x89a   :  { %3053 = vpow2.f32 %v2112_v44  ;;  %v2118_v39 = vmul.f32 1.442695, %v2096_v32  ;;  %vm2081_vm10 = vcmp.gt.f32.partialorder %v4493_v36, 0.0  ;;  %vm2085_vm11 = vcmp.gt.f32.partialorder %v4503_v41, 0.0 }
 0x89b   :  { %v3040_v27 = vpop.eup %3039  ;;  %3055 = vpow2.f32 %v2116_v21  ;;  %v2120_v35 = vmul.f32 1.442695, %v2097_v57  ;;  %vm2077_vm12 = vcmp.gt.f32.partialorder %v4488_v18, 0.0 }
 0x89c   :  { %v2706_v54 = vadd.f32 -1.0, %v3040_v27  ;;  %3057 = vpow2.f32 %v2104_v0 }
 0x89d   :  { %3059 = vpow2.f32 %v2118_v39 }
 0x89e   :  { %v3042_v46 = vpop.eup %3041  ;;  %v4509_v10 = vsel %vm2074_vm14, %v4474_v29, %v2706_v54  ;;  %3061 = vpow2.f32 %v2120_v35 }
 0x89f   :  { %v3044_v9 = vpop.eup %3043  ;;  %2154 = vrot.lane.b32.xlu0 %v4509_v10, %s3113_s2  ;;  %v2708_v51 = vadd.f32 -1.0, %v3042_v46 }
 0x8a0   :  { %v3046_v38 = vpop.eup %3045  ;;  %v2710_v4 = vadd.f32 -1.0, %v3044_v9 }
 0x8a1   :  { %v3048_v28 = vpop.eup %3047  ;;  %v4516_v17 = vsel %vm2076_vm15, %v4480_v58, %v2708_v51 }
 0x8a2   :  { %v4519_v8 = vsel %vm2078_vm0, %v4482_v53, %v2710_v4  ;;  %v3050_v29 = vpop.eup %3049  ;;  %v2711_v26 = vadd.f32 -1.0, %v3048_v28  ;;  %v2707_v53 = vadd.f32 -1.0, %v3046_v38 }
 0x8a3   :  { %2166 = vrot.lane.b32.xlu0 %v4516_v17, %s3113_s2  ;;  %2156 = vrot.lane.b32.xlu1 %v4519_v8, %s3113_s2  ;;  %v3052_v19 = vpop.eup %3051  ;;  %v2712_v33 = vadd.f32 -1.0, %v3050_v29 }
 0x8a4   :  { %v3054_v24 = vpop.eup %3053  ;;  %v2714_v7 = vadd.f32 -1.0, %v3052_v19  ;;  %v4542_v0 = vsel %vm2079_vm7, %v4485_v1, %v2711_v26  ;;  %v4548_v21 = vsel %vm2075_vm6, %v4476_v12, %v2707_v53 }
 0x8a5   :  { %v3056_v34 = vpop.eup %3055  ;;  %v4526_v58 = vsel %vm2080_vm1, %v2064_v13, %v2712_v33  ;;  %v2713_v13 = vadd.f32 -1.0, %v3054_v24 }
 0x8a6   :  { %v3058_v50 = vpop.eup %3057  ;;  %v4534_v63 = vsel %vm2082_vm5, %v4491_v14, %v2714_v7  ;;  %v2715_v20 = vadd.f32 -1.0, %v3056_v34 }
 0x8a7   :  { %2202 = vrot.lane.b32.xlu0 %v4509_v10, %s3114_s1  ;;  %2168 = vrot.lane.b32.xlu1 %v4526_v58, %s3113_s2  ;;  %v3060_v31 = vpop.eup %3059  ;;  %v2912_v52 = vpack.c.bf16 %v4534_v63, %v4519_v8  ;;  %v2709_v32 = vadd.f32 -1.0, %v3058_v50  ;;  %v4562_v12 = vsel %vm2081_vm10, %v4493_v36, %v2713_v13  ;;  %v2723_v36 = vld [vmem:[%s4863_s6 + $0x40] sm:$0xff] }
 0x8a8   :  { %v3062_v30 = vpop.eup %3061  ;;  %v2716_v44 = vadd.f32 -1.0, %v3060_v31  ;;  %v4545_v14 = vsel %vm2083_vm8, %v4495_v43, %v2715_v20 }
 0x8a9   :  { %v2717_v27 = vadd.f32 -1.0, %v3062_v30  ;;  %v2910_v57 = vpack.c.bf16 %v4545_v14, %v4542_v0  ;;  %v4573_v35 = vsel %vm2077_vm12, %v4488_v18, %v2709_v32  ;;  %v2721_v18 = vld [vmem:[%s4863_s6 + $0x30] sm:$0xff] }
 0x8aa   :  { %v4559_v1 = vsel %vm2084_vm9, %v4501_v56, %v2716_v44  ;;  %v2722_v56 = vld [vmem:[%s4863_s6 + $0x38] sm:$0xff] }
 0x8ab   :  { %2160 = vrot.lane.b32.xlu0 %v4548_v21, %s3113_s2  ;;  %2204 = vrot.lane.b32.xlu1 %v4519_v8, %s3114_s1  ;;  %v2928_v43 = vpack.c.bf16 %v4559_v1, %v4526_v58  ;;  %v4567_v39 = vsel %vm2085_vm11, %v4503_v41, %v2717_v27 }
 0x8ac   :  { %v2926_v54 = vpack.c.bf16 %v4567_v39, %v4562_v12 }
 0x8af   :  { %2172 = vrot.lane.b32.xlu0 %v4573_v35, %s3113_s2  ;;  %2162 = vrot.lane.b32.xlu1 %v4542_v0, %s3113_s2 }
 0x8b3   :  { %2208 = vrot.lane.b32.xlu0 %v4548_v21, %s3114_s1  ;;  %2174 = vrot.lane.b32.xlu1 %v4562_v12, %s3113_s2 }
 0x8b7   :  { %2158 = vrot.lane.b32.xlu0 %v4534_v63, %s3113_s2  ;;  %2210 = vrot.lane.b32.xlu1 %v4542_v0, %s3114_s1 }
 0x8bb   :  { %2170 = vrot.lane.b32.xlu0 %v4559_v1, %s3113_s2  ;;  %2164 = vrot.lane.b32.xlu1 %v4545_v14, %s3113_s2 }
 0x8bf   :  { %2214 = vrot.lane.b32.xlu0 %v4516_v17, %s3114_s1  ;;  %2176 = vrot.lane.b32.xlu1 %v4567_v39, %s3113_s2 }
 0x8c3   :  { %2220 = vrot.lane.b32.xlu0 %v4573_v35, %s3114_s1  ;;  %2216 = vrot.lane.b32.xlu1 %v4526_v58, %s3114_s1 }
 0x8c7   :  { %2206 = vrot.lane.b32.xlu0 %v4534_v63, %s3114_s1  ;;  %2222 = vrot.lane.b32.xlu1 %v4562_v12, %s3114_s1  ;;  %v2718_v63 = vld [vmem:[%s4862_s5 + $0x30] sm:$0xff] }
 0x8cb   :  { %2218 = vrot.lane.b32.xlu0 %v4559_v1, %s3114_s1  ;;  %2212 = vrot.lane.b32.xlu1 %v4545_v14, %s3114_s1 }
 0x8cf   :  { %2252 = vperm.xlu0 %2941, %v2721_v18   ;;  %2224 = vrot.lane.b32.xlu1 %v4567_v39, %s3114_s1 }
 0x8d3   :  { %2262 = vperm.xlu0 %2941, %v2723_v36   ;;  %2257 = vperm.xlu1 %2942, %v2722_v56  }
 0x911   :  { %v2155_v41 = vpop.permute.xlu0 %2154 }
 0x915   :  { %v2157_v46 = vpop.permute.xlu1 %2156  ;;  %v2167_v9 = vpop.permute.xlu0 %2166 }
 0x919   :  { %v2169_v51 = vpop.permute.xlu1 %2168  ;;  %v2203_v38 = vpop.permute.xlu0 %2202 }
 0x91d   :  { %v4618_v4 = vpop.permute.xlu1 %2204  ;;  %v2161_v28 = vpop.permute.xlu0 %2160 }
 0x91e   :  { %v2184_v29 = vsel %vm281_vm2, %v2155_v41, %v2161_v28  ;;  %v2181_v20 = vsel %vm281_vm2, %v2161_v28, %v2167_v9 }
 0x91f   :  { %v2191_v26 = vmul.f32 %v2184_v29, %v3307_v55 }
 0x921   :  { %v2163_v19 = vpop.permute.xlu1 %2162  ;;  %v2173_v33 = vpop.permute.xlu0 %2172 }
 0x922   :  { %v2185_v24 = vsel %vm281_vm2, %v2157_v46, %v2163_v19  ;;  %v2182_v7 = vsel %vm281_vm2, %v2163_v19, %v2169_v51  ;;  %v2178_v53 = vsel %vm281_vm2, %v2167_v9, %v2173_v33  ;;  %v2187_v50 = vsel %vm281_vm2, %v2173_v33, %v2155_v41 }
 0x923   :  { %v2195_v34 = vmul.f32 %v2185_v24, %v3307_v55  ;;  %v2196_v44 = vmul.f32 %v2182_v7, %v3325_v3  ;;  %v2190_v18 = vmul.f32 %v2187_v50, %v3315_v62  ;;  %v2193_v36 = vmul.f32 %v2178_v53, %v3323_v2 }
 0x924   :  { %v2192_v9 = vmul.f32 %v2181_v20, %v3325_v3 }
 0x925   :  { %v2175_v31 = vpop.permute.xlu1 %2174  ;;  %v2209_v13 = vpop.permute.xlu0 %2208  ;;  %v2902_v30 = vpack.c.bf16 %v2195_v34, %v2191_v26 }
 0x926   :  { %v2179_v32 = vsel %vm281_vm2, %v2169_v51, %v2175_v31  ;;  %v2188_v27 = vsel %vm281_vm2, %v2175_v31, %v2157_v46  ;;  %v2920_v24 = vpack.c.bf16 %v2196_v44, %v2192_v9 }
 0x927   :  { %v2194_v56 = vmul.f32 %v2188_v27, %v3315_v62  ;;  %v2197_v41 = vmul.f32 %v2179_v32, %v3323_v2  ;;  %2903 = vmatprep.subr.bf16.mxu0 %v2902_v30 }
 0x929   :  { %v2904_v28 = vpack.c.bf16 %v2194_v56, %v2190_v18  ;;  %v2211_v29 = vpop.permute.xlu1 %2210  ;;  %v2159_v19 = vpop.permute.xlu0 %2158  ;;  %v2918_v33 = vpack.c.bf16 %v2197_v41, %v2193_v36 }
 0x92a   :  { %v2233_v56 = vsel %vm351_vm3, %v4618_v4, %v2211_v29 }
 0x92b   :  { %2905 = vmatpush1.bf16.msra.mxu0 %v2904_v28  ;;  %2919 = vmatprep.subr.bf16.mxu1 %v2918_v33 }
 0x92c   :  { %2921 = vmatpush1.bf16.msra.mxu1 %v2920_v24 }
 0x92d   :  { %v2165_v46 = vpop.permute.xlu1 %2164  ;;  %v2171_v51 = vpop.permute.xlu0 %2170 }
 0x92e   :  { %v2186_v26 = vsel %vm281_vm2, %v2159_v19, %v2165_v46  ;;  %v2183_v34 = vsel %vm281_vm2, %v2165_v46, %v2171_v51 }
 0x92f   :  { %v2199_v7 = vmul.f32 %v2186_v26, %v3307_v55  ;;  %v2200_v31 = vmul.f32 %v2183_v34, %v3325_v3 }
 0x931   :  { %v2177_v53 = vpop.permute.xlu1 %2176  ;;  %v2215_v50 = vpop.permute.xlu0 %2214  ;;  %v2906_v20 = vpack.c.bf16 %v4548_v21, %v2199_v7  ;;  %v2924_v41 = vpack.c.bf16 %v4516_v17, %v2200_v31  ;;  %v2242_v17 = vmul.f32 %v2233_v56, %v3362_v60 }
 0x932   :  { %v2180_v30 = vsel %vm281_vm2, %v2171_v51, %v2177_v53  ;;  %v2189_v44 = vsel %vm281_vm2, %v2177_v53, %v2159_v19  ;;  %v2229_v55 = vsel %vm351_vm3, %v2209_v13, %v2215_v50 }
 0x933   :  { %v2198_v32 = vmul.f32 %v2189_v44, %v3315_v62  ;;  %v2201_v27 = vmul.f32 %v2180_v30, %v3323_v2  ;;  %2907 = vmatprep.subr.bf16.mxu0 %v2906_v20  ;;  %v2232_v2 = vsel %vm351_vm3, %v2203_v38, %v2209_v13  ;;  %v2239_v9 = vmul.f32 %v2229_v55, %v3360_v59 }
 0x934   :  { %v2238_v33 = vmul.f32 %v2232_v2, %v3362_v60 }
 0x935   :  { %v2908_v18 = vpack.c.bf16 %v4509_v10, %v2198_v32  ;;  %v2217_v36 = vpop.permute.xlu1 %2216  ;;  %v2221_v21 = vpop.permute.xlu0 %2220  ;;  %v2922_v3 = vpack.c.bf16 %v4573_v35, %v2201_v27 }
 0x936   :  { %v2230_v62 = vsel %vm351_vm3, %v2211_v29, %v2217_v36  ;;  %v2226_v35 = vsel %vm351_vm3, %v2215_v50, %v2221_v21  ;;  %v2235_v28 = vsel %vm351_vm3, %v2221_v21, %v2203_v38  ;;  %v2916_v39 = vpack.c.bf16 %v2242_v17, %v2238_v33 }
 0x937   :  { %v2243_v10 = vmul.f32 %v2230_v62, %v3360_v59  ;;  %2909 = vmatpush1.bf16.msra.mxu0 %v2908_v18  ;;  %2923 = vmatprep.subr.bf16.mxu1 %v2922_v3  ;;  %v2240_v14 = vmul.f32 %v2226_v35, %v3369_v6 }
 0x938   :  { %2911 = vmatprep.subr.bf16.mxu0 %v2910_v57  ;;  %2925 = vmatpush1.bf16.msra.mxu1 %v2924_v41  ;;  %v2241_v57 = vmul.f32 %v2235_v28, %v3382_v11 }
 0x939   :  { %v2223_v13 = vpop.permute.xlu1 %2222  ;;  %2927 = vmatprep.subr.bf16.mxu1 %v2926_v54  ;;  %v2207_v29 = vpop.permute.xlu0 %2206  ;;  %v2914_v19 = vpack.c.bf16 %v2243_v10, %v2239_v9 }
 0x93a   :  { %v2227_v24 = vsel %vm351_vm3, %v2217_v36, %v2223_v13  ;;  %v2236_v0 = vsel %vm351_vm3, %v2223_v13, %v4618_v4 }
 0x93b   :  { %v2244_v38 = vmul.f32 %v2227_v24, %v3369_v6  ;;  %v2245_v12 = vmul.f32 %v2236_v0, %v3382_v11  ;;  %2913 = vmatpush1.bf16.msra.mxu0 %v2912_v52 }
 0x93c   :  { %2915 = vmatprep.subr.bf16.mxu0 %v2914_v19  ;;  %2929 = vmatpush1.bf16.msra.mxu1 %v2928_v43 }
 0x93d   :  { %v2932_v54 = vpack.c.bf16 %v2244_v38, %v2240_v14  ;;  %v2213_v4 = vpop.permute.xlu1 %2212  ;;  %v2219_v46 = vpop.permute.xlu0 %2218  ;;  %v2930_v51 = vpack.c.bf16 %v2245_v12, %v2241_v57 }
 0x93e   :  { %v2234_v26 = vsel %vm351_vm3, %v2207_v29, %v2213_v4  ;;  %v2231_v7 = vsel %vm351_vm3, %v2213_v4, %v2219_v46 }
 0x93f   :  { %v2247_v34 = vmul.f32 %v2231_v7, %v3360_v59  ;;  %2917 = vmatpush1.bf16.msra.mxu0 %v2916_v39  ;;  %2931 = vmatprep.subr.bf16.mxu1 %v2930_v51  ;;  %v2246_v8 = vmul.f32 %v2234_v26, %v3362_v60  ;;  %v2719_v60 = vld [vmem:[%s4862_s5 + $0x38] sm:$0xff] }
 0x940   :  { %2933 = vmatpush1.bf16.msra.mxu1 %v2932_v54 }
 0x941   :  { %v2225_v58 = vpop.permute.xlu1 %2224  ;;  %2290 = vmatprep.subr.mxu0 %v2247_v34 }
 0x942   :  { %v2228_v52 = vsel %vm351_vm3, %v2219_v46, %v2225_v58  ;;  %v2237_v1 = vsel %vm351_vm3, %v2225_v58, %v2207_v29 }
 0x943   :  { %v2248_v43 = vmul.f32 %v2228_v52, %v3369_v6  ;;  %v2249_v59 = vmul.f32 %v2237_v1, %v3382_v11  ;;  %2291 = vmatpush1.msra.mxu0 %v2246_v8  ;;  %v2720_v6 = vld [vmem:[%s4862_s5 + $0x40] sm:$0xff]  ;;  %s3115_s5 = smov [#allocation2]  }
 0x944   :  { %2724 = vmatmul.mubr.msk.f32.vlgmr.msra.gmra.mrb[36].mxu0 %vm412_vm4, %v2718_v63 }
 0x945   :  { %2373 = vmatprep.subr.mxu1 %v2249_v59  ;;  %2344 = vmatprep.mubr.f32.mxu0 %v3111_v5 }
 0x946   :  { %2374 = vmatpush1.msra.mxu1 %v2248_v43 }
 0x947   :  { %2727 = vmatmul.mubr.msk.f32.vlgmr.msra.gmra.mrb[36].mxu1 %vm412_vm4, %v2718_v63 }
 0x948   :  { %2725 = vmatmul.mubr.msk.f32.gmra.mrb[38].mxu0 %vm412_vm4, %v2719_v60  ;;  %2427 = vmatprep.mubr.f32.mxu1 %v3111_v5 }
 0x949   :  { %2350 = vmatprep.mubr.f32.mxu0 %v3111_v5 }
 0x94b   :  { %2728 = vmatmul.mubr.msk.f32.gmra.mrb[38].mxu1 %vm412_vm4, %v2719_v60 }
 0x94c   :  { %2726 = vmatmul.mubr.msk.f32.gmra.mrb[40].mxu0 %vm412_vm4, %v2720_v6  ;;  %2433 = vmatprep.mubr.f32.mxu1 %v3111_v5 }
 0x94e   :  { %v2253_v11 = vpop.permute.xlu0 %2252 }
 0x94f   :  { %2729 = vmatmul.mubr.msk.f32.gmra.mrb[40].mxu1 %vm412_vm4, %v2720_v6 }
 0x952   :  { %v2258_v30 = vpop.permute.xlu1 %2257 }
 0xa17   :  { %v2340_v53 = vpop.f32.mrb[36].mxu0 }
 0xa18   :  { %v2341_v50 = vadd.f32 %v2340_v53, %v2253_v11  ;;  %v2342_v20 = vpop.f32.mrb[37].mxu0 }
 0xa19   :  { %v2343_v31 = vadd.f32 %v2342_v20, %v2253_v11 }
 0xa1a   :  { %v4730_v44 = vadd.f32 %v2341_v50, %v4256_v61  ;;  %v2423_v32 = vpop.f32.mrb[36].mxu1  ;;  %v2263_v61 = vpop.permute.xlu0 %2262 }
 0xa1b   :  { %v4733_v27 = vadd.f32 %v2343_v31, %v4284_v37  ;;  %v2424_v55 = vadd.f32 %v2423_v32, %v2253_v11  ;;  %v2346_v18 = vpop.f32.mrb[38].mxu0  ;;  %v2425_v36 = vpop.f32.mrb[37].mxu1 }
 0xa1c   :  { %v2464_v5 = vmin.f32 %v4730_v44, 0.0  ;;  %v2347_v21 = vadd.f32 %v2346_v18, %v2258_v30  ;;  %v2426_v3 = vadd.f32 %v2425_v36, %v2253_v11  ;;  %v2348_v56 = vpop.f32.mrb[39].mxu0  ;;  %vm2452_vm2 = vcmp.gt.f32.partialorder %v4730_v44, 0.0 }
 0xa1d   :  { %v2465_v41 = vmin.f32 %v4733_v27, 0.0  ;;  %v4738_v62 = vadd.f32 %v2424_v55, %v4267_v47  ;;  %v2349_v2 = vadd.f32 %v2348_v56, %v2258_v30  ;;  %vm2453_vm4 = vcmp.gt.f32.partialorder %v4733_v27, 0.0 }
 0xa1e   :  { %v2476_v9 = vmul.f32 1.442695, %v2464_v5  ;;  %v4741_v10 = vadd.f32 %v2347_v21, %v4269_v25  ;;  %v4744_v37 = vadd.f32 %v2426_v3, %v4296_v16  ;;  %v2429_v35 = vpop.f32.mrb[38].mxu1 }
 0xa1f   :  { %v2478_v28 = vmul.f32 1.442695, %v2465_v41  ;;  %v2466_v17 = vmin.f32 %v4738_v62, 0.0  ;;  %v4748_v13 = vadd.f32 %v2349_v2, %v4293_v23  ;;  %v2430_v29 = vadd.f32 %v2429_v35, %v2258_v30  ;;  %v2352_v19 = vpop.f32.mrb[40].mxu0  ;;  %v2431_v47 = vpop.f32.mrb[39].mxu1 }
 0xa20   :  { %3063 = vpow2.f32 %v2476_v9  ;;  %v2468_v33 = vmin.f32 %v4741_v10, 0.0  ;;  %v2467_v24 = vmin.f32 %v4744_v37, 0.0  ;;  %v2353_v25 = vadd.f32 %v2352_v19, %v2263_v61  ;;  %v2354_v0 = vpop.f32.mrb[41].mxu0 }
 0xa21   :  { %3065 = vpow2.f32 %v2478_v28  ;;  %v2480_v16 = vmul.f32 1.442695, %v2466_v17  ;;  %v2469_v14 = vmin.f32 %v4748_v13, 0.0  ;;  %v4754_v57 = vadd.f32 %v2430_v29, %v4276_v45 }
 0xa22   :  { %v2484_v38 = vmul.f32 1.442695, %v2468_v33  ;;  %v2482_v23 = vmul.f32 1.442695, %v2467_v24  ;;  %v4757_v12 = vadd.f32 %v2353_v25, %v4312_v48  ;;  %v2432_v39 = vadd.f32 %v2431_v47, %v2258_v30  ;;  %v2435_v54 = vpop.f32.mrb[40].mxu1 }
 0xa23   :  { %3067 = vpow2.f32 %v2480_v16  ;;  %v2486_v4 = vmul.f32 1.442695, %v2469_v14  ;;  %v2470_v46 = vmin.f32 %v4754_v57, 0.0  ;;  %v2355_v51 = vadd.f32 %v2354_v0, %v2263_v61  ;;  %v2437_v26 = vpop.f32.mrb[41].mxu1 }
 0xa24   :  { %3069 = vpow2.f32 %v2484_v38  ;;  %v2472_v7 = vmin.f32 %v4757_v12, 0.0  ;;  %v4762_v34 = vadd.f32 %v2432_v39, %v4304_v42  ;;  %v2436_v45 = vadd.f32 %v2435_v54, %v2263_v61 }
 0xa25   :  { %3071 = vpow2.f32 %v2482_v23  ;;  %v2488_v8 = vmul.f32 1.442695, %v2470_v46  ;;  %v4765_v48 = vadd.f32 %v2355_v51, %v4321_v40  ;;  %v2438_v58 = vadd.f32 %v2437_v26, %v2263_v61 }
 0xa26   :  { %3073 = vpow2.f32 %v2486_v4  ;;  %v2492_v63 = vmul.f32 1.442695, %v2472_v7  ;;  %v4768_v52 = vadd.f32 %v2436_v45, %v4324_v22  ;;  %v2471_v42 = vmin.f32 %v4762_v34, 0.0 }
 0xa27   :  { %v2473_v1 = vmin.f32 %v4765_v48, 0.0  ;;  %v4772_v43 = vadd.f32 %v2438_v58, %v4332_v15  ;;  %vm2454_vm13 = vcmp.gt.f32.partialorder %v4738_v62, 0.0  ;;  %vm2455_vm14 = vcmp.gt.f32.partialorder %v4744_v37, 0.0 }
 0xa28   :  { %3075 = vpow2.f32 %v2492_v63  ;;  %v2474_v59 = vmin.f32 %v4768_v52, 0.0  ;;  %v2490_v22 = vmul.f32 1.442695, %v2471_v42  ;;  %vm2457_vm15 = vcmp.gt.f32.partialorder %v4748_v13, 0.0 }
 0xa29   :  { %3077 = vpow2.f32 %v2488_v8  ;;  %v2494_v60 = vmul.f32 1.442695, %v2473_v1  ;;  %v2475_v40 = vmin.f32 %v4772_v43, 0.0  ;;  %vm2456_vm0 = vcmp.gt.f32.partialorder %v4741_v10, 0.0 }
 0xa2a   :  { %v3064_v6 = vpop.eup %3063  ;;  %v2496_v11 = vmul.f32 1.442695, %v2474_v59  ;;  %vm2460_vm1 = vcmp.gt.f32.partialorder %v4757_v12, 0.0  ;;  %vm2458_vm5 = vcmp.gt.f32.partialorder %v4754_v57, 0.0  ;;  %vm2462_vm6 = vcmp.gt.f32.partialorder %v4768_v52, 0.0 }
 0xa2b   :  { %v3066_v53 = vpop.eup %3065  ;;  %v2730_v50 = vadd.f32 -1.0, %v3064_v6  ;;  %v2498_v31 = vmul.f32 1.442695, %v2475_v40  ;;  %vm2461_vm7 = vcmp.gt.f32.partialorder %v4765_v48, 0.0  ;;  %vm2459_vm8 = vcmp.gt.f32.partialorder %v4762_v34, 0.0 }
 0xa2c   :  { %3079 = vpow2.f32 %v2496_v11  ;;  %v2731_v20 = vadd.f32 -1.0, %v3066_v53  ;;  %vm2463_vm9 = vcmp.gt.f32.partialorder %v4772_v43, 0.0 }
 0xa2d   :  { %v3068_v15 = vpop.eup %3067  ;;  %3081 = vpow2.f32 %v2494_v60  ;;  %v2512_v30 = vsel %vm2452_vm2, %v4730_v44, %v2730_v50 }
 0xa2e   :  { %v3070_v32 = vpop.eup %3069  ;;  %2524 = vrot.lane.b32.xlu1 %v2512_v30, %s3114_s1  ;;  %v4782_v55 = vsel %vm2453_vm4, %v4733_v27, %v2731_v20  ;;  %v2732_v18 = vadd.f32 -1.0, %v3068_v15  ;;  %3083 = vpow2.f32 %v2490_v22 }
 0xa2f   :  { %v3072_v36 = vpop.eup %3071  ;;  %2530 = vrot.lane.b32.xlu0 %v4782_v55, %s3114_s1  ;;  %3085 = vpow2.f32 %v2498_v31  ;;  %v2734_v41 = vadd.f32 -1.0, %v3070_v32 }
 0xa30   :  { %v3074_v5 = vpop.eup %3073  ;;  %v2514_v21 = vsel %vm2454_vm13, %v4738_v62, %v2732_v18  ;;  %v2733_v44 = vadd.f32 -1.0, %v3072_v36 }
 0xa31   :  { %v2735_v3 = vadd.f32 -1.0, %v3074_v5  ;;  %v2516_v35 = vsel %vm2456_vm0, %v4741_v10, %v2734_v41 }
 0xa32   :  { %v3076_v56 = vpop.eup %3075  ;;  %2536 = vrot.lane.b32.xlu1 %v2514_v21, %s3114_s1  ;;  %v2515_v27 = vsel %vm2455_vm14, %v4744_v37, %v2733_v44 }
 0xa33   :  { %v3078_v2 = vpop.eup %3077  ;;  %2542 = vrot.lane.b32.xlu0 %v2515_v27, %s3114_s1  ;;  %v2517_v61 = vsel %vm2457_vm15, %v4748_v13, %v2735_v3  ;;  %v2738_v62 = vadd.f32 -1.0, %v3076_v56 }
 0xa34   :  { %v2736_v28 = vadd.f32 -1.0, %v3078_v2 }
 0xa35   :  { %v2520_v37 = vsel %vm2460_vm1, %v4757_v12, %v2738_v62 }
 0xa36   :  { %v3080_v9 = vpop.eup %3079  ;;  %2532 = vrot.lane.b32.xlu1 %v2517_v61, %s3114_s1  ;;  %v4803_v19 = vsel %vm2458_vm5, %v4754_v57, %v2736_v28 }
 0xa37   :  { %v3082_v17 = vpop.eup %3081  ;;  %2526 = vrot.lane.b32.xlu0 %v2516_v35, %s3114_s1  ;;  %v2740_v29 = vadd.f32 -1.0, %v3080_v9 }
 0xa38   :  { %v3084_v13 = vpop.eup %3083  ;;  %v2739_v47 = vadd.f32 -1.0, %v3082_v17 }
 0xa39   :  { %v3086_v33 = vpop.eup %3085  ;;  %v2522_v10 = vsel %vm2462_vm6, %v4768_v52, %v2740_v29  ;;  %v2737_v24 = vadd.f32 -1.0, %v3084_v13 }
 0xa3a   :  { %2528 = vrot.lane.b32.xlu1 %v2520_v37, %s3114_s1  ;;  %v2521_v25 = vsel %vm2461_vm7, %v4765_v48, %v2739_v47  ;;  %v2741_v0 = vadd.f32 -1.0, %v3086_v33 }
 0xa3b   :  { %2538 = vrot.lane.b32.xlu0 %v4803_v19, %s3114_s1  ;;  %v2519_v16 = vsel %vm2459_vm8, %v4762_v34, %v2737_v24 }
 0xa3c   :  { %v2523_v14 = vsel %vm2463_vm9, %v4772_v43, %v2741_v0 }
 0xa3e   :  { %2540 = vrot.lane.b32.xlu1 %v2522_v10, %s3114_s1 }
 0xa3f   :  { %2534 = vrot.lane.b32.xlu0 %v2521_v25, %s3114_s1 }
 0xa42   :  { %2544 = vrot.lane.b32.xlu1 %v2519_v16, %s3114_s1 }
 0xa43   :  { %2546 = vrot.lane.b32.xlu0 %v2523_v14, %s3114_s1  ;;  %s2589_s1 = sshll.u32 %s3115_s5, 4  ;;  %s2590_s1 = int_to_ptr.vmem [resolvable:$true] %s2589_s1 }
 0xa44   :  { %s3087_s28 = scalar_lea.vmem %s2590_s1, 1536  ;;  %p3092_p1 = scmp.lt.s32.totalorder %s2590_s1, %s2590_s1 }
 0xa45   :  { %p3088_p0 = scmp.ne.s32.totalorder %s2590_s1, %s3087_s28  ;;  %p3093_p2 = scmp.lt.s32.totalorder %s3087_s28, %s3087_s28 }
 0xa47   :  { %p3094_p3 = por %p3093_p2, %p3092_p1 }
 0xa49   :  { %p3095_p4 = pnand %p3094_p3, %p3088_p0 }
 0xaa0   :  { %v2525_v57 = vpop.permute.xlu1 %2524 }
 0xaa1   :  { %v2531_v38 = vpop.permute.xlu0 %2530 }
 0xaa2   :  { %v2554_v23 = vsel %vm351_vm3, %v2525_v57, %v2531_v38 }
 0xaa3   :  { %v2560_v12 = vmax.f32 %v2512_v30, %v2554_v23 }
 0xaa4   :  { %v2537_v39 = vpop.permute.xlu1 %2536 }
 0xaa5   :  { %2572 = vst [vmem:[#allocation2] sm:$0xff] %v2560_v12  ;;  %v2551_v54 = vsel %vm351_vm3, %v2531_v38, %v2537_v39  ;;  %v2543_v4 = vpop.permute.xlu0 %2542 }
 0xaa6   :  { %v2561_v46 = vmax.f32 %v4782_v55, %v2551_v54  ;;  %v2548_v51 = vsel %vm351_vm3, %v2537_v39, %v2543_v4  ;;  %v2557_v26 = vsel %vm351_vm3, %v2543_v4, %v2525_v57 }
 0xaa7   :  { %v2562_v7 = vmax.f32 %v2514_v21, %v2548_v51  ;;  %v2563_v34 = vmax.f32 %v2515_v27, %v2557_v26 }
 0xaa8   :  { %2573 = vst [vmem:[#allocation2 + $0x8] sm:$0xff] %v2561_v46  ;;  %v2533_v45 = vpop.permute.xlu1 %2532 }
 0xaa9   :  { %2574 = vst [vmem:[#allocation2 + $0x10] sm:$0xff] %v2562_v7  ;;  %2575 = vst [vmem:[#allocation2 + $0x18] sm:$0xff] %v2563_v34  ;;  %v2527_v8 = vpop.permute.xlu0 %2526 }
 0xaaa   :  { %v2555_v48 = vsel %vm351_vm3, %v2527_v8, %v2533_v45 }
 0xaab   :  { %v2564_v58 = vmax.f32 %v2516_v35, %v2555_v48 }
 0xaac   :  { %v2529_v63 = vpop.permute.xlu1 %2528 }
 0xaad   :  { %2576 = vst [vmem:[#allocation2 + $0x20] sm:$0xff] %v2564_v58  ;;  %v2539_v52 = vpop.permute.xlu0 %2538 }
 0xaae   :  { %v2552_v1 = vsel %vm351_vm3, %v2533_v45, %v2539_v52 }
 0xaaf   :  { %v2565_v43 = vmax.f32 %v2517_v61, %v2552_v1 }
 0xab0   :  { %v2541_v42 = vpop.permute.xlu1 %2540 }
 0xab1   :  { %2577 = vst [vmem:[#allocation2 + $0x28] sm:$0xff] %v2565_v43  ;;  %v2535_v59 = vpop.permute.xlu0 %2534 }
 0xab2   :  { %v2553_v60 = vsel %vm351_vm3, %v2535_v59, %v2541_v42  ;;  %v2556_v40 = vsel %vm351_vm3, %v2529_v63, %v2535_v59 }
 0xab3   :  { %v2568_v6 = vmax.f32 %v2520_v37, %v2556_v40  ;;  %v2569_v11 = vmax.f32 %v2521_v25, %v2553_v60 }
 0xab4   :  { %v2545_v53 = vpop.permute.xlu1 %2544 }
 0xab5   :  { %2580 = vst [vmem:[#allocation2 + $0x40] sm:$0xff] %v2568_v6  ;;  %2581 = vst [vmem:[#allocation2 + $0x48] sm:$0xff] %v2569_v11  ;;  %v2549_v50 = vsel %vm351_vm3, %v2539_v52, %v2545_v53  ;;  %v2558_v22 = vsel %vm351_vm3, %v2545_v53, %v2527_v8  ;;  %v2547_v20 = vpop.permute.xlu0 %2546 }
 0xab6   :  { %v2566_v15 = vmax.f32 %v4803_v19, %v2549_v50  ;;  %v2567_v31 = vmax.f32 %v2519_v16, %v2558_v22  ;;  %v2550_v30 = vsel %vm351_vm3, %v2541_v42, %v2547_v20  ;;  %v2559_v32 = vsel %vm351_vm3, %v2547_v20, %v2529_v63 }
 0xab7   :  { %v2570_v55 = vmax.f32 %v2522_v10, %v2550_v30  ;;  %v2571_v18 = vmax.f32 %v2523_v14, %v2559_v32 }
 0xab8   :  { %2578 = vst [vmem:[#allocation2 + $0x30] sm:$0xff] %v2566_v15  ;;  %2579 = vst [vmem:[#allocation2 + $0x38] sm:$0xff] %v2567_v31 }
 0xab9   :  { %2582 = vst [vmem:[#allocation2 + $0x50] sm:$0xff] %v2570_v55  ;;  %2583 = vst [vmem:[#allocation2 + $0x58] sm:$0xff] %v2571_v18 }
 0xaba   :  { %3098 = shalt.err (!%p3095_p4)
}
 0xabb   :  { %s3099_s10 = scalar_lea.hbm %s4866_s9, 1536 }
 0xabc   :  { %p3100_p5 = scmp.ne.s32.totalorder %s4866_s9, %s3099_s10  ;;  %p3103_p6 = scmp.lt.u32.totalorder %s3099_s10, %s4866_s9 }
 0xabe   :  { %p3105_p7 = pnand %p3103_p6, %p3100_p5 }
 0xac0   :  { %3108 = shalt.err (!%p3105_p7)
}
 0xac1   :  { %s3116_s7 = smov 512   ;;  %s3117_s15 = smov 32  }
 0xac2   :  { %2595 = dma.vmem_to_hbm [thread:$0]  %s2590_s1, 1536, %s4866_s9, [#allocation3], %s3116_s7, %s3116_s7, %s3117_s15  }
 0xac3   :  { %3109 = dma.done.wait [#allocation3], 1536  }
 0xac4   :  { %3110 = vsyncadd [#allocation3], 4294965760 }
 0xac5   :  { %2599 = vsyncpa [#allocation3], 1 }

</bundles_post_ra>
